<compile_context>
chip_gen: v6e
topology: v6e:2x2x1
jax: 0.10.0
libtpu: 0.0.40
codegen_flags: <defaults>
</compile_context>

<pallas_src>
import math
import numpy as np

import jax
import jax.numpy as jnp
from jax.experimental import pallas as pl
from jax.experimental.pallas import tpu as pltpu

# ----------------------------- model config ---------------------------------
BATCH = 2
SEQ = 8                         # must be even: forward() chunks the sequence in 2
INPUT_DIMS = 16
OUTPUT_DIMS = 16
HIDDEN_T_DIM = 8
TIME_EMBED_DIM = HIDDEN_T_DIM * 4       # 32
HIDDEN = 32                     # config.hidden_size
N_HEADS = 4
D_HEAD = HIDDEN // N_HEADS
D_FF = 64
N_ENC_LAYERS = 1
N_DEC_LAYERS = 1
HALF_SEQ = SEQ // 2
LN_EPS = 1e-12
RMS_EPS = 1e-6
NEG_INF = -1e9
LANES = 128                     # lane width of the packed parameter panel / output slab
MXU_IN_DTYPE = jnp.bfloat16     # matmul-operand dtype (f32 accumulate); OK on v5e/v6e/v7x


# ------------------------ packed parameter layout ----------------------------
def _round8(n):
    return (n + 7) // 8 * 8


def _param_defs():
    """(name, rows, cols, kind) for every parameter; kind in {'w','b','g'}."""
    defs = [
        ("time_w1", HIDDEN_T_DIM, TIME_EMBED_DIM, "w"),
        ("time_b1", 1, TIME_EMBED_DIM, "b"),
        ("time_w2", TIME_EMBED_DIM, HIDDEN, "w"),
        ("time_b2", 1, HIDDEN, "b"),
        ("up_w1", INPUT_DIMS, HIDDEN, "w"),
        ("up_b1", 1, HIDDEN, "b"),
        ("up_w2", HIDDEN, HIDDEN, "w"),
        ("up_b2", 1, HIDDEN, "b"),
        ("ln_g", 1, HIDDEN, "g"),
        ("ln_b", 1, HIDDEN, "b"),
    ]
    for i in range(N_ENC_LAYERS):
        p = f"enc{i}_"
        defs += [
            (p + "ln1_g", 1, HIDDEN, "g"),
            (p + "w_qkv", HIDDEN, 3 * HIDDEN, "w"),
            (p + "b_qkv", 1, 3 * HIDDEN, "b"),
            (p + "wo", HIDDEN, HIDDEN, "w"),
            (p + "bo", 1, HIDDEN, "b"),
            (p + "ln2_g", 1, HIDDEN, "g"),
            (p + "ffn_w1", HIDDEN, D_FF, "w"),
            (p + "ffn_b1", 1, D_FF, "b"),
            (p + "ffn_w2", D_FF, HIDDEN, "w"),
            (p + "ffn_b2", 1, HIDDEN, "b"),
        ]
    defs.append(("enc_final_g", 1, HIDDEN, "g"))
    for i in range(N_DEC_LAYERS):
        p = f"dec{i}_"
        defs += [
            (p + "ln1_g", 1, HIDDEN, "g"),
            (p + "self_w_qkv", HIDDEN, 3 * HIDDEN, "w"),
            (p + "self_b_qkv", 1, 3 * HIDDEN, "b"),
            (p + "self_wo", HIDDEN, HIDDEN, "w"),
            (p + "self_bo", 1, HIDDEN, "b"),
            (p + "ln2_g", 1, HIDDEN, "g"),
            (p + "cross_w_q", HIDDEN, HIDDEN, "w"),
            (p + "cross_b_q", 1, HIDDEN, "b"),
            (p + "cross_w_kv", HIDDEN, 2 * HIDDEN, "w"),
            (p + "cross_b_kv", 1, 2 * HIDDEN, "b"),
            (p + "cross_wo", HIDDEN, HIDDEN, "w"),
            (p + "cross_bo", 1, HIDDEN, "b"),
            (p + "ln3_g", 1, HIDDEN, "g"),
            (p + "ffn_w1", HIDDEN, D_FF, "w"),
            (p + "ffn_b1", 1, D_FF, "b"),
            (p + "ffn_w2", D_FF, HIDDEN, "w"),
            (p + "ffn_b2", 1, HIDDEN, "b"),
        ]
    defs.append(("dec_final_g", 1, HIDDEN, "g"))
    defs += [
        ("down_w1", HIDDEN, HIDDEN, "w"),
        ("down_b1", 1, HIDDEN, "b"),
        ("down_w2", HIDDEN, OUTPUT_DIMS, "w"),
        ("down_b2", 1, OUTPUT_DIMS, "b"),
    ]
    return defs


PARAM_DEFS = _param_defs()


def _build_layout(defs):
    layout, r = {}, 0
    for name, k, n, _kind in defs:
        assert n <= LANES, name
        layout[name] = (r, k, n)
        r += _round8(k)            # every entry starts on a sublane-tile boundary
    return layout, _round8(r)


PARAM_LAYOUT, PANEL_ROWS = _build_layout(PARAM_DEFS)


def init_param_panel(key):
    """Pack all weights/biases/gammas into one (PANEL_ROWS, 128) f32 panel."""
    panel = np.zeros((PANEL_ROWS, LANES), np.float32)
    keys = jax.random.split(key, len(PARAM_DEFS))
    for (name, k, n, kind), kk in zip(PARAM_DEFS, keys):
        r0 = PARAM_LAYOUT[name][0]
        if kind == "w":
            panel[r0:r0 + k, :n] = 0.05 * np.asarray(
                jax.random.normal(kk, (k, n), jnp.float32))
        elif kind == "g":
            panel[r0, :n] = 1.0
        # kind == "b": stays zero
    return jnp.asarray(panel)


# ------------------------------ fused kernel --------------------------------
def _fused_forward_kernel(x_ref, t_ref, p_ref, o_ref):
    B, S, half, H = BATCH, SEQ, HALF_SEQ, HIDDEN
    scale = 1.0 / math.sqrt(D_HEAD)

    # --- static, sublane-aligned views into the packed parameter panel -------
    def wblk(name, full=False):
        r0, k, n = PARAM_LAYOUT[name]
        return p_ref[r0:r0 + k, 0:(LANES if full else n)]

    def vrow(name, full=False):
        r0, _k, n = PARAM_LAYOUT[name]
        return p_ref[r0:r0 + 1, 0:(LANES if full else n)]

    def mm(a, wmat):                      # MXU: bf16 operands, f32 accumulate
        return jnp.dot(a.astype(MXU_IN_DTYPE), wmat.astype(MXU_IN_DTYPE),
                       preferred_element_type=jnp.float32)

    def linear(a, wname, bname, act=None, full=False):
        y = mm(a, wblk(wname, full)) + vrow(bname, full)
        if act == "tanh":
            y = jnp.tanh(y)
        elif act == "silu":
            y = y * jax.nn.sigmoid(y)
        elif act == "relu":
            y = jnp.maximum(y, 0.0)
        return y

    def rmsnorm(v, gname):
        var = jnp.mean(jnp.square(v), axis=-1, keepdims=True)
        return v * jax.lax.rsqrt(var + RMS_EPS) * vrow(gname)

    def softmax(s):
        s = s - jnp.max(s, axis=-1, keepdims=True)
        e = jnp.exp(s)
        return e * pl.reciprocal(jnp.sum(e, axis=-1, keepdims=True), approx=True)

    # causal mask for decoder self-attention, built once per call
    row = jax.lax.broadcasted_iota(jnp.int32, (half, half), 0)
    col = jax.lax.broadcasted_iota(jnp.int32, (half, half), 1)
    causal_ok = (col <= row)[None]                       # (1, half, half)

    def attention(q2, k2, v2, wo_name, bo_name, Sq, Sk, causal):
        """q2:(B*Sq,H), k2/v2:(B*Sk,H) -> (B*Sq,H).  Per-head W_o row-block
        accumulation avoids the lane concat of head outputs."""
        q3 = q2.reshape(B, Sq, H)
        k3 = k2.reshape(B, Sk, H)
        v3 = v2.reshape(B, Sk, H)
        wo_r0 = PARAM_LAYOUT[wo_name][0]
        acc = jnp.zeros((B * Sq, H), jnp.float32)
        for hd in range(N_HEADS):                         # static unroll (tiny)
            sl = slice(hd * D_HEAD, (hd + 1) * D_HEAD)
            s = jnp.einsum("bqd,bkd->bqk",
                           q3[:, :, sl].astype(MXU_IN_DTYPE),
                           k3[:, :, sl].astype(MXU_IN_DTYPE),
                           preferred_element_type=jnp.float32) * scale
            if causal:
                s = jnp.where(causal_ok, s, NEG_INF)
            pattn = softmax(s)
            ctx = jnp.einsum("bqk,bkd->bqd",
                             pattn.astype(MXU_IN_DTYPE),
                             v3[:, :, sl].astype(MXU_IN_DTYPE),
                             preferred_element_type=jnp.float32)
            wo_h = p_ref[wo_r0 + hd * D_HEAD: wo_r0 + (hd + 1) * D_HEAD, 0:H]
            acc = acc + mm(ctx.reshape(B * Sq, D_HEAD), wo_h)
        return acc + vrow(bo_name)

    def self_attn(x2, pre, Sq, causal):
        qkv = linear(x2, pre + "w_qkv", pre + "b_qkv")            # (B*Sq, 3H)
        return attention(qkv[:, :H], qkv[:, H:2 * H], qkv[:, 2 * H:],
                         pre + "wo", pre + "bo", Sq, Sq, causal)

    def cross_attn(x2, mem2, pre, Sq, Sk):
        q = linear(x2, pre + "w_q", pre + "b_q")                  # (B*Sq, H)
        kv = linear(mem2, pre + "w_kv", pre + "b_kv")             # (B*Sk, 2H)
        return attention(q, kv[:, :H], kv[:, H:],
                         pre + "wo", pre + "bo", Sq, Sk, causal=False)

    def ffn(x2, pre):
        mid = linear(x2, pre + "ffn_w1", pre + "ffn_b1", act="relu")
        return linear(mid, pre + "ffn_w2", pre + "ffn_b2")

    # ---- timestep_embedding, computed in-kernel (iota + exp/cos/sin on EUP) --
    half_t = HIDDEN_T_DIM // 2
    t = t_ref[...]                                                # (B, 1) f32
    jh = jax.lax.broadcasted_iota(jnp.int32, (1, HIDDEN_T_DIM), 1)
    fidx = jnp.where(jh < half_t, jh, jh - half_t).astype(jnp.float32)
    freqs = jnp.exp(fidx * (-math.log(10000.0) / half_t))         # (1, hidden_t_dim)
    args = t * freqs                                              # (B, hidden_t_dim)
    emb_t0 = jnp.where(jh < half_t, jnp.cos(args), jnp.sin(args))  # [cos | sin]

    # ---- time MLP: linear -> SiLU -> linear
    emb_t = linear(linear(emb_t0, "time_w1", "time_b1", act="silu"),
                   "time_w2", "time_b2")                          # (B, H)

    # ---- input_up_proj: linear -> tanh -> linear (activations kept 2-D)
    x2 = x_ref[...].astype(jnp.float32)                           # (B*S, INPUT_DIMS)
    emb_x = linear(linear(x2, "up_w1", "up_b1", act="tanh"),
                   "up_w2", "up_b2")                              # (B*S, H)

    # ---- add time emb over seq + LayerNorm(eps=1e-12); dropout(p=0) = identity
    hsum = emb_x.reshape(B, S, H) + emb_t[:, None, :]
    mu = jnp.mean(hsum, axis=-1, keepdims=True)
    var = jnp.mean(jnp.square(hsum - mu), axis=-1, keepdims=True)
    hn = (hsum - mu) * jax.lax.rsqrt(var + LN_EPS) * vrow("ln_g") + vrow("ln_b")

    # ---- chunk(2, dim=1)
    e = hn[:, :half, :].reshape(B * half, H)
    d = hn[:, half:, :].reshape(B * half, H)

    # ---- encoder stack (simplified T5-style, pre-RMSNorm)
    for i in range(N_ENC_LAYERS):
        pre = f"enc{i}_"
        e = e + self_attn(rmsnorm(e, pre + "ln1_g"), pre, half, causal=False)
        e = e + ffn(rmsnorm(e, pre + "ln2_g"), pre)
    e = rmsnorm(e, "enc_final_g")

    # ---- decoder stack (causal self-attn + cross-attn over encoder output)
    for i in range(N_DEC_LAYERS):
        pre = f"dec{i}_"
        d = d + self_attn(rmsnorm(d, pre + "ln1_g"), pre + "self_", half, causal=True)
        d = d + cross_attn(rmsnorm(d, pre + "ln2_g"), e, pre + "cross_", half, half)
        d = d + ffn(rmsnorm(d, pre + "ln3_g"), pre)
    d = rmsnorm(d, "dec_final_g")

    # ---- output_down_proj applied per half (no seq concat); down_w2/down_b2
    # are used at their zero-padded 128-lane width so both stores are unmasked,
    # lane-dense (rows, 128) writes.
    def down_proj(v2):
        mid = linear(v2, "down_w1", "down_b1", act="tanh")
        return linear(mid, "down_w2", "down_b2", full=True)       # (rows, 128)

    o_ref[0:B * half, :] = down_proj(e).astype(o_ref.dtype)        # encoder rows
    o_ref[B * half:B * S, :] = down_proj(d).astype(o_ref.dtype)    # decoder rows


# --------------------------- wrapper / forward -------------------------------
@jax.jit
def transformer_net_forward(panel, x, timesteps):
    """forward(x:(B,S,input_dims), timesteps:(B,)) -> (B,S,output_dims)."""
    B, S, Din = x.shape
    assert (B, S, Din) == (BATCH, SEQ, INPUT_DIMS)
    half = S // 2

    # layout plumbing only (outside the kernel): 2-D activations + f32 timesteps
    x2 = x.reshape(B * S, Din).astype(jnp.float32)
    t2 = timesteps.astype(jnp.float32).reshape(B, 1)

    out_flat = pl.pallas_call(
        _fused_forward_kernel,
        out_shape=jax.ShapeDtypeStruct((B * S, LANES), jnp.float32),
        in_specs=[pl.BlockSpec(memory_space=pltpu.MemorySpace.VMEM),
                  pl.BlockSpec(memory_space=pltpu.MemorySpace.VMEM),
                  pl.BlockSpec(memory_space=pltpu.MemorySpace.VMEM)],
        out_specs=pl.BlockSpec(memory_space=pltpu.MemorySpace.VMEM),
    )(x2, t2, panel)

    out = out_flat[:, :OUTPUT_DIMS]                       # drop zero-padded lanes
    enc = out[:B * half].reshape(B, half, OUTPUT_DIMS)    # rows 0..B*half-1
    dec = out[B * half:].reshape(B, half, OUTPUT_DIMS)    # rows B*half..B*S-1
    return jnp.concatenate([enc, dec], axis=1).astype(x.dtype)


# --------------------------------- main --------------------------------------
if __name__ == "__main__":
    key = jax.random.PRNGKey(0)
    pkey, xkey, tkey = jax.random.split(key, 3)
    panel = init_param_panel(pkey)
    x = jax.random.normal(xkey, (BATCH, SEQ, INPUT_DIMS), jnp.float32)
    timesteps = jax.random.randint(tkey, (BATCH,), 0, 1000)

    out = transformer_net_forward(panel, x, timesteps)
    jax.block_until_ready(out)

    assert out.shape == (BATCH, SEQ, OUTPUT_DIMS), out.shape
    assert out.dtype == x.dtype, out.dtype
    assert bool(jnp.all(jnp.isfinite(out)))
    print("KERNEL_OK")
</pallas_src>

<mosaic_0001>
module attributes {stable_mosaic.version = 11 : i64} {
  func.func @_fused_forward_kernel(%arg0: memref<16x16xf32, #tpu.memory_space<vmem>>, %arg1: memref<2x1xf32, #tpu.memory_space<vmem>>, %arg2: memref<776x128xf32, #tpu.memory_space<vmem>>, %arg3: memref<16x128xf32, #tpu.memory_space<vmem>>) attributes {dimension_semantics = [], scalar_prefetch = 0 : i64, scratch_operands = 0 : i64, tpu.core_type = #tpu.core_type<tc>} {
    %0 = tpu.iota {dimensions = array<i32: 0>} : vector<4x4xi32>
    %1 = tpu.iota {dimensions = array<i32: 1>} : vector<4x4xi32>
    %2 = arith.cmpi sle, %1, %0 : vector<4x4xi32>
    %3 = vector.shape_cast %2 : vector<4x4xi1> to vector<1x4x4xi1>
    %c0 = arith.constant 0 : index
    %c0_0 = arith.constant 0 : index
    %4 = vector.load %arg1[%c0, %c0_0] : memref<2x1xf32, #tpu.memory_space<vmem>>, vector<2x1xf32>
    %5 = tpu.iota {dimensions = array<i32: 1>} : vector<1x8xi32>
    %c4_i32 = arith.constant 4 : i32
    %6 = vector.broadcast %c4_i32 : i32 to vector<1x8xi32>
    %7 = arith.cmpi slt, %5, %6 : vector<1x8xi32>
    %c4_i32_1 = arith.constant 4 : i32
    %8 = vector.broadcast %c4_i32_1 : i32 to vector<1x8xi32>
    %9 = arith.subi %5, %8 : vector<1x8xi32>
    %10 = arith.select %7, %5, %9 : vector<1x8xi1>, vector<1x8xi32>
    %11 = arith.sitofp %10 : vector<1x8xi32> to vector<1x8xf32>
    %cst = arith.constant -2.30258512 : f32
    %12 = vector.broadcast %cst : f32 to vector<1x8xf32>
    %13 = arith.mulf %11, %12 : vector<1x8xf32>
    %14 = math.exp %13 : vector<1x8xf32>
    %15 = vector.broadcast %4 : vector<2x1xf32> to vector<2x8xf32>
    %16 = vector.broadcast %14 : vector<1x8xf32> to vector<2x8xf32>
    %17 = arith.mulf %15, %16 : vector<2x8xf32>
    %c4_i32_2 = arith.constant 4 : i32
    %18 = vector.broadcast %c4_i32_2 : i32 to vector<1x8xi32>
    %19 = arith.cmpi slt, %5, %18 : vector<1x8xi32>
    %20 = math.cos %17 : vector<2x8xf32>
    %21 = math.sin %17 : vector<2x8xf32>
    %22 = vector.shape_cast %19 : vector<1x8xi1> to vector<1x8xi1>
    %23 = vector.broadcast %22 : vector<1x8xi1> to vector<2x8xi1>
    %24 = arith.select %23, %20, %21 : vector<2x8xi1>, vector<2x8xf32>
    %c0_3 = arith.constant 0 : index
    %c0_4 = arith.constant 0 : index
    %25 = vector.load %arg2[%c0_3, %c0_4] : memref<776x128xf32, #tpu.memory_space<vmem>>, vector<8x32xf32>
    %26 = arith.truncf %24 : vector<2x8xf32> to vector<2x8xbf16>
    %27 = arith.truncf %25 : vector<8x32xf32> to vector<8x32xbf16>
    %cst_5 = arith.constant dense<0.000000e+00> : vector<2x32xf32>
    %28 = tpu.matmul %26, %27, %cst_5 {dimension_numbers = #tpu.dot_dimension_numbers<[1], [0], [0], [1], [0, 0, 1, 1], [], []>} : vector<2x8xbf16>, vector<8x32xbf16>, vector<2x32xf32> -> vector<2x32xf32>
    %c8 = arith.constant 8 : index
    %c0_6 = arith.constant 0 : index
    %29 = vector.load %arg2[%c8, %c0_6] : memref<776x128xf32, #tpu.memory_space<vmem>>, vector<1x32xf32>
    %30 = vector.broadcast %29 : vector<1x32xf32> to vector<2x32xf32>
    %31 = arith.addf %28, %30 : vector<2x32xf32>
    %32 = arith.negf %31 : vector<2x32xf32>
    %33 = math.exp %32 : vector<2x32xf32>
    %cst_7 = arith.constant 1.000000e+00 : f32
    %34 = vector.broadcast %cst_7 : f32 to vector<2x32xf32>
    %35 = arith.addf %34, %33 : vector<2x32xf32>
    %36 = arith.divf %34, %35 : vector<2x32xf32>
    %37 = arith.mulf %31, %36 : vector<2x32xf32>
    %c16 = arith.constant 16 : index
    %c0_8 = arith.constant 0 : index
    %38 = vector.load %arg2[%c16, %c0_8] : memref<776x128xf32, #tpu.memory_space<vmem>>, vector<32x32xf32>
    %39 = arith.truncf %37 : vector<2x32xf32> to vector<2x32xbf16>
    %40 = arith.truncf %38 : vector<32x32xf32> to vector<32x32xbf16>
    %cst_9 = arith.constant dense<0.000000e+00> : vector<2x32xf32>
    %41 = tpu.matmul %39, %40, %cst_9 {dimension_numbers = #tpu.dot_dimension_numbers<[1], [0], [0], [1], [0, 0, 1, 1], [], []>} : vector<2x32xbf16>, vector<32x32xbf16>, vector<2x32xf32> -> vector<2x32xf32>
    %c48 = arith.constant 48 : index
    %c0_10 = arith.constant 0 : index
    %42 = vector.load %arg2[%c48, %c0_10] : memref<776x128xf32, #tpu.memory_space<vmem>>, vector<1x32xf32>
    %43 = vector.broadcast %42 : vector<1x32xf32> to vector<2x32xf32>
    %44 = arith.addf %41, %43 : vector<2x32xf32>
    %c0_11 = arith.constant 0 : index
    %c0_12 = arith.constant 0 : index
    %45 = vector.load %arg0[%c0_11, %c0_12] : memref<16x16xf32, #tpu.memory_space<vmem>>, vector<16x16xf32>
    %c56 = arith.constant 56 : index
    %c0_13 = arith.constant 0 : index
    %46 = vector.load %arg2[%c56, %c0_13] : memref<776x128xf32, #tpu.memory_space<vmem>>, vector<16x32xf32>
    %47 = arith.truncf %45 : vector<16x16xf32> to vector<16x16xbf16>
    %48 = arith.truncf %46 : vector<16x32xf32> to vector<16x32xbf16>
    %cst_14 = arith.constant dense<0.000000e+00> : vector<16x32xf32>
    %49 = tpu.matmul %47, %48, %cst_14 {dimension_numbers = #tpu.dot_dimension_numbers<[1], [0], [0], [1], [0, 0, 1, 1], [], []>} : vector<16x16xbf16>, vector<16x32xbf16>, vector<16x32xf32> -> vector<16x32xf32>
    %c72 = arith.constant 72 : index
    %c0_15 = arith.constant 0 : index
    %50 = vector.load %arg2[%c72, %c0_15] : memref<776x128xf32, #tpu.memory_space<vmem>>, vector<1x32xf32>
    %51 = vector.broadcast %50 : vector<1x32xf32> to vector<16x32xf32>
    %52 = arith.addf %49, %51 : vector<16x32xf32>
    %53 = math.tanh %52 : vector<16x32xf32>
    %c80 = arith.constant 80 : index
    %c0_16 = arith.constant 0 : index
    %54 = vector.load %arg2[%c80, %c0_16] : memref<776x128xf32, #tpu.memory_space<vmem>>, vector<32x32xf32>
    %55 = arith.truncf %53 : vector<16x32xf32> to vector<16x32xbf16>
    %56 = arith.truncf %54 : vector<32x32xf32> to vector<32x32xbf16>
    %cst_17 = arith.constant dense<0.000000e+00> : vector<16x32xf32>
    %57 = tpu.matmul %55, %56, %cst_17 {dimension_numbers = #tpu.dot_dimension_numbers<[1], [0], [0], [1], [0, 0, 1, 1], [], []>} : vector<16x32xbf16>, vector<32x32xbf16>, vector<16x32xf32> -> vector<16x32xf32>
    %c112 = arith.constant 112 : index
    %c0_18 = arith.constant 0 : index
    %58 = vector.load %arg2[%c112, %c0_18] : memref<776x128xf32, #tpu.memory_space<vmem>>, vector<1x32xf32>
    %59 = vector.broadcast %58 : vector<1x32xf32> to vector<16x32xf32>
    %60 = arith.addf %57, %59 : vector<16x32xf32>
    %61 = vector.shape_cast %60 : vector<16x32xf32> to vector<2x8x32xf32>
    %62 = vector.shape_cast %44 : vector<2x32xf32> to vector<2x1x32xf32>
    %63 = vector.broadcast %62 : vector<2x1x32xf32> to vector<2x8x32xf32>
    %64 = arith.addf %61, %63 : vector<2x8x32xf32>
    %cst_19 = arith.constant dense<0.000000e+00> : vector<2x8xf32>
    %65 = vector.multi_reduction <add>, %64, %cst_19 [2] : vector<2x8x32xf32> to vector<2x8xf32>
    %66 = vector.shape_cast %65 : vector<2x8xf32> to vector<2x8x1xf32>
    %cst_20 = arith.constant 3.200000e+01 : f32
    %67 = vector.broadcast %cst_20 : f32 to vector<2x8x1xf32>
    %68 = arith.divf %66, %67 : vector<2x8x1xf32>
    %69 = vector.broadcast %68 : vector<2x8x1xf32> to vector<2x8x32xf32>
    %70 = arith.subf %64, %69 : vector<2x8x32xf32>
    %71 = arith.mulf %70, %70 : vector<2x8x32xf32>
    %cst_21 = arith.constant dense<0.000000e+00> : vector<2x8xf32>
    %72 = vector.multi_reduction <add>, %71, %cst_21 [2] : vector<2x8x32xf32> to vector<2x8xf32>
    %73 = vector.shape_cast %72 : vector<2x8xf32> to vector<2x8x1xf32>
    %cst_22 = arith.constant 3.200000e+01 : f32
    %74 = vector.broadcast %cst_22 : f32 to vector<2x8x1xf32>
    %75 = arith.divf %73, %74 : vector<2x8x1xf32>
    %76 = vector.broadcast %68 : vector<2x8x1xf32> to vector<2x8x32xf32>
    %77 = arith.subf %64, %76 : vector<2x8x32xf32>
    %cst_23 = arith.constant 9.99999996E-13 : f32
    %78 = vector.broadcast %cst_23 : f32 to vector<2x8x1xf32>
    %79 = arith.addf %75, %78 : vector<2x8x1xf32>
    %80 = math.rsqrt %79 : vector<2x8x1xf32>
    %81 = vector.broadcast %80 : vector<2x8x1xf32> to vector<2x8x32xf32>
    %82 = arith.mulf %77, %81 : vector<2x8x32xf32>
    %c120 = arith.constant 120 : index
    %c0_24 = arith.constant 0 : index
    %83 = vector.load %arg2[%c120, %c0_24] : memref<776x128xf32, #tpu.memory_space<vmem>>, vector<1x32xf32>
    %84 = vector.shape_cast %83 : vector<1x32xf32> to vector<1x1x32xf32>
    %85 = vector.broadcast %84 : vector<1x1x32xf32> to vector<2x8x32xf32>
    %86 = arith.mulf %82, %85 : vector<2x8x32xf32>
    %c128 = arith.constant 128 : index
    %c0_25 = arith.constant 0 : index
    %87 = vector.load %arg2[%c128, %c0_25] : memref<776x128xf32, #tpu.memory_space<vmem>>, vector<1x32xf32>
    %88 = vector.shape_cast %87 : vector<1x32xf32> to vector<1x1x32xf32>
    %89 = vector.broadcast %88 : vector<1x1x32xf32> to vector<2x8x32xf32>
    %90 = arith.addf %86, %89 : vector<2x8x32xf32>
    %91 = vector.extract_strided_slice %90 {offsets = [0, 0, 0], sizes = [2, 4, 32], strides = [1, 1, 1]} : vector<2x8x32xf32> to vector<2x4x32xf32>
    %92 = vector.shape_cast %91 : vector<2x4x32xf32> to vector<8x32xf32>
    %93 = vector.extract_strided_slice %90 {offsets = [0, 4, 0], sizes = [2, 4, 32], strides = [1, 1, 1]} : vector<2x8x32xf32> to vector<2x4x32xf32>
    %94 = vector.shape_cast %93 : vector<2x4x32xf32> to vector<8x32xf32>
    %95 = arith.mulf %92, %92 : vector<8x32xf32>
    %cst_26 = arith.constant dense<0.000000e+00> : vector<8xf32>
    %96 = vector.multi_reduction <add>, %95, %cst_26 [1] : vector<8x32xf32> to vector<8xf32>
    %97 = vector.shape_cast %96 : vector<8xf32> to vector<8x1xf32>
    %cst_27 = arith.constant 3.200000e+01 : f32
    %98 = vector.broadcast %cst_27 : f32 to vector<8x1xf32>
    %99 = arith.divf %97, %98 : vector<8x1xf32>
    %cst_28 = arith.constant 9.99999997E-7 : f32
    %100 = vector.broadcast %cst_28 : f32 to vector<8x1xf32>
    %101 = arith.addf %99, %100 : vector<8x1xf32>
    %102 = math.rsqrt %101 : vector<8x1xf32>
    %103 = vector.broadcast %102 : vector<8x1xf32> to vector<8x32xf32>
    %104 = arith.mulf %92, %103 : vector<8x32xf32>
    %c136 = arith.constant 136 : index
    %c0_29 = arith.constant 0 : index
    %105 = vector.load %arg2[%c136, %c0_29] : memref<776x128xf32, #tpu.memory_space<vmem>>, vector<1x32xf32>
    %106 = vector.broadcast %105 : vector<1x32xf32> to vector<8x32xf32>
    %107 = arith.mulf %104, %106 : vector<8x32xf32>
    %c144 = arith.constant 144 : index
    %c0_30 = arith.constant 0 : index
    %108 = vector.load %arg2[%c144, %c0_30] : memref<776x128xf32, #tpu.memory_space<vmem>>, vector<32x96xf32>
    %109 = arith.truncf %107 : vector<8x32xf32> to vector<8x32xbf16>
    %110 = arith.truncf %108 : vector<32x96xf32> to vector<32x96xbf16>
    %cst_31 = arith.constant dense<0.000000e+00> : vector<8x96xf32>
    %111 = tpu.matmul %109, %110, %cst_31 {dimension_numbers = #tpu.dot_dimension_numbers<[1], [0], [0], [1], [0, 0, 1, 1], [], []>} : vector<8x32xbf16>, vector<32x96xbf16>, vector<8x96xf32> -> vector<8x96xf32>
    %c176 = arith.constant 176 : index
    %c0_32 = arith.constant 0 : index
    %112 = vector.load %arg2[%c176, %c0_32] : memref<776x128xf32, #tpu.memory_space<vmem>>, vector<1x96xf32>
    %113 = vector.broadcast %112 : vector<1x96xf32> to vector<8x96xf32>
    %114 = arith.addf %111, %113 : vector<8x96xf32>
    %115 = vector.extract_strided_slice %114 {offsets = [0, 0], sizes = [8, 32], strides = [1, 1]} : vector<8x96xf32> to vector<8x32xf32>
    %116 = vector.extract_strided_slice %114 {offsets = [0, 32], sizes = [8, 32], strides = [1, 1]} : vector<8x96xf32> to vector<8x32xf32>
    %117 = vector.extract_strided_slice %114 {offsets = [0, 64], sizes = [8, 32], strides = [1, 1]} : vector<8x96xf32> to vector<8x32xf32>
    %118 = vector.shape_cast %115 : vector<8x32xf32> to vector<2x4x32xf32>
    %119 = vector.shape_cast %116 : vector<8x32xf32> to vector<2x4x32xf32>
    %120 = vector.shape_cast %117 : vector<8x32xf32> to vector<2x4x32xf32>
    %cst_33 = arith.constant 0.000000e+00 : f32
    %121 = vector.broadcast %cst_33 : f32 to vector<8x32xf32>
    %122 = vector.extract_strided_slice %118 {offsets = [0, 0, 0], sizes = [2, 4, 8], strides = [1, 1, 1]} : vector<2x4x32xf32> to vector<2x4x8xf32>
    %123 = arith.truncf %122 : vector<2x4x8xf32> to vector<2x4x8xbf16>
    %124 = vector.extract_strided_slice %119 {offsets = [0, 0, 0], sizes = [2, 4, 8], strides = [1, 1, 1]} : vector<2x4x32xf32> to vector<2x4x8xf32>
    %125 = arith.truncf %124 : vector<2x4x8xf32> to vector<2x4x8xbf16>
    "tpu.trace_start"() <{level = 10 : i32, message = "bqd,bkd->bqk"}> : () -> ()
    %cst_34 = arith.constant dense<0.000000e+00> : vector<2x4x4xf32>
    %126 = tpu.matmul %123, %125, %cst_34 {dimension_numbers = #tpu.dot_dimension_numbers<[2], [2], [1], [1], [0, 0, 0, 1, 1, 1], [0], [0]>} : vector<2x4x8xbf16>, vector<2x4x8xbf16>, vector<2x4x4xf32> -> vector<2x4x4xf32>
    "tpu.trace_stop"() : () -> ()
    %cst_35 = arith.constant 0.353553385 : f32
    %127 = vector.broadcast %cst_35 : f32 to vector<2x4x4xf32>
    %128 = arith.mulf %126, %127 : vector<2x4x4xf32>
    %cst_36 = arith.constant dense<0xFF800000> : vector<2x4xf32>
    %129 = vector.multi_reduction <maximumf>, %128, %cst_36 [2] : vector<2x4x4xf32> to vector<2x4xf32>
    %130 = vector.shape_cast %129 : vector<2x4xf32> to vector<2x4x1xf32>
    %131 = vector.broadcast %130 : vector<2x4x1xf32> to vector<2x4x4xf32>
    %132 = arith.subf %128, %131 : vector<2x4x4xf32>
    %133 = math.exp %132 : vector<2x4x4xf32>
    %cst_37 = arith.constant dense<0.000000e+00> : vector<2x4xf32>
    %134 = vector.multi_reduction <add>, %133, %cst_37 [2] : vector<2x4x4xf32> to vector<2x4xf32>
    %135 = vector.shape_cast %134 : vector<2x4xf32> to vector<2x4x1xf32>
    %136 = tpu.reciprocal %135 {approx = true} : vector<2x4x1xf32> -> vector<2x4x1xf32>
    %137 = vector.broadcast %136 : vector<2x4x1xf32> to vector<2x4x4xf32>
    %138 = arith.mulf %133, %137 : vector<2x4x4xf32>
    %139 = arith.truncf %138 : vector<2x4x4xf32> to vector<2x4x4xbf16>
    %140 = vector.extract_strided_slice %120 {offsets = [0, 0, 0], sizes = [2, 4, 8], strides = [1, 1, 1]} : vector<2x4x32xf32> to vector<2x4x8xf32>
    %141 = arith.truncf %140 : vector<2x4x8xf32> to vector<2x4x8xbf16>
    "tpu.trace_start"() <{level = 10 : i32, message = "bqk,bkd->bqd"}> : () -> ()
    %cst_38 = arith.constant dense<0.000000e+00> : vector<2x4x8xf32>
    %142 = tpu.matmul %139, %141, %cst_38 {dimension_numbers = #tpu.dot_dimension_numbers<[2], [1], [1], [2], [0, 0, 0, 1, 1, 2], [0], [0]>} : vector<2x4x4xbf16>, vector<2x4x8xbf16>, vector<2x4x8xf32> -> vector<2x4x8xf32>
    "tpu.trace_stop"() : () -> ()
    %c184 = arith.constant 184 : index
    %c0_39 = arith.constant 0 : index
    %143 = vector.load %arg2[%c184, %c0_39] : memref<776x128xf32, #tpu.memory_space<vmem>>, vector<8x32xf32>
    %144 = vector.shape_cast %142 : vector<2x4x8xf32> to vector<8x8xf32>
    %145 = arith.truncf %144 : vector<8x8xf32> to vector<8x8xbf16>
    %146 = arith.truncf %143 : vector<8x32xf32> to vector<8x32xbf16>
    %cst_40 = arith.constant dense<0.000000e+00> : vector<8x32xf32>
    %147 = tpu.matmul %145, %146, %cst_40 {dimension_numbers = #tpu.dot_dimension_numbers<[1], [0], [0], [1], [0, 0, 1, 1], [], []>} : vector<8x8xbf16>, vector<8x32xbf16>, vector<8x32xf32> -> vector<8x32xf32>
    %148 = arith.addf %121, %147 : vector<8x32xf32>
    %149 = vector.extract_strided_slice %118 {offsets = [0, 0, 8], sizes = [2, 4, 8], strides = [1, 1, 1]} : vector<2x4x32xf32> to vector<2x4x8xf32>
    %150 = arith.truncf %149 : vector<2x4x8xf32> to vector<2x4x8xbf16>
    %151 = vector.extract_strided_slice %119 {offsets = [0, 0, 8], sizes = [2, 4, 8], strides = [1, 1, 1]} : vector<2x4x32xf32> to vector<2x4x8xf32>
    %152 = arith.truncf %151 : vector<2x4x8xf32> to vector<2x4x8xbf16>
    "tpu.trace_start"() <{level = 10 : i32, message = "bqd,bkd->bqk"}> : () -> ()
    %cst_41 = arith.constant dense<0.000000e+00> : vector<2x4x4xf32>
    %153 = tpu.matmul %150, %152, %cst_41 {dimension_numbers = #tpu.dot_dimension_numbers<[2], [2], [1], [1], [0, 0, 0, 1, 1, 1], [0], [0]>} : vector<2x4x8xbf16>, vector<2x4x8xbf16>, vector<2x4x4xf32> -> vector<2x4x4xf32>
    "tpu.trace_stop"() : () -> ()
    %cst_42 = arith.constant 0.353553385 : f32
    %154 = vector.broadcast %cst_42 : f32 to vector<2x4x4xf32>
    %155 = arith.mulf %153, %154 : vector<2x4x4xf32>
    %cst_43 = arith.constant dense<0xFF800000> : vector<2x4xf32>
    %156 = vector.multi_reduction <maximumf>, %155, %cst_43 [2] : vector<2x4x4xf32> to vector<2x4xf32>
    %157 = vector.shape_cast %156 : vector<2x4xf32> to vector<2x4x1xf32>
    %158 = vector.broadcast %157 : vector<2x4x1xf32> to vector<2x4x4xf32>
    %159 = arith.subf %155, %158 : vector<2x4x4xf32>
    %160 = math.exp %159 : vector<2x4x4xf32>
    %cst_44 = arith.constant dense<0.000000e+00> : vector<2x4xf32>
    %161 = vector.multi_reduction <add>, %160, %cst_44 [2] : vector<2x4x4xf32> to vector<2x4xf32>
    %162 = vector.shape_cast %161 : vector<2x4xf32> to vector<2x4x1xf32>
    %163 = tpu.reciprocal %162 {approx = true} : vector<2x4x1xf32> -> vector<2x4x1xf32>
    %164 = vector.broadcast %163 : vector<2x4x1xf32> to vector<2x4x4xf32>
    %165 = arith.mulf %160, %164 : vector<2x4x4xf32>
    %166 = arith.truncf %165 : vector<2x4x4xf32> to vector<2x4x4xbf16>
    %167 = vector.extract_strided_slice %120 {offsets = [0, 0, 8], sizes = [2, 4, 8], strides = [1, 1, 1]} : vector<2x4x32xf32> to vector<2x4x8xf32>
    %168 = arith.truncf %167 : vector<2x4x8xf32> to vector<2x4x8xbf16>
    "tpu.trace_start"() <{level = 10 : i32, message = "bqk,bkd->bqd"}> : () -> ()
    %cst_45 = arith.constant dense<0.000000e+00> : vector<2x4x8xf32>
    %169 = tpu.matmul %166, %168, %cst_45 {dimension_numbers = #tpu.dot_dimension_numbers<[2], [1], [1], [2], [0, 0, 0, 1, 1, 2], [0], [0]>} : vector<2x4x4xbf16>, vector<2x4x8xbf16>, vector<2x4x8xf32> -> vector<2x4x8xf32>
    "tpu.trace_stop"() : () -> ()
    %c192 = arith.constant 192 : index
    %c0_46 = arith.constant 0 : index
    %170 = vector.load %arg2[%c192, %c0_46] : memref<776x128xf32, #tpu.memory_space<vmem>>, vector<8x32xf32>
    %171 = vector.shape_cast %169 : vector<2x4x8xf32> to vector<8x8xf32>
    %172 = arith.truncf %171 : vector<8x8xf32> to vector<8x8xbf16>
    %173 = arith.truncf %170 : vector<8x32xf32> to vector<8x32xbf16>
    %cst_47 = arith.constant dense<0.000000e+00> : vector<8x32xf32>
    %174 = tpu.matmul %172, %173, %cst_47 {dimension_numbers = #tpu.dot_dimension_numbers<[1], [0], [0], [1], [0, 0, 1, 1], [], []>} : vector<8x8xbf16>, vector<8x32xbf16>, vector<8x32xf32> -> vector<8x32xf32>
    %175 = arith.addf %148, %174 : vector<8x32xf32>
    %176 = vector.extract_strided_slice %118 {offsets = [0, 0, 16], sizes = [2, 4, 8], strides = [1, 1, 1]} : vector<2x4x32xf32> to vector<2x4x8xf32>
    %177 = arith.truncf %176 : vector<2x4x8xf32> to vector<2x4x8xbf16>
    %178 = vector.extract_strided_slice %119 {offsets = [0, 0, 16], sizes = [2, 4, 8], strides = [1, 1, 1]} : vector<2x4x32xf32> to vector<2x4x8xf32>
    %179 = arith.truncf %178 : vector<2x4x8xf32> to vector<2x4x8xbf16>
    "tpu.trace_start"() <{level = 10 : i32, message = "bqd,bkd->bqk"}> : () -> ()
    %cst_48 = arith.constant dense<0.000000e+00> : vector<2x4x4xf32>
    %180 = tpu.matmul %177, %179, %cst_48 {dimension_numbers = #tpu.dot_dimension_numbers<[2], [2], [1], [1], [0, 0, 0, 1, 1, 1], [0], [0]>} : vector<2x4x8xbf16>, vector<2x4x8xbf16>, vector<2x4x4xf32> -> vector<2x4x4xf32>
    "tpu.trace_stop"() : () -> ()
    %cst_49 = arith.constant 0.353553385 : f32
    %181 = vector.broadcast %cst_49 : f32 to vector<2x4x4xf32>
    %182 = arith.mulf %180, %181 : vector<2x4x4xf32>
    %cst_50 = arith.constant dense<0xFF800000> : vector<2x4xf32>
    %183 = vector.multi_reduction <maximumf>, %182, %cst_50 [2] : vector<2x4x4xf32> to vector<2x4xf32>
    %184 = vector.shape_cast %183 : vector<2x4xf32> to vector<2x4x1xf32>
    %185 = vector.broadcast %184 : vector<2x4x1xf32> to vector<2x4x4xf32>
    %186 = arith.subf %182, %185 : vector<2x4x4xf32>
    %187 = math.exp %186 : vector<2x4x4xf32>
    %cst_51 = arith.constant dense<0.000000e+00> : vector<2x4xf32>
    %188 = vector.multi_reduction <add>, %187, %cst_51 [2] : vector<2x4x4xf32> to vector<2x4xf32>
    %189 = vector.shape_cast %188 : vector<2x4xf32> to vector<2x4x1xf32>
    %190 = tpu.reciprocal %189 {approx = true} : vector<2x4x1xf32> -> vector<2x4x1xf32>
    %191 = vector.broadcast %190 : vector<2x4x1xf32> to vector<2x4x4xf32>
    %192 = arith.mulf %187, %191 : vector<2x4x4xf32>
    %193 = arith.truncf %192 : vector<2x4x4xf32> to vector<2x4x4xbf16>
    %194 = vector.extract_strided_slice %120 {offsets = [0, 0, 16], sizes = [2, 4, 8], strides = [1, 1, 1]} : vector<2x4x32xf32> to vector<2x4x8xf32>
    %195 = arith.truncf %194 : vector<2x4x8xf32> to vector<2x4x8xbf16>
    "tpu.trace_start"() <{level = 10 : i32, message = "bqk,bkd->bqd"}> : () -> ()
    %cst_52 = arith.constant dense<0.000000e+00> : vector<2x4x8xf32>
    %196 = tpu.matmul %193, %195, %cst_52 {dimension_numbers = #tpu.dot_dimension_numbers<[2], [1], [1], [2], [0, 0, 0, 1, 1, 2], [0], [0]>} : vector<2x4x4xbf16>, vector<2x4x8xbf16>, vector<2x4x8xf32> -> vector<2x4x8xf32>
    "tpu.trace_stop"() : () -> ()
    %c200 = arith.constant 200 : index
    %c0_53 = arith.constant 0 : index
    %197 = vector.load %arg2[%c200, %c0_53] : memref<776x128xf32, #tpu.memory_space<vmem>>, vector<8x32xf32>
    %198 = vector.shape_cast %196 : vector<2x4x8xf32> to vector<8x8xf32>
    %199 = arith.truncf %198 : vector<8x8xf32> to vector<8x8xbf16>
    %200 = arith.truncf %197 : vector<8x32xf32> to vector<8x32xbf16>
    %cst_54 = arith.constant dense<0.000000e+00> : vector<8x32xf32>
    %201 = tpu.matmul %199, %200, %cst_54 {dimension_numbers = #tpu.dot_dimension_numbers<[1], [0], [0], [1], [0, 0, 1, 1], [], []>} : vector<8x8xbf16>, vector<8x32xbf16>, vector<8x32xf32> -> vector<8x32xf32>
    %202 = arith.addf %175, %201 : vector<8x32xf32>
    %203 = vector.extract_strided_slice %118 {offsets = [0, 0, 24], sizes = [2, 4, 8], strides = [1, 1, 1]} : vector<2x4x32xf32> to vector<2x4x8xf32>
    %204 = arith.truncf %203 : vector<2x4x8xf32> to vector<2x4x8xbf16>
    %205 = vector.extract_strided_slice %119 {offsets = [0, 0, 24], sizes = [2, 4, 8], strides = [1, 1, 1]} : vector<2x4x32xf32> to vector<2x4x8xf32>
    %206 = arith.truncf %205 : vector<2x4x8xf32> to vector<2x4x8xbf16>
    "tpu.trace_start"() <{level = 10 : i32, message = "bqd,bkd->bqk"}> : () -> ()
    %cst_55 = arith.constant dense<0.000000e+00> : vector<2x4x4xf32>
    %207 = tpu.matmul %204, %206, %cst_55 {dimension_numbers = #tpu.dot_dimension_numbers<[2], [2], [1], [1], [0, 0, 0, 1, 1, 1], [0], [0]>} : vector<2x4x8xbf16>, vector<2x4x8xbf16>, vector<2x4x4xf32> -> vector<2x4x4xf32>
    "tpu.trace_stop"() : () -> ()
    %cst_56 = arith.constant 0.353553385 : f32
    %208 = vector.broadcast %cst_56 : f32 to vector<2x4x4xf32>
    %209 = arith.mulf %207, %208 : vector<2x4x4xf32>
    %cst_57 = arith.constant dense<0xFF800000> : vector<2x4xf32>
    %210 = vector.multi_reduction <maximumf>, %209, %cst_57 [2] : vector<2x4x4xf32> to vector<2x4xf32>
    %211 = vector.shape_cast %210 : vector<2x4xf32> to vector<2x4x1xf32>
    %212 = vector.broadcast %211 : vector<2x4x1xf32> to vector<2x4x4xf32>
    %213 = arith.subf %209, %212 : vector<2x4x4xf32>
    %214 = math.exp %213 : vector<2x4x4xf32>
    %cst_58 = arith.constant dense<0.000000e+00> : vector<2x4xf32>
    %215 = vector.multi_reduction <add>, %214, %cst_58 [2] : vector<2x4x4xf32> to vector<2x4xf32>
    %216 = vector.shape_cast %215 : vector<2x4xf32> to vector<2x4x1xf32>
    %217 = tpu.reciprocal %216 {approx = true} : vector<2x4x1xf32> -> vector<2x4x1xf32>
    %218 = vector.broadcast %217 : vector<2x4x1xf32> to vector<2x4x4xf32>
    %219 = arith.mulf %214, %218 : vector<2x4x4xf32>
    %220 = arith.truncf %219 : vector<2x4x4xf32> to vector<2x4x4xbf16>
    %221 = vector.extract_strided_slice %120 {offsets = [0, 0, 24], sizes = [2, 4, 8], strides = [1, 1, 1]} : vector<2x4x32xf32> to vector<2x4x8xf32>
    %222 = arith.truncf %221 : vector<2x4x8xf32> to vector<2x4x8xbf16>
    "tpu.trace_start"() <{level = 10 : i32, message = "bqk,bkd->bqd"}> : () -> ()
    %cst_59 = arith.constant dense<0.000000e+00> : vector<2x4x8xf32>
    %223 = tpu.matmul %220, %222, %cst_59 {dimension_numbers = #tpu.dot_dimension_numbers<[2], [1], [1], [2], [0, 0, 0, 1, 1, 2], [0], [0]>} : vector<2x4x4xbf16>, vector<2x4x8xbf16>, vector<2x4x8xf32> -> vector<2x4x8xf32>
    "tpu.trace_stop"() : () -> ()
    %c208 = arith.constant 208 : index
    %c0_60 = arith.constant 0 : index
    %224 = vector.load %arg2[%c208, %c0_60] : memref<776x128xf32, #tpu.memory_space<vmem>>, vector<8x32xf32>
    %225 = vector.shape_cast %223 : vector<2x4x8xf32> to vector<8x8xf32>
    %226 = arith.truncf %225 : vector<8x8xf32> to vector<8x8xbf16>
    %227 = arith.truncf %224 : vector<8x32xf32> to vector<8x32xbf16>
    %cst_61 = arith.constant dense<0.000000e+00> : vector<8x32xf32>
    %228 = tpu.matmul %226, %227, %cst_61 {dimension_numbers = #tpu.dot_dimension_numbers<[1], [0], [0], [1], [0, 0, 1, 1], [], []>} : vector<8x8xbf16>, vector<8x32xbf16>, vector<8x32xf32> -> vector<8x32xf32>
    %229 = arith.addf %202, %228 : vector<8x32xf32>
    %c216 = arith.constant 216 : index
    %c0_62 = arith.constant 0 : index
    %230 = vector.load %arg2[%c216, %c0_62] : memref<776x128xf32, #tpu.memory_space<vmem>>, vector<1x32xf32>
    %231 = vector.broadcast %230 : vector<1x32xf32> to vector<8x32xf32>
    %232 = arith.addf %229, %231 : vector<8x32xf32>
    %233 = arith.addf %92, %232 : vector<8x32xf32>
    %234 = arith.mulf %233, %233 : vector<8x32xf32>
    %cst_63 = arith.constant dense<0.000000e+00> : vector<8xf32>
    %235 = vector.multi_reduction <add>, %234, %cst_63 [1] : vector<8x32xf32> to vector<8xf32>
    %236 = vector.shape_cast %235 : vector<8xf32> to vector<8x1xf32>
    %cst_64 = arith.constant 3.200000e+01 : f32
    %237 = vector.broadcast %cst_64 : f32 to vector<8x1xf32>
    %238 = arith.divf %236, %237 : vector<8x1xf32>
    %cst_65 = arith.constant 9.99999997E-7 : f32
    %239 = vector.broadcast %cst_65 : f32 to vector<8x1xf32>
    %240 = arith.addf %238, %239 : vector<8x1xf32>
    %241 = math.rsqrt %240 : vector<8x1xf32>
    %242 = vector.broadcast %241 : vector<8x1xf32> to vector<8x32xf32>
    %243 = arith.mulf %233, %242 : vector<8x32xf32>
    %c224 = arith.constant 224 : index
    %c0_66 = arith.constant 0 : index
    %244 = vector.load %arg2[%c224, %c0_66] : memref<776x128xf32, #tpu.memory_space<vmem>>, vector<1x32xf32>
    %245 = vector.broadcast %244 : vector<1x32xf32> to vector<8x32xf32>
    %246 = arith.mulf %243, %245 : vector<8x32xf32>
    %c232 = arith.constant 232 : index
    %c0_67 = arith.constant 0 : index
    %247 = vector.load %arg2[%c232, %c0_67] : memref<776x128xf32, #tpu.memory_space<vmem>>, vector<32x64xf32>
    %248 = arith.truncf %246 : vector<8x32xf32> to vector<8x32xbf16>
    %249 = arith.truncf %247 : vector<32x64xf32> to vector<32x64xbf16>
    %cst_68 = arith.constant dense<0.000000e+00> : vector<8x64xf32>
    %250 = tpu.matmul %248, %249, %cst_68 {dimension_numbers = #tpu.dot_dimension_numbers<[1], [0], [0], [1], [0, 0, 1, 1], [], []>} : vector<8x32xbf16>, vector<32x64xbf16>, vector<8x64xf32> -> vector<8x64xf32>
    %c264 = arith.constant 264 : index
    %c0_69 = arith.constant 0 : index
    %251 = vector.load %arg2[%c264, %c0_69] : memref<776x128xf32, #tpu.memory_space<vmem>>, vector<1x64xf32>
    %252 = vector.broadcast %251 : vector<1x64xf32> to vector<8x64xf32>
    %253 = arith.addf %250, %252 : vector<8x64xf32>
    %cst_70 = arith.constant 0.000000e+00 : f32
    %254 = vector.broadcast %cst_70 : f32 to vector<8x64xf32>
    %255 = arith.maximumf %253, %254 : vector<8x64xf32>
    %c272 = arith.constant 272 : index
    %c0_71 = arith.constant 0 : index
    %256 = vector.load %arg2[%c272, %c0_71] : memref<776x128xf32, #tpu.memory_space<vmem>>, vector<64x32xf32>
    %257 = arith.truncf %255 : vector<8x64xf32> to vector<8x64xbf16>
    %258 = arith.truncf %256 : vector<64x32xf32> to vector<64x32xbf16>
    %cst_72 = arith.constant dense<0.000000e+00> : vector<8x32xf32>
    %259 = tpu.matmul %257, %258, %cst_72 {dimension_numbers = #tpu.dot_dimension_numbers<[1], [0], [0], [1], [0, 0, 1, 1], [], []>} : vector<8x64xbf16>, vector<64x32xbf16>, vector<8x32xf32> -> vector<8x32xf32>
    %c336 = arith.constant 336 : index
    %c0_73 = arith.constant 0 : index
    %260 = vector.load %arg2[%c336, %c0_73] : memref<776x128xf32, #tpu.memory_space<vmem>>, vector<1x32xf32>
    %261 = vector.broadcast %260 : vector<1x32xf32> to vector<8x32xf32>
    %262 = arith.addf %259, %261 : vector<8x32xf32>
    %263 = arith.addf %233, %262 : vector<8x32xf32>
    %264 = arith.mulf %263, %263 : vector<8x32xf32>
    %cst_74 = arith.constant dense<0.000000e+00> : vector<8xf32>
    %265 = vector.multi_reduction <add>, %264, %cst_74 [1] : vector<8x32xf32> to vector<8xf32>
    %266 = vector.shape_cast %265 : vector<8xf32> to vector<8x1xf32>
    %cst_75 = arith.constant 3.200000e+01 : f32
    %267 = vector.broadcast %cst_75 : f32 to vector<8x1xf32>
    %268 = arith.divf %266, %267 : vector<8x1xf32>
    %cst_76 = arith.constant 9.99999997E-7 : f32
    %269 = vector.broadcast %cst_76 : f32 to vector<8x1xf32>
    %270 = arith.addf %268, %269 : vector<8x1xf32>
    %271 = math.rsqrt %270 : vector<8x1xf32>
    %272 = vector.broadcast %271 : vector<8x1xf32> to vector<8x32xf32>
    %273 = arith.mulf %263, %272 : vector<8x32xf32>
    %c344 = arith.constant 344 : index
    %c0_77 = arith.constant 0 : index
    %274 = vector.load %arg2[%c344, %c0_77] : memref<776x128xf32, #tpu.memory_space<vmem>>, vector<1x32xf32>
    %275 = vector.broadcast %274 : vector<1x32xf32> to vector<8x32xf32>
    %276 = arith.mulf %273, %275 : vector<8x32xf32>
    %277 = arith.mulf %94, %94 : vector<8x32xf32>
    %cst_78 = arith.constant dense<0.000000e+00> : vector<8xf32>
    %278 = vector.multi_reduction <add>, %277, %cst_78 [1] : vector<8x32xf32> to vector<8xf32>
    %279 = vector.shape_cast %278 : vector<8xf32> to vector<8x1xf32>
    %cst_79 = arith.constant 3.200000e+01 : f32
    %280 = vector.broadcast %cst_79 : f32 to vector<8x1xf32>
    %281 = arith.divf %279, %280 : vector<8x1xf32>
    %cst_80 = arith.constant 9.99999997E-7 : f32
    %282 = vector.broadcast %cst_80 : f32 to vector<8x1xf32>
    %283 = arith.addf %281, %282 : vector<8x1xf32>
    %284 = math.rsqrt %283 : vector<8x1xf32>
    %285 = vector.broadcast %284 : vector<8x1xf32> to vector<8x32xf32>
    %286 = arith.mulf %94, %285 : vector<8x32xf32>
    %c352 = arith.constant 352 : index
    %c0_81 = arith.constant 0 : index
    %287 = vector.load %arg2[%c352, %c0_81] : memref<776x128xf32, #tpu.memory_space<vmem>>, vector<1x32xf32>
    %288 = vector.broadcast %287 : vector<1x32xf32> to vector<8x32xf32>
    %289 = arith.mulf %286, %288 : vector<8x32xf32>
    %c360 = arith.constant 360 : index
    %c0_82 = arith.constant 0 : index
    %290 = vector.load %arg2[%c360, %c0_82] : memref<776x128xf32, #tpu.memory_space<vmem>>, vector<32x96xf32>
    %291 = arith.truncf %289 : vector<8x32xf32> to vector<8x32xbf16>
    %292 = arith.truncf %290 : vector<32x96xf32> to vector<32x96xbf16>
    %cst_83 = arith.constant dense<0.000000e+00> : vector<8x96xf32>
    %293 = tpu.matmul %291, %292, %cst_83 {dimension_numbers = #tpu.dot_dimension_numbers<[1], [0], [0], [1], [0, 0, 1, 1], [], []>} : vector<8x32xbf16>, vector<32x96xbf16>, vector<8x96xf32> -> vector<8x96xf32>
    %c392 = arith.constant 392 : index
    %c0_84 = arith.constant 0 : index
    %294 = vector.load %arg2[%c392, %c0_84] : memref<776x128xf32, #tpu.memory_space<vmem>>, vector<1x96xf32>
    %295 = vector.broadcast %294 : vector<1x96xf32> to vector<8x96xf32>
    %296 = arith.addf %293, %295 : vector<8x96xf32>
    %297 = vector.extract_strided_slice %296 {offsets = [0, 0], sizes = [8, 32], strides = [1, 1]} : vector<8x96xf32> to vector<8x32xf32>
    %298 = vector.extract_strided_slice %296 {offsets = [0, 32], sizes = [8, 32], strides = [1, 1]} : vector<8x96xf32> to vector<8x32xf32>
    %299 = vector.extract_strided_slice %296 {offsets = [0, 64], sizes = [8, 32], strides = [1, 1]} : vector<8x96xf32> to vector<8x32xf32>
    %300 = vector.shape_cast %297 : vector<8x32xf32> to vector<2x4x32xf32>
    %301 = vector.shape_cast %298 : vector<8x32xf32> to vector<2x4x32xf32>
    %302 = vector.shape_cast %299 : vector<8x32xf32> to vector<2x4x32xf32>
    %cst_85 = arith.constant 0.000000e+00 : f32
    %303 = vector.broadcast %cst_85 : f32 to vector<8x32xf32>
    %304 = vector.extract_strided_slice %300 {offsets = [0, 0, 0], sizes = [2, 4, 8], strides = [1, 1, 1]} : vector<2x4x32xf32> to vector<2x4x8xf32>
    %305 = arith.truncf %304 : vector<2x4x8xf32> to vector<2x4x8xbf16>
    %306 = vector.extract_strided_slice %301 {offsets = [0, 0, 0], sizes = [2, 4, 8], strides = [1, 1, 1]} : vector<2x4x32xf32> to vector<2x4x8xf32>
    %307 = arith.truncf %306 : vector<2x4x8xf32> to vector<2x4x8xbf16>
    "tpu.trace_start"() <{level = 10 : i32, message = "bqd,bkd->bqk"}> : () -> ()
    %cst_86 = arith.constant dense<0.000000e+00> : vector<2x4x4xf32>
    %308 = tpu.matmul %305, %307, %cst_86 {dimension_numbers = #tpu.dot_dimension_numbers<[2], [2], [1], [1], [0, 0, 0, 1, 1, 1], [0], [0]>} : vector<2x4x8xbf16>, vector<2x4x8xbf16>, vector<2x4x4xf32> -> vector<2x4x4xf32>
    "tpu.trace_stop"() : () -> ()
    %cst_87 = arith.constant 0.353553385 : f32
    %309 = vector.broadcast %cst_87 : f32 to vector<2x4x4xf32>
    %310 = arith.mulf %308, %309 : vector<2x4x4xf32>
    %cst_88 = arith.constant -1.000000e+09 : f32
    %311 = vector.shape_cast %3 : vector<1x4x4xi1> to vector<1x4x4xi1>
    %312 = vector.broadcast %311 : vector<1x4x4xi1> to vector<2x4x4xi1>
    %313 = vector.broadcast %cst_88 : f32 to vector<2x4x4xf32>
    %314 = arith.select %312, %310, %313 : vector<2x4x4xi1>, vector<2x4x4xf32>
    %cst_89 = arith.constant dense<0xFF800000> : vector<2x4xf32>
    %315 = vector.multi_reduction <maximumf>, %314, %cst_89 [2] : vector<2x4x4xf32> to vector<2x4xf32>
    %316 = vector.shape_cast %315 : vector<2x4xf32> to vector<2x4x1xf32>
    %317 = vector.broadcast %316 : vector<2x4x1xf32> to vector<2x4x4xf32>
    %318 = arith.subf %314, %317 : vector<2x4x4xf32>
    %319 = math.exp %318 : vector<2x4x4xf32>
    %cst_90 = arith.constant dense<0.000000e+00> : vector<2x4xf32>
    %320 = vector.multi_reduction <add>, %319, %cst_90 [2] : vector<2x4x4xf32> to vector<2x4xf32>
    %321 = vector.shape_cast %320 : vector<2x4xf32> to vector<2x4x1xf32>
    %322 = tpu.reciprocal %321 {approx = true} : vector<2x4x1xf32> -> vector<2x4x1xf32>
    %323 = vector.broadcast %322 : vector<2x4x1xf32> to vector<2x4x4xf32>
    %324 = arith.mulf %319, %323 : vector<2x4x4xf32>
    %325 = arith.truncf %324 : vector<2x4x4xf32> to vector<2x4x4xbf16>
    %326 = vector.extract_strided_slice %302 {offsets = [0, 0, 0], sizes = [2, 4, 8], strides = [1, 1, 1]} : vector<2x4x32xf32> to vector<2x4x8xf32>
    %327 = arith.truncf %326 : vector<2x4x8xf32> to vector<2x4x8xbf16>
    "tpu.trace_start"() <{level = 10 : i32, message = "bqk,bkd->bqd"}> : () -> ()
    %cst_91 = arith.constant dense<0.000000e+00> : vector<2x4x8xf32>
    %328 = tpu.matmul %325, %327, %cst_91 {dimension_numbers = #tpu.dot_dimension_numbers<[2], [1], [1], [2], [0, 0, 0, 1, 1, 2], [0], [0]>} : vector<2x4x4xbf16>, vector<2x4x8xbf16>, vector<2x4x8xf32> -> vector<2x4x8xf32>
    "tpu.trace_stop"() : () -> ()
    %c400 = arith.constant 400 : index
    %c0_92 = arith.constant 0 : index
    %329 = vector.load %arg2[%c400, %c0_92] : memref<776x128xf32, #tpu.memory_space<vmem>>, vector<8x32xf32>
    %330 = vector.shape_cast %328 : vector<2x4x8xf32> to vector<8x8xf32>
    %331 = arith.truncf %330 : vector<8x8xf32> to vector<8x8xbf16>
    %332 = arith.truncf %329 : vector<8x32xf32> to vector<8x32xbf16>
    %cst_93 = arith.constant dense<0.000000e+00> : vector<8x32xf32>
    %333 = tpu.matmul %331, %332, %cst_93 {dimension_numbers = #tpu.dot_dimension_numbers<[1], [0], [0], [1], [0, 0, 1, 1], [], []>} : vector<8x8xbf16>, vector<8x32xbf16>, vector<8x32xf32> -> vector<8x32xf32>
    %334 = arith.addf %303, %333 : vector<8x32xf32>
    %335 = vector.extract_strided_slice %300 {offsets = [0, 0, 8], sizes = [2, 4, 8], strides = [1, 1, 1]} : vector<2x4x32xf32> to vector<2x4x8xf32>
    %336 = arith.truncf %335 : vector<2x4x8xf32> to vector<2x4x8xbf16>
    %337 = vector.extract_strided_slice %301 {offsets = [0, 0, 8], sizes = [2, 4, 8], strides = [1, 1, 1]} : vector<2x4x32xf32> to vector<2x4x8xf32>
    %338 = arith.truncf %337 : vector<2x4x8xf32> to vector<2x4x8xbf16>
    "tpu.trace_start"() <{level = 10 : i32, message = "bqd,bkd->bqk"}> : () -> ()
    %cst_94 = arith.constant dense<0.000000e+00> : vector<2x4x4xf32>
    %339 = tpu.matmul %336, %338, %cst_94 {dimension_numbers = #tpu.dot_dimension_numbers<[2], [2], [1], [1], [0, 0, 0, 1, 1, 1], [0], [0]>} : vector<2x4x8xbf16>, vector<2x4x8xbf16>, vector<2x4x4xf32> -> vector<2x4x4xf32>
    "tpu.trace_stop"() : () -> ()
    %cst_95 = arith.constant 0.353553385 : f32
    %340 = vector.broadcast %cst_95 : f32 to vector<2x4x4xf32>
    %341 = arith.mulf %339, %340 : vector<2x4x4xf32>
    %cst_96 = arith.constant -1.000000e+09 : f32
    %342 = vector.shape_cast %3 : vector<1x4x4xi1> to vector<1x4x4xi1>
    %343 = vector.broadcast %342 : vector<1x4x4xi1> to vector<2x4x4xi1>
    %344 = vector.broadcast %cst_96 : f32 to vector<2x4x4xf32>
    %345 = arith.select %343, %341, %344 : vector<2x4x4xi1>, vector<2x4x4xf32>
    %cst_97 = arith.constant dense<0xFF800000> : vector<2x4xf32>
    %346 = vector.multi_reduction <maximumf>, %345, %cst_97 [2] : vector<2x4x4xf32> to vector<2x4xf32>
    %347 = vector.shape_cast %346 : vector<2x4xf32> to vector<2x4x1xf32>
    %348 = vector.broadcast %347 : vector<2x4x1xf32> to vector<2x4x4xf32>
    %349 = arith.subf %345, %348 : vector<2x4x4xf32>
    %350 = math.exp %349 : vector<2x4x4xf32>
    %cst_98 = arith.constant dense<0.000000e+00> : vector<2x4xf32>
    %351 = vector.multi_reduction <add>, %350, %cst_98 [2] : vector<2x4x4xf32> to vector<2x4xf32>
    %352 = vector.shape_cast %351 : vector<2x4xf32> to vector<2x4x1xf32>
    %353 = tpu.reciprocal %352 {approx = true} : vector<2x4x1xf32> -> vector<2x4x1xf32>
    %354 = vector.broadcast %353 : vector<2x4x1xf32> to vector<2x4x4xf32>
    %355 = arith.mulf %350, %354 : vector<2x4x4xf32>
    %356 = arith.truncf %355 : vector<2x4x4xf32> to vector<2x4x4xbf16>
    %357 = vector.extract_strided_slice %302 {offsets = [0, 0, 8], sizes = [2, 4, 8], strides = [1, 1, 1]} : vector<2x4x32xf32> to vector<2x4x8xf32>
    %358 = arith.truncf %357 : vector<2x4x8xf32> to vector<2x4x8xbf16>
    "tpu.trace_start"() <{level = 10 : i32, message = "bqk,bkd->bqd"}> : () -> ()
    %cst_99 = arith.constant dense<0.000000e+00> : vector<2x4x8xf32>
    %359 = tpu.matmul %356, %358, %cst_99 {dimension_numbers = #tpu.dot_dimension_numbers<[2], [1], [1], [2], [0, 0, 0, 1, 1, 2], [0], [0]>} : vector<2x4x4xbf16>, vector<2x4x8xbf16>, vector<2x4x8xf32> -> vector<2x4x8xf32>
    "tpu.trace_stop"() : () -> ()
    %c408 = arith.constant 408 : index
    %c0_100 = arith.constant 0 : index
    %360 = vector.load %arg2[%c408, %c0_100] : memref<776x128xf32, #tpu.memory_space<vmem>>, vector<8x32xf32>
    %361 = vector.shape_cast %359 : vector<2x4x8xf32> to vector<8x8xf32>
    %362 = arith.truncf %361 : vector<8x8xf32> to vector<8x8xbf16>
    %363 = arith.truncf %360 : vector<8x32xf32> to vector<8x32xbf16>
    %cst_101 = arith.constant dense<0.000000e+00> : vector<8x32xf32>
    %364 = tpu.matmul %362, %363, %cst_101 {dimension_numbers = #tpu.dot_dimension_numbers<[1], [0], [0], [1], [0, 0, 1, 1], [], []>} : vector<8x8xbf16>, vector<8x32xbf16>, vector<8x32xf32> -> vector<8x32xf32>
    %365 = arith.addf %334, %364 : vector<8x32xf32>
    %366 = vector.extract_strided_slice %300 {offsets = [0, 0, 16], sizes = [2, 4, 8], strides = [1, 1, 1]} : vector<2x4x32xf32> to vector<2x4x8xf32>
    %367 = arith.truncf %366 : vector<2x4x8xf32> to vector<2x4x8xbf16>
    %368 = vector.extract_strided_slice %301 {offsets = [0, 0, 16], sizes = [2, 4, 8], strides = [1, 1, 1]} : vector<2x4x32xf32> to vector<2x4x8xf32>
    %369 = arith.truncf %368 : vector<2x4x8xf32> to vector<2x4x8xbf16>
    "tpu.trace_start"() <{level = 10 : i32, message = "bqd,bkd->bqk"}> : () -> ()
    %cst_102 = arith.constant dense<0.000000e+00> : vector<2x4x4xf32>
    %370 = tpu.matmul %367, %369, %cst_102 {dimension_numbers = #tpu.dot_dimension_numbers<[2], [2], [1], [1], [0, 0, 0, 1, 1, 1], [0], [0]>} : vector<2x4x8xbf16>, vector<2x4x8xbf16>, vector<2x4x4xf32> -> vector<2x4x4xf32>
    "tpu.trace_stop"() : () -> ()
    %cst_103 = arith.constant 0.353553385 : f32
    %371 = vector.broadcast %cst_103 : f32 to vector<2x4x4xf32>
    %372 = arith.mulf %370, %371 : vector<2x4x4xf32>
    %cst_104 = arith.constant -1.000000e+09 : f32
    %373 = vector.shape_cast %3 : vector<1x4x4xi1> to vector<1x4x4xi1>
    %374 = vector.broadcast %373 : vector<1x4x4xi1> to vector<2x4x4xi1>
    %375 = vector.broadcast %cst_104 : f32 to vector<2x4x4xf32>
    %376 = arith.select %374, %372, %375 : vector<2x4x4xi1>, vector<2x4x4xf32>
    %cst_105 = arith.constant dense<0xFF800000> : vector<2x4xf32>
    %377 = vector.multi_reduction <maximumf>, %376, %cst_105 [2] : vector<2x4x4xf32> to vector<2x4xf32>
    %378 = vector.shape_cast %377 : vector<2x4xf32> to vector<2x4x1xf32>
    %379 = vector.broadcast %378 : vector<2x4x1xf32> to vector<2x4x4xf32>
    %380 = arith.subf %376, %379 : vector<2x4x4xf32>
    %381 = math.exp %380 : vector<2x4x4xf32>
    %cst_106 = arith.constant dense<0.000000e+00> : vector<2x4xf32>
    %382 = vector.multi_reduction <add>, %381, %cst_106 [2] : vector<2x4x4xf32> to vector<2x4xf32>
    %383 = vector.shape_cast %382 : vector<2x4xf32> to vector<2x4x1xf32>
    %384 = tpu.reciprocal %383 {approx = true} : vector<2x4x1xf32> -> vector<2x4x1xf32>
    %385 = vector.broadcast %384 : vector<2x4x1xf32> to vector<2x4x4xf32>
    %386 = arith.mulf %381, %385 : vector<2x4x4xf32>
    %387 = arith.truncf %386 : vector<2x4x4xf32> to vector<2x4x4xbf16>
    %388 = vector.extract_strided_slice %302 {offsets = [0, 0, 16], sizes = [2, 4, 8], strides = [1, 1, 1]} : vector<2x4x32xf32> to vector<2x4x8xf32>
    %389 = arith.truncf %388 : vector<2x4x8xf32> to vector<2x4x8xbf16>
    "tpu.trace_start"() <{level = 10 : i32, message = "bqk,bkd->bqd"}> : () -> ()
    %cst_107 = arith.constant dense<0.000000e+00> : vector<2x4x8xf32>
    %390 = tpu.matmul %387, %389, %cst_107 {dimension_numbers = #tpu.dot_dimension_numbers<[2], [1], [1], [2], [0, 0, 0, 1, 1, 2], [0], [0]>} : vector<2x4x4xbf16>, vector<2x4x8xbf16>, vector<2x4x8xf32> -> vector<2x4x8xf32>
    "tpu.trace_stop"() : () -> ()
    %c416 = arith.constant 416 : index
    %c0_108 = arith.constant 0 : index
    %391 = vector.load %arg2[%c416, %c0_108] : memref<776x128xf32, #tpu.memory_space<vmem>>, vector<8x32xf32>
    %392 = vector.shape_cast %390 : vector<2x4x8xf32> to vector<8x8xf32>
    %393 = arith.truncf %392 : vector<8x8xf32> to vector<8x8xbf16>
    %394 = arith.truncf %391 : vector<8x32xf32> to vector<8x32xbf16>
    %cst_109 = arith.constant dense<0.000000e+00> : vector<8x32xf32>
    %395 = tpu.matmul %393, %394, %cst_109 {dimension_numbers = #tpu.dot_dimension_numbers<[1], [0], [0], [1], [0, 0, 1, 1], [], []>} : vector<8x8xbf16>, vector<8x32xbf16>, vector<8x32xf32> -> vector<8x32xf32>
    %396 = arith.addf %365, %395 : vector<8x32xf32>
    %397 = vector.extract_strided_slice %300 {offsets = [0, 0, 24], sizes = [2, 4, 8], strides = [1, 1, 1]} : vector<2x4x32xf32> to vector<2x4x8xf32>
    %398 = arith.truncf %397 : vector<2x4x8xf32> to vector<2x4x8xbf16>
    %399 = vector.extract_strided_slice %301 {offsets = [0, 0, 24], sizes = [2, 4, 8], strides = [1, 1, 1]} : vector<2x4x32xf32> to vector<2x4x8xf32>
    %400 = arith.truncf %399 : vector<2x4x8xf32> to vector<2x4x8xbf16>
    "tpu.trace_start"() <{level = 10 : i32, message = "bqd,bkd->bqk"}> : () -> ()
    %cst_110 = arith.constant dense<0.000000e+00> : vector<2x4x4xf32>
    %401 = tpu.matmul %398, %400, %cst_110 {dimension_numbers = #tpu.dot_dimension_numbers<[2], [2], [1], [1], [0, 0, 0, 1, 1, 1], [0], [0]>} : vector<2x4x8xbf16>, vector<2x4x8xbf16>, vector<2x4x4xf32> -> vector<2x4x4xf32>
    "tpu.trace_stop"() : () -> ()
    %cst_111 = arith.constant 0.353553385 : f32
    %402 = vector.broadcast %cst_111 : f32 to vector<2x4x4xf32>
    %403 = arith.mulf %401, %402 : vector<2x4x4xf32>
    %cst_112 = arith.constant -1.000000e+09 : f32
    %404 = vector.shape_cast %3 : vector<1x4x4xi1> to vector<1x4x4xi1>
    %405 = vector.broadcast %404 : vector<1x4x4xi1> to vector<2x4x4xi1>
    %406 = vector.broadcast %cst_112 : f32 to vector<2x4x4xf32>
    %407 = arith.select %405, %403, %406 : vector<2x4x4xi1>, vector<2x4x4xf32>
    %cst_113 = arith.constant dense<0xFF800000> : vector<2x4xf32>
    %408 = vector.multi_reduction <maximumf>, %407, %cst_113 [2] : vector<2x4x4xf32> to vector<2x4xf32>
    %409 = vector.shape_cast %408 : vector<2x4xf32> to vector<2x4x1xf32>
    %410 = vector.broadcast %409 : vector<2x4x1xf32> to vector<2x4x4xf32>
    %411 = arith.subf %407, %410 : vector<2x4x4xf32>
    %412 = math.exp %411 : vector<2x4x4xf32>
    %cst_114 = arith.constant dense<0.000000e+00> : vector<2x4xf32>
    %413 = vector.multi_reduction <add>, %412, %cst_114 [2] : vector<2x4x4xf32> to vector<2x4xf32>
    %414 = vector.shape_cast %413 : vector<2x4xf32> to vector<2x4x1xf32>
    %415 = tpu.reciprocal %414 {approx = true} : vector<2x4x1xf32> -> vector<2x4x1xf32>
    %416 = vector.broadcast %415 : vector<2x4x1xf32> to vector<2x4x4xf32>
    %417 = arith.mulf %412, %416 : vector<2x4x4xf32>
    %418 = arith.truncf %417 : vector<2x4x4xf32> to vector<2x4x4xbf16>
    %419 = vector.extract_strided_slice %302 {offsets = [0, 0, 24], sizes = [2, 4, 8], strides = [1, 1, 1]} : vector<2x4x32xf32> to vector<2x4x8xf32>
    %420 = arith.truncf %419 : vector<2x4x8xf32> to vector<2x4x8xbf16>
    "tpu.trace_start"() <{level = 10 : i32, message = "bqk,bkd->bqd"}> : () -> ()
    %cst_115 = arith.constant dense<0.000000e+00> : vector<2x4x8xf32>
    %421 = tpu.matmul %418, %420, %cst_115 {dimension_numbers = #tpu.dot_dimension_numbers<[2], [1], [1], [2], [0, 0, 0, 1, 1, 2], [0], [0]>} : vector<2x4x4xbf16>, vector<2x4x8xbf16>, vector<2x4x8xf32> -> vector<2x4x8xf32>
    "tpu.trace_stop"() : () -> ()
    %c424 = arith.constant 424 : index
    %c0_116 = arith.constant 0 : index
    %422 = vector.load %arg2[%c424, %c0_116] : memref<776x128xf32, #tpu.memory_space<vmem>>, vector<8x32xf32>
    %423 = vector.shape_cast %421 : vector<2x4x8xf32> to vector<8x8xf32>
    %424 = arith.truncf %423 : vector<8x8xf32> to vector<8x8xbf16>
    %425 = arith.truncf %422 : vector<8x32xf32> to vector<8x32xbf16>
    %cst_117 = arith.constant dense<0.000000e+00> : vector<8x32xf32>
    %426 = tpu.matmul %424, %425, %cst_117 {dimension_numbers = #tpu.dot_dimension_numbers<[1], [0], [0], [1], [0, 0, 1, 1], [], []>} : vector<8x8xbf16>, vector<8x32xbf16>, vector<8x32xf32> -> vector<8x32xf32>
    %427 = arith.addf %396, %426 : vector<8x32xf32>
    %c432 = arith.constant 432 : index
    %c0_118 = arith.constant 0 : index
    %428 = vector.load %arg2[%c432, %c0_118] : memref<776x128xf32, #tpu.memory_space<vmem>>, vector<1x32xf32>
    %429 = vector.broadcast %428 : vector<1x32xf32> to vector<8x32xf32>
    %430 = arith.addf %427, %429 : vector<8x32xf32>
    %431 = arith.addf %94, %430 : vector<8x32xf32>
    %432 = arith.mulf %431, %431 : vector<8x32xf32>
    %cst_119 = arith.constant dense<0.000000e+00> : vector<8xf32>
    %433 = vector.multi_reduction <add>, %432, %cst_119 [1] : vector<8x32xf32> to vector<8xf32>
    %434 = vector.shape_cast %433 : vector<8xf32> to vector<8x1xf32>
    %cst_120 = arith.constant 3.200000e+01 : f32
    %435 = vector.broadcast %cst_120 : f32 to vector<8x1xf32>
    %436 = arith.divf %434, %435 : vector<8x1xf32>
    %cst_121 = arith.constant 9.99999997E-7 : f32
    %437 = vector.broadcast %cst_121 : f32 to vector<8x1xf32>
    %438 = arith.addf %436, %437 : vector<8x1xf32>
    %439 = math.rsqrt %438 : vector<8x1xf32>
    %440 = vector.broadcast %439 : vector<8x1xf32> to vector<8x32xf32>
    %441 = arith.mulf %431, %440 : vector<8x32xf32>
    %c440 = arith.constant 440 : index
    %c0_122 = arith.constant 0 : index
    %442 = vector.load %arg2[%c440, %c0_122] : memref<776x128xf32, #tpu.memory_space<vmem>>, vector<1x32xf32>
    %443 = vector.broadcast %442 : vector<1x32xf32> to vector<8x32xf32>
    %444 = arith.mulf %441, %443 : vector<8x32xf32>
    %c448 = arith.constant 448 : index
    %c0_123 = arith.constant 0 : index
    %445 = vector.load %arg2[%c448, %c0_123] : memref<776x128xf32, #tpu.memory_space<vmem>>, vector<32x32xf32>
    %446 = arith.truncf %444 : vector<8x32xf32> to vector<8x32xbf16>
    %447 = arith.truncf %445 : vector<32x32xf32> to vector<32x32xbf16>
    %cst_124 = arith.constant dense<0.000000e+00> : vector<8x32xf32>
    %448 = tpu.matmul %446, %447, %cst_124 {dimension_numbers = #tpu.dot_dimension_numbers<[1], [0], [0], [1], [0, 0, 1, 1], [], []>} : vector<8x32xbf16>, vector<32x32xbf16>, vector<8x32xf32> -> vector<8x32xf32>
    %c480 = arith.constant 480 : index
    %c0_125 = arith.constant 0 : index
    %449 = vector.load %arg2[%c480, %c0_125] : memref<776x128xf32, #tpu.memory_space<vmem>>, vector<1x32xf32>
    %450 = vector.broadcast %449 : vector<1x32xf32> to vector<8x32xf32>
    %451 = arith.addf %448, %450 : vector<8x32xf32>
    %c488 = arith.constant 488 : index
    %c0_126 = arith.constant 0 : index
    %452 = vector.load %arg2[%c488, %c0_126] : memref<776x128xf32, #tpu.memory_space<vmem>>, vector<32x64xf32>
    %453 = arith.truncf %276 : vector<8x32xf32> to vector<8x32xbf16>
    %454 = arith.truncf %452 : vector<32x64xf32> to vector<32x64xbf16>
    %cst_127 = arith.constant dense<0.000000e+00> : vector<8x64xf32>
    %455 = tpu.matmul %453, %454, %cst_127 {dimension_numbers = #tpu.dot_dimension_numbers<[1], [0], [0], [1], [0, 0, 1, 1], [], []>} : vector<8x32xbf16>, vector<32x64xbf16>, vector<8x64xf32> -> vector<8x64xf32>
    %c520 = arith.constant 520 : index
    %c0_128 = arith.constant 0 : index
    %456 = vector.load %arg2[%c520, %c0_128] : memref<776x128xf32, #tpu.memory_space<vmem>>, vector<1x64xf32>
    %457 = vector.broadcast %456 : vector<1x64xf32> to vector<8x64xf32>
    %458 = arith.addf %455, %457 : vector<8x64xf32>
    %459 = vector.extract_strided_slice %458 {offsets = [0, 0], sizes = [8, 32], strides = [1, 1]} : vector<8x64xf32> to vector<8x32xf32>
    %460 = vector.extract_strided_slice %458 {offsets = [0, 32], sizes = [8, 32], strides = [1, 1]} : vector<8x64xf32> to vector<8x32xf32>
    %461 = vector.shape_cast %451 : vector<8x32xf32> to vector<2x4x32xf32>
    %462 = vector.shape_cast %459 : vector<8x32xf32> to vector<2x4x32xf32>
    %463 = vector.shape_cast %460 : vector<8x32xf32> to vector<2x4x32xf32>
    %cst_129 = arith.constant 0.000000e+00 : f32
    %464 = vector.broadcast %cst_129 : f32 to vector<8x32xf32>
    %465 = vector.extract_strided_slice %461 {offsets = [0, 0, 0], sizes = [2, 4, 8], strides = [1, 1, 1]} : vector<2x4x32xf32> to vector<2x4x8xf32>
    %466 = arith.truncf %465 : vector<2x4x8xf32> to vector<2x4x8xbf16>
    %467 = vector.extract_strided_slice %462 {offsets = [0, 0, 0], sizes = [2, 4, 8], strides = [1, 1, 1]} : vector<2x4x32xf32> to vector<2x4x8xf32>
    %468 = arith.truncf %467 : vector<2x4x8xf32> to vector<2x4x8xbf16>
    "tpu.trace_start"() <{level = 10 : i32, message = "bqd,bkd->bqk"}> : () -> ()
    %cst_130 = arith.constant dense<0.000000e+00> : vector<2x4x4xf32>
    %469 = tpu.matmul %466, %468, %cst_130 {dimension_numbers = #tpu.dot_dimension_numbers<[2], [2], [1], [1], [0, 0, 0, 1, 1, 1], [0], [0]>} : vector<2x4x8xbf16>, vector<2x4x8xbf16>, vector<2x4x4xf32> -> vector<2x4x4xf32>
    "tpu.trace_stop"() : () -> ()
    %cst_131 = arith.constant 0.353553385 : f32
    %470 = vector.broadcast %cst_131 : f32 to vector<2x4x4xf32>
    %471 = arith.mulf %469, %470 : vector<2x4x4xf32>
    %cst_132 = arith.constant dense<0xFF800000> : vector<2x4xf32>
    %472 = vector.multi_reduction <maximumf>, %471, %cst_132 [2] : vector<2x4x4xf32> to vector<2x4xf32>
    %473 = vector.shape_cast %472 : vector<2x4xf32> to vector<2x4x1xf32>
    %474 = vector.broadcast %473 : vector<2x4x1xf32> to vector<2x4x4xf32>
    %475 = arith.subf %471, %474 : vector<2x4x4xf32>
    %476 = math.exp %475 : vector<2x4x4xf32>
    %cst_133 = arith.constant dense<0.000000e+00> : vector<2x4xf32>
    %477 = vector.multi_reduction <add>, %476, %cst_133 [2] : vector<2x4x4xf32> to vector<2x4xf32>
    %478 = vector.shape_cast %477 : vector<2x4xf32> to vector<2x4x1xf32>
    %479 = tpu.reciprocal %478 {approx = true} : vector<2x4x1xf32> -> vector<2x4x1xf32>
    %480 = vector.broadcast %479 : vector<2x4x1xf32> to vector<2x4x4xf32>
    %481 = arith.mulf %476, %480 : vector<2x4x4xf32>
    %482 = arith.truncf %481 : vector<2x4x4xf32> to vector<2x4x4xbf16>
    %483 = vector.extract_strided_slice %463 {offsets = [0, 0, 0], sizes = [2, 4, 8], strides = [1, 1, 1]} : vector<2x4x32xf32> to vector<2x4x8xf32>
    %484 = arith.truncf %483 : vector<2x4x8xf32> to vector<2x4x8xbf16>
    "tpu.trace_start"() <{level = 10 : i32, message = "bqk,bkd->bqd"}> : () -> ()
    %cst_134 = arith.constant dense<0.000000e+00> : vector<2x4x8xf32>
    %485 = tpu.matmul %482, %484, %cst_134 {dimension_numbers = #tpu.dot_dimension_numbers<[2], [1], [1], [2], [0, 0, 0, 1, 1, 2], [0], [0]>} : vector<2x4x4xbf16>, vector<2x4x8xbf16>, vector<2x4x8xf32> -> vector<2x4x8xf32>
    "tpu.trace_stop"() : () -> ()
    %c528 = arith.constant 528 : index
    %c0_135 = arith.constant 0 : index
    %486 = vector.load %arg2[%c528, %c0_135] : memref<776x128xf32, #tpu.memory_space<vmem>>, vector<8x32xf32>
    %487 = vector.shape_cast %485 : vector<2x4x8xf32> to vector<8x8xf32>
    %488 = arith.truncf %487 : vector<8x8xf32> to vector<8x8xbf16>
    %489 = arith.truncf %486 : vector<8x32xf32> to vector<8x32xbf16>
    %cst_136 = arith.constant dense<0.000000e+00> : vector<8x32xf32>
    %490 = tpu.matmul %488, %489, %cst_136 {dimension_numbers = #tpu.dot_dimension_numbers<[1], [0], [0], [1], [0, 0, 1, 1], [], []>} : vector<8x8xbf16>, vector<8x32xbf16>, vector<8x32xf32> -> vector<8x32xf32>
    %491 = arith.addf %464, %490 : vector<8x32xf32>
    %492 = vector.extract_strided_slice %461 {offsets = [0, 0, 8], sizes = [2, 4, 8], strides = [1, 1, 1]} : vector<2x4x32xf32> to vector<2x4x8xf32>
    %493 = arith.truncf %492 : vector<2x4x8xf32> to vector<2x4x8xbf16>
    %494 = vector.extract_strided_slice %462 {offsets = [0, 0, 8], sizes = [2, 4, 8], strides = [1, 1, 1]} : vector<2x4x32xf32> to vector<2x4x8xf32>
    %495 = arith.truncf %494 : vector<2x4x8xf32> to vector<2x4x8xbf16>
    "tpu.trace_start"() <{level = 10 : i32, message = "bqd,bkd->bqk"}> : () -> ()
    %cst_137 = arith.constant dense<0.000000e+00> : vector<2x4x4xf32>
    %496 = tpu.matmul %493, %495, %cst_137 {dimension_numbers = #tpu.dot_dimension_numbers<[2], [2], [1], [1], [0, 0, 0, 1, 1, 1], [0], [0]>} : vector<2x4x8xbf16>, vector<2x4x8xbf16>, vector<2x4x4xf32> -> vector<2x4x4xf32>
    "tpu.trace_stop"() : () -> ()
    %cst_138 = arith.constant 0.353553385 : f32
    %497 = vector.broadcast %cst_138 : f32 to vector<2x4x4xf32>
    %498 = arith.mulf %496, %497 : vector<2x4x4xf32>
    %cst_139 = arith.constant dense<0xFF800000> : vector<2x4xf32>
    %499 = vector.multi_reduction <maximumf>, %498, %cst_139 [2] : vector<2x4x4xf32> to vector<2x4xf32>
    %500 = vector.shape_cast %499 : vector<2x4xf32> to vector<2x4x1xf32>
    %501 = vector.broadcast %500 : vector<2x4x1xf32> to vector<2x4x4xf32>
    %502 = arith.subf %498, %501 : vector<2x4x4xf32>
    %503 = math.exp %502 : vector<2x4x4xf32>
    %cst_140 = arith.constant dense<0.000000e+00> : vector<2x4xf32>
    %504 = vector.multi_reduction <add>, %503, %cst_140 [2] : vector<2x4x4xf32> to vector<2x4xf32>
    %505 = vector.shape_cast %504 : vector<2x4xf32> to vector<2x4x1xf32>
    %506 = tpu.reciprocal %505 {approx = true} : vector<2x4x1xf32> -> vector<2x4x1xf32>
    %507 = vector.broadcast %506 : vector<2x4x1xf32> to vector<2x4x4xf32>
    %508 = arith.mulf %503, %507 : vector<2x4x4xf32>
    %509 = arith.truncf %508 : vector<2x4x4xf32> to vector<2x4x4xbf16>
    %510 = vector.extract_strided_slice %463 {offsets = [0, 0, 8], sizes = [2, 4, 8], strides = [1, 1, 1]} : vector<2x4x32xf32> to vector<2x4x8xf32>
    %511 = arith.truncf %510 : vector<2x4x8xf32> to vector<2x4x8xbf16>
    "tpu.trace_start"() <{level = 10 : i32, message = "bqk,bkd->bqd"}> : () -> ()
    %cst_141 = arith.constant dense<0.000000e+00> : vector<2x4x8xf32>
    %512 = tpu.matmul %509, %511, %cst_141 {dimension_numbers = #tpu.dot_dimension_numbers<[2], [1], [1], [2], [0, 0, 0, 1, 1, 2], [0], [0]>} : vector<2x4x4xbf16>, vector<2x4x8xbf16>, vector<2x4x8xf32> -> vector<2x4x8xf32>
    "tpu.trace_stop"() : () -> ()
    %c536 = arith.constant 536 : index
    %c0_142 = arith.constant 0 : index
    %513 = vector.load %arg2[%c536, %c0_142] : memref<776x128xf32, #tpu.memory_space<vmem>>, vector<8x32xf32>
    %514 = vector.shape_cast %512 : vector<2x4x8xf32> to vector<8x8xf32>
    %515 = arith.truncf %514 : vector<8x8xf32> to vector<8x8xbf16>
    %516 = arith.truncf %513 : vector<8x32xf32> to vector<8x32xbf16>
    %cst_143 = arith.constant dense<0.000000e+00> : vector<8x32xf32>
    %517 = tpu.matmul %515, %516, %cst_143 {dimension_numbers = #tpu.dot_dimension_numbers<[1], [0], [0], [1], [0, 0, 1, 1], [], []>} : vector<8x8xbf16>, vector<8x32xbf16>, vector<8x32xf32> -> vector<8x32xf32>
    %518 = arith.addf %491, %517 : vector<8x32xf32>
    %519 = vector.extract_strided_slice %461 {offsets = [0, 0, 16], sizes = [2, 4, 8], strides = [1, 1, 1]} : vector<2x4x32xf32> to vector<2x4x8xf32>
    %520 = arith.truncf %519 : vector<2x4x8xf32> to vector<2x4x8xbf16>
    %521 = vector.extract_strided_slice %462 {offsets = [0, 0, 16], sizes = [2, 4, 8], strides = [1, 1, 1]} : vector<2x4x32xf32> to vector<2x4x8xf32>
    %522 = arith.truncf %521 : vector<2x4x8xf32> to vector<2x4x8xbf16>
    "tpu.trace_start"() <{level = 10 : i32, message = "bqd,bkd->bqk"}> : () -> ()
    %cst_144 = arith.constant dense<0.000000e+00> : vector<2x4x4xf32>
    %523 = tpu.matmul %520, %522, %cst_144 {dimension_numbers = #tpu.dot_dimension_numbers<[2], [2], [1], [1], [0, 0, 0, 1, 1, 1], [0], [0]>} : vector<2x4x8xbf16>, vector<2x4x8xbf16>, vector<2x4x4xf32> -> vector<2x4x4xf32>
    "tpu.trace_stop"() : () -> ()
    %cst_145 = arith.constant 0.353553385 : f32
    %524 = vector.broadcast %cst_145 : f32 to vector<2x4x4xf32>
    %525 = arith.mulf %523, %524 : vector<2x4x4xf32>
    %cst_146 = arith.constant dense<0xFF800000> : vector<2x4xf32>
    %526 = vector.multi_reduction <maximumf>, %525, %cst_146 [2] : vector<2x4x4xf32> to vector<2x4xf32>
    %527 = vector.shape_cast %526 : vector<2x4xf32> to vector<2x4x1xf32>
    %528 = vector.broadcast %527 : vector<2x4x1xf32> to vector<2x4x4xf32>
    %529 = arith.subf %525, %528 : vector<2x4x4xf32>
    %530 = math.exp %529 : vector<2x4x4xf32>
    %cst_147 = arith.constant dense<0.000000e+00> : vector<2x4xf32>
    %531 = vector.multi_reduction <add>, %530, %cst_147 [2] : vector<2x4x4xf32> to vector<2x4xf32>
    %532 = vector.shape_cast %531 : vector<2x4xf32> to vector<2x4x1xf32>
    %533 = tpu.reciprocal %532 {approx = true} : vector<2x4x1xf32> -> vector<2x4x1xf32>
    %534 = vector.broadcast %533 : vector<2x4x1xf32> to vector<2x4x4xf32>
    %535 = arith.mulf %530, %534 : vector<2x4x4xf32>
    %536 = arith.truncf %535 : vector<2x4x4xf32> to vector<2x4x4xbf16>
    %537 = vector.extract_strided_slice %463 {offsets = [0, 0, 16], sizes = [2, 4, 8], strides = [1, 1, 1]} : vector<2x4x32xf32> to vector<2x4x8xf32>
    %538 = arith.truncf %537 : vector<2x4x8xf32> to vector<2x4x8xbf16>
    "tpu.trace_start"() <{level = 10 : i32, message = "bqk,bkd->bqd"}> : () -> ()
    %cst_148 = arith.constant dense<0.000000e+00> : vector<2x4x8xf32>
    %539 = tpu.matmul %536, %538, %cst_148 {dimension_numbers = #tpu.dot_dimension_numbers<[2], [1], [1], [2], [0, 0, 0, 1, 1, 2], [0], [0]>} : vector<2x4x4xbf16>, vector<2x4x8xbf16>, vector<2x4x8xf32> -> vector<2x4x8xf32>
    "tpu.trace_stop"() : () -> ()
    %c544 = arith.constant 544 : index
    %c0_149 = arith.constant 0 : index
    %540 = vector.load %arg2[%c544, %c0_149] : memref<776x128xf32, #tpu.memory_space<vmem>>, vector<8x32xf32>
    %541 = vector.shape_cast %539 : vector<2x4x8xf32> to vector<8x8xf32>
    %542 = arith.truncf %541 : vector<8x8xf32> to vector<8x8xbf16>
    %543 = arith.truncf %540 : vector<8x32xf32> to vector<8x32xbf16>
    %cst_150 = arith.constant dense<0.000000e+00> : vector<8x32xf32>
    %544 = tpu.matmul %542, %543, %cst_150 {dimension_numbers = #tpu.dot_dimension_numbers<[1], [0], [0], [1], [0, 0, 1, 1], [], []>} : vector<8x8xbf16>, vector<8x32xbf16>, vector<8x32xf32> -> vector<8x32xf32>
    %545 = arith.addf %518, %544 : vector<8x32xf32>
    %546 = vector.extract_strided_slice %461 {offsets = [0, 0, 24], sizes = [2, 4, 8], strides = [1, 1, 1]} : vector<2x4x32xf32> to vector<2x4x8xf32>
    %547 = arith.truncf %546 : vector<2x4x8xf32> to vector<2x4x8xbf16>
    %548 = vector.extract_strided_slice %462 {offsets = [0, 0, 24], sizes = [2, 4, 8], strides = [1, 1, 1]} : vector<2x4x32xf32> to vector<2x4x8xf32>
    %549 = arith.truncf %548 : vector<2x4x8xf32> to vector<2x4x8xbf16>
    "tpu.trace_start"() <{level = 10 : i32, message = "bqd,bkd->bqk"}> : () -> ()
    %cst_151 = arith.constant dense<0.000000e+00> : vector<2x4x4xf32>
    %550 = tpu.matmul %547, %549, %cst_151 {dimension_numbers = #tpu.dot_dimension_numbers<[2], [2], [1], [1], [0, 0, 0, 1, 1, 1], [0], [0]>} : vector<2x4x8xbf16>, vector<2x4x8xbf16>, vector<2x4x4xf32> -> vector<2x4x4xf32>
    "tpu.trace_stop"() : () -> ()
    %cst_152 = arith.constant 0.353553385 : f32
    %551 = vector.broadcast %cst_152 : f32 to vector<2x4x4xf32>
    %552 = arith.mulf %550, %551 : vector<2x4x4xf32>
    %cst_153 = arith.constant dense<0xFF800000> : vector<2x4xf32>
    %553 = vector.multi_reduction <maximumf>, %552, %cst_153 [2] : vector<2x4x4xf32> to vector<2x4xf32>
    %554 = vector.shape_cast %553 : vector<2x4xf32> to vector<2x4x1xf32>
    %555 = vector.broadcast %554 : vector<2x4x1xf32> to vector<2x4x4xf32>
    %556 = arith.subf %552, %555 : vector<2x4x4xf32>
    %557 = math.exp %556 : vector<2x4x4xf32>
    %cst_154 = arith.constant dense<0.000000e+00> : vector<2x4xf32>
    %558 = vector.multi_reduction <add>, %557, %cst_154 [2] : vector<2x4x4xf32> to vector<2x4xf32>
    %559 = vector.shape_cast %558 : vector<2x4xf32> to vector<2x4x1xf32>
    %560 = tpu.reciprocal %559 {approx = true} : vector<2x4x1xf32> -> vector<2x4x1xf32>
    %561 = vector.broadcast %560 : vector<2x4x1xf32> to vector<2x4x4xf32>
    %562 = arith.mulf %557, %561 : vector<2x4x4xf32>
    %563 = arith.truncf %562 : vector<2x4x4xf32> to vector<2x4x4xbf16>
    %564 = vector.extract_strided_slice %463 {offsets = [0, 0, 24], sizes = [2, 4, 8], strides = [1, 1, 1]} : vector<2x4x32xf32> to vector<2x4x8xf32>
    %565 = arith.truncf %564 : vector<2x4x8xf32> to vector<2x4x8xbf16>
    "tpu.trace_start"() <{level = 10 : i32, message = "bqk,bkd->bqd"}> : () -> ()
    %cst_155 = arith.constant dense<0.000000e+00> : vector<2x4x8xf32>
    %566 = tpu.matmul %563, %565, %cst_155 {dimension_numbers = #tpu.dot_dimension_numbers<[2], [1], [1], [2], [0, 0, 0, 1, 1, 2], [0], [0]>} : vector<2x4x4xbf16>, vector<2x4x8xbf16>, vector<2x4x8xf32> -> vector<2x4x8xf32>
    "tpu.trace_stop"() : () -> ()
    %c552 = arith.constant 552 : index
    %c0_156 = arith.constant 0 : index
    %567 = vector.load %arg2[%c552, %c0_156] : memref<776x128xf32, #tpu.memory_space<vmem>>, vector<8x32xf32>
    %568 = vector.shape_cast %566 : vector<2x4x8xf32> to vector<8x8xf32>
    %569 = arith.truncf %568 : vector<8x8xf32> to vector<8x8xbf16>
    %570 = arith.truncf %567 : vector<8x32xf32> to vector<8x32xbf16>
    %cst_157 = arith.constant dense<0.000000e+00> : vector<8x32xf32>
    %571 = tpu.matmul %569, %570, %cst_157 {dimension_numbers = #tpu.dot_dimension_numbers<[1], [0], [0], [1], [0, 0, 1, 1], [], []>} : vector<8x8xbf16>, vector<8x32xbf16>, vector<8x32xf32> -> vector<8x32xf32>
    %572 = arith.addf %545, %571 : vector<8x32xf32>
    %c560 = arith.constant 560 : index
    %c0_158 = arith.constant 0 : index
    %573 = vector.load %arg2[%c560, %c0_158] : memref<776x128xf32, #tpu.memory_space<vmem>>, vector<1x32xf32>
    %574 = vector.broadcast %573 : vector<1x32xf32> to vector<8x32xf32>
    %575 = arith.addf %572, %574 : vector<8x32xf32>
    %576 = arith.addf %431, %575 : vector<8x32xf32>
    %577 = arith.mulf %576, %576 : vector<8x32xf32>
    %cst_159 = arith.constant dense<0.000000e+00> : vector<8xf32>
    %578 = vector.multi_reduction <add>, %577, %cst_159 [1] : vector<8x32xf32> to vector<8xf32>
    %579 = vector.shape_cast %578 : vector<8xf32> to vector<8x1xf32>
    %cst_160 = arith.constant 3.200000e+01 : f32
    %580 = vector.broadcast %cst_160 : f32 to vector<8x1xf32>
    %581 = arith.divf %579, %580 : vector<8x1xf32>
    %cst_161 = arith.constant 9.99999997E-7 : f32
    %582 = vector.broadcast %cst_161 : f32 to vector<8x1xf32>
    %583 = arith.addf %581, %582 : vector<8x1xf32>
    %584 = math.rsqrt %583 : vector<8x1xf32>
    %585 = vector.broadcast %584 : vector<8x1xf32> to vector<8x32xf32>
    %586 = arith.mulf %576, %585 : vector<8x32xf32>
    %c568 = arith.constant 568 : index
    %c0_162 = arith.constant 0 : index
    %587 = vector.load %arg2[%c568, %c0_162] : memref<776x128xf32, #tpu.memory_space<vmem>>, vector<1x32xf32>
    %588 = vector.broadcast %587 : vector<1x32xf32> to vector<8x32xf32>
    %589 = arith.mulf %586, %588 : vector<8x32xf32>
    %c576 = arith.constant 576 : index
    %c0_163 = arith.constant 0 : index
    %590 = vector.load %arg2[%c576, %c0_163] : memref<776x128xf32, #tpu.memory_space<vmem>>, vector<32x64xf32>
    %591 = arith.truncf %589 : vector<8x32xf32> to vector<8x32xbf16>
    %592 = arith.truncf %590 : vector<32x64xf32> to vector<32x64xbf16>
    %cst_164 = arith.constant dense<0.000000e+00> : vector<8x64xf32>
    %593 = tpu.matmul %591, %592, %cst_164 {dimension_numbers = #tpu.dot_dimension_numbers<[1], [0], [0], [1], [0, 0, 1, 1], [], []>} : vector<8x32xbf16>, vector<32x64xbf16>, vector<8x64xf32> -> vector<8x64xf32>
    %c608 = arith.constant 608 : index
    %c0_165 = arith.constant 0 : index
    %594 = vector.load %arg2[%c608, %c0_165] : memref<776x128xf32, #tpu.memory_space<vmem>>, vector<1x64xf32>
    %595 = vector.broadcast %594 : vector<1x64xf32> to vector<8x64xf32>
    %596 = arith.addf %593, %595 : vector<8x64xf32>
    %cst_166 = arith.constant 0.000000e+00 : f32
    %597 = vector.broadcast %cst_166 : f32 to vector<8x64xf32>
    %598 = arith.maximumf %596, %597 : vector<8x64xf32>
    %c616 = arith.constant 616 : index
    %c0_167 = arith.constant 0 : index
    %599 = vector.load %arg2[%c616, %c0_167] : memref<776x128xf32, #tpu.memory_space<vmem>>, vector<64x32xf32>
    %600 = arith.truncf %598 : vector<8x64xf32> to vector<8x64xbf16>
    %601 = arith.truncf %599 : vector<64x32xf32> to vector<64x32xbf16>
    %cst_168 = arith.constant dense<0.000000e+00> : vector<8x32xf32>
    %602 = tpu.matmul %600, %601, %cst_168 {dimension_numbers = #tpu.dot_dimension_numbers<[1], [0], [0], [1], [0, 0, 1, 1], [], []>} : vector<8x64xbf16>, vector<64x32xbf16>, vector<8x32xf32> -> vector<8x32xf32>
    %c680 = arith.constant 680 : index
    %c0_169 = arith.constant 0 : index
    %603 = vector.load %arg2[%c680, %c0_169] : memref<776x128xf32, #tpu.memory_space<vmem>>, vector<1x32xf32>
    %604 = vector.broadcast %603 : vector<1x32xf32> to vector<8x32xf32>
    %605 = arith.addf %602, %604 : vector<8x32xf32>
    %606 = arith.addf %576, %605 : vector<8x32xf32>
    %607 = arith.mulf %606, %606 : vector<8x32xf32>
    %cst_170 = arith.constant dense<0.000000e+00> : vector<8xf32>
    %608 = vector.multi_reduction <add>, %607, %cst_170 [1] : vector<8x32xf32> to vector<8xf32>
    %609 = vector.shape_cast %608 : vector<8xf32> to vector<8x1xf32>
    %cst_171 = arith.constant 3.200000e+01 : f32
    %610 = vector.broadcast %cst_171 : f32 to vector<8x1xf32>
    %611 = arith.divf %609, %610 : vector<8x1xf32>
    %cst_172 = arith.constant 9.99999997E-7 : f32
    %612 = vector.broadcast %cst_172 : f32 to vector<8x1xf32>
    %613 = arith.addf %611, %612 : vector<8x1xf32>
    %614 = math.rsqrt %613 : vector<8x1xf32>
    %615 = vector.broadcast %614 : vector<8x1xf32> to vector<8x32xf32>
    %616 = arith.mulf %606, %615 : vector<8x32xf32>
    %c688 = arith.constant 688 : index
    %c0_173 = arith.constant 0 : index
    %617 = vector.load %arg2[%c688, %c0_173] : memref<776x128xf32, #tpu.memory_space<vmem>>, vector<1x32xf32>
    %618 = vector.broadcast %617 : vector<1x32xf32> to vector<8x32xf32>
    %619 = arith.mulf %616, %618 : vector<8x32xf32>
    %c696 = arith.constant 696 : index
    %c0_174 = arith.constant 0 : index
    %620 = vector.load %arg2[%c696, %c0_174] : memref<776x128xf32, #tpu.memory_space<vmem>>, vector<32x32xf32>
    %621 = arith.truncf %276 : vector<8x32xf32> to vector<8x32xbf16>
    %622 = arith.truncf %620 : vector<32x32xf32> to vector<32x32xbf16>
    %cst_175 = arith.constant dense<0.000000e+00> : vector<8x32xf32>
    %623 = tpu.matmul %621, %622, %cst_175 {dimension_numbers = #tpu.dot_dimension_numbers<[1], [0], [0], [1], [0, 0, 1, 1], [], []>} : vector<8x32xbf16>, vector<32x32xbf16>, vector<8x32xf32> -> vector<8x32xf32>
    %c728 = arith.constant 728 : index
    %c0_176 = arith.constant 0 : index
    %624 = vector.load %arg2[%c728, %c0_176] : memref<776x128xf32, #tpu.memory_space<vmem>>, vector<1x32xf32>
    %625 = vector.broadcast %624 : vector<1x32xf32> to vector<8x32xf32>
    %626 = arith.addf %623, %625 : vector<8x32xf32>
    %627 = math.tanh %626 : vector<8x32xf32>
    %c736 = arith.constant 736 : index
    %c0_177 = arith.constant 0 : index
    %628 = vector.load %arg2[%c736, %c0_177] : memref<776x128xf32, #tpu.memory_space<vmem>>, vector<32x128xf32>
    %629 = arith.truncf %627 : vector<8x32xf32> to vector<8x32xbf16>
    %630 = arith.truncf %628 : vector<32x128xf32> to vector<32x128xbf16>
    %cst_178 = arith.constant dense<0.000000e+00> : vector<8x128xf32>
    %631 = tpu.matmul %629, %630, %cst_178 {dimension_numbers = #tpu.dot_dimension_numbers<[1], [0], [0], [1], [0, 0, 1, 1], [], []>} : vector<8x32xbf16>, vector<32x128xbf16>, vector<8x128xf32> -> vector<8x128xf32>
    %c768 = arith.constant 768 : index
    %c0_179 = arith.constant 0 : index
    %632 = vector.load %arg2[%c768, %c0_179] : memref<776x128xf32, #tpu.memory_space<vmem>>, vector<1x128xf32>
    %633 = vector.broadcast %632 : vector<1x128xf32> to vector<8x128xf32>
    %634 = arith.addf %631, %633 : vector<8x128xf32>
    %c0_180 = arith.constant 0 : index
    %c0_181 = arith.constant 0 : index
    %635 = vector.load %arg3[%c0_180, %c0_181] : memref<16x128xf32, #tpu.memory_space<vmem>>, vector<8x128xf32>
    tpu.vector_store %arg3[%c0_180, %c0_181], %634 {strides = array<i32>} : memref<16x128xf32, #tpu.memory_space<vmem>>, vector<8x128xf32>,
    %c696_182 = arith.constant 696 : index
    %c0_183 = arith.constant 0 : index
    %636 = vector.load %arg2[%c696_182, %c0_183] : memref<776x128xf32, #tpu.memory_space<vmem>>, vector<32x32xf32>
    %637 = arith.truncf %619 : vector<8x32xf32> to vector<8x32xbf16>
    %638 = arith.truncf %636 : vector<32x32xf32> to vector<32x32xbf16>
    %cst_184 = arith.constant dense<0.000000e+00> : vector<8x32xf32>
    %639 = tpu.matmul %637, %638, %cst_184 {dimension_numbers = #tpu.dot_dimension_numbers<[1], [0], [0], [1], [0, 0, 1, 1], [], []>} : vector<8x32xbf16>, vector<32x32xbf16>, vector<8x32xf32> -> vector<8x32xf32>
    %c728_185 = arith.constant 728 : index
    %c0_186 = arith.constant 0 : index
    %640 = vector.load %arg2[%c728_185, %c0_186] : memref<776x128xf32, #tpu.memory_space<vmem>>, vector<1x32xf32>
    %641 = vector.broadcast %640 : vector<1x32xf32> to vector<8x32xf32>
    %642 = arith.addf %639, %641 : vector<8x32xf32>
    %643 = math.tanh %642 : vector<8x32xf32>
    %c736_187 = arith.constant 736 : index
    %c0_188 = arith.constant 0 : index
    %644 = vector.load %arg2[%c736_187, %c0_188] : memref<776x128xf32, #tpu.memory_space<vmem>>, vector<32x128xf32>
    %645 = arith.truncf %643 : vector<8x32xf32> to vector<8x32xbf16>
    %646 = arith.truncf %644 : vector<32x128xf32> to vector<32x128xbf16>
    %cst_189 = arith.constant dense<0.000000e+00> : vector<8x128xf32>
    %647 = tpu.matmul %645, %646, %cst_189 {dimension_numbers = #tpu.dot_dimension_numbers<[1], [0], [0], [1], [0, 0, 1, 1], [], []>} : vector<8x32xbf16>, vector<32x128xbf16>, vector<8x128xf32> -> vector<8x128xf32>
    %c768_190 = arith.constant 768 : index
    %c0_191 = arith.constant 0 : index
    %648 = vector.load %arg2[%c768_190, %c0_191] : memref<776x128xf32, #tpu.memory_space<vmem>>, vector<1x128xf32>
    %649 = vector.broadcast %648 : vector<1x128xf32> to vector<8x128xf32>
    %650 = arith.addf %647, %649 : vector<8x128xf32>
    %c8_192 = arith.constant 8 : index
    %c0_193 = arith.constant 0 : index
    %651 = vector.load %arg3[%c8_192, %c0_193] : memref<16x128xf32, #tpu.memory_space<vmem>>, vector<8x128xf32>
    tpu.vector_store %arg3[%c8_192, %c0_193], %650 {strides = array<i32>} : memref<16x128xf32, #tpu.memory_space<vmem>>, vector<8x128xf32>,
    return
  }
}

</mosaic_0001>

<bundles_post_ra>
// kernel: transformer_net_forward.1
= control target key start
LH: loop header
LB: loop body
LE: loop exit
PB: predicated region body
PF: predicated region fallthrough
CT: control target
= control target key end

     0   :  { %8 = vsyncpa [#allocation3], 0  ;;  %s6784_s0 = inlined_call_operand.hbm [shape: f32[16,16], index: 0, kind: input, shape index: {}]   ;;  %s6785_s1 = inlined_call_operand.vmem [shape: f32[2,1], index: 1, kind: input, shape index: {}]   ;;  %s6786_s2 = inlined_call_operand.hbm [shape: f32[776,128], index: 2, kind: input, shape index: {}]   ;;  %s6787_s3 = inlined_call_operand.vmem [shape: f32[16,128], index: 3, kind: output, shape index: {}]  }
   0x1   :  { %9 = vsyncpa [#allocation5], 0  ;;  %s5941_s12 = smov [#allocation2]  }
   0x2   :  { %s15_s13 = sshll.u32 %s5941_s12, 4  ;;  %s16_s13 = int_to_ptr.vmem [resolvable:$true] %s15_s13 }
   0x3   :  { %s5905_s14 = scalar_lea.vmem %s16_s13, 256  ;;  %p5910_p1 = scmp.lt.s32.totalorder %s16_s13, %s16_s13 }
   0x4   :  { %p5906_p0 = scmp.ne.s32.totalorder %s16_s13, %s5905_s14  ;;  %p5911_p2 = scmp.lt.s32.totalorder %s5905_s14, %s5905_s14 }
   0x6   :  { %p5912_p3 = por %p5911_p2, %p5910_p1 }
   0x8   :  { %p5913_p4 = pnand %p5912_p3, %p5906_p0 }
   0xa   :  { %5916 = shalt.err (!%p5913_p4)
}
   0xb   :  { %s5942_s15 = smov 128   ;;  %s5943_s16 = smov 8  }
   0xc   :  { %21 = dma.hbm_to_vmem [thread:$0]  %s6784_s0, 256, %s16_s13, [#allocation3], %s5942_s15, %s5942_s15, %s5943_s16  }
   0xd   :  { %s5944_s19 = smov [#allocation4]  }
   0xe   :  { %s29_s20 = sshll.u32 %s5944_s19, 4  ;;  %s30_s20 = int_to_ptr.vmem [resolvable:$true] %s29_s20 }
   0xf   :  { %s5925_s21 = scalar_lea.vmem %s30_s20, 12416  ;;  %p5930_p6 = scmp.lt.s32.totalorder %s30_s20, %s30_s20 }
  0x10   :  { %p5926_p5 = scmp.ne.s32.totalorder %s30_s20, %s5925_s21  ;;  %p5931_p7 = scmp.lt.s32.totalorder %s5925_s21, %s5925_s21 }
  0x12   :  { %p5932_p8 = por %p5931_p7, %p5930_p6 }
  0x14   :  { %p5933_p9 = pnand %p5932_p8, %p5926_p5 }
  0x16   :  { %5936 = shalt.err (!%p5933_p9)
}
  0x17   :  { %35 = dma.hbm_to_vmem [thread:$0]  %s6786_s2, 12416, %s30_s20, [#allocation5], %s5942_s15, %s5942_s15, %s5943_s16  }
  0x18   :  { %5937 = dma.done.wait [#allocation3], 256  }
  0x19   :  { %5938 = vsyncadd [#allocation3], 4294967040 }
  0x1a   :  { %5939 = dma.done.wait [#allocation5], 12416  }
  0x1b   :  { %5940 = vsyncadd [#allocation5], 4294954880  ;;  %v5945_v0 = vmov 0   ;;  %v48_v1 = vld [vmem:[%s6785_s1] sm:$0x3]  ;;  %v272_v2 = vld [vmem:[#allocation4] sm:$0xff]  ;;  %v43_v6 = vlaneseq }
  0x1c   :  { %5764 = vset.pattern.permute.xlu0 %v5945_v0  ;;  %vm284_vm0 = vcmask 1043456   ;;  %v5946_v3 = vmov 0.0   ;;  %v274_v4 = vpack.c.bf16 %v272_v2, %v272_v2  ;;  %vm5947_vm1 = vmmov 0   ;;  %s5957_s1 = smov 96   ;;  %s5958_s2 = smov 88  }
  0x1d   :  { %58 = vperm.xlu0 %5764, %v48_v1   ;;  %5241 = vmatprep.subr.bf16.mxu0 %v5946_v3  ;;  %v6006_v7 = vand.u32 127, %v43_v6  ;;  %v5948_v26 = vmov 683565275   ;;  %v5949_v28 = vmov 2475754826   ;;  %s5959_s25 = smov 64  }
  0x1e   :  { %5243 = vmatprep.mubr.msk.bf16.mxu0 %vm5947_vm1, %v5946_v3  ;;  %5247 = vmatprep.subr.bf16.mxu1 %v5946_v3  ;;  %v286_v5 = vsel %vm284_vm0, %v274_v4, 0  ;;  %v5950_v31 = vmov 2131351028   ;;  %v5951_v34 = vmov 2102212464   ;;  %s5960_s26 = smov 120  }
  0x1f   :  { %5251 = vmatprep.mubr.msk.bf16.mxu1 %vm5947_vm1, %v5946_v3  ;;  %5242 = vmatpush3.bf16.msra.mxu0 %v286_v5  ;;  %v4957_v8 = vadd.s32 4294967292, %v6006_v7  ;;  %vm49_vm2 = vcmp.lt.s32.totalorder %v6006_v7, 4  ;;  %v5952_v37 = vmov 920167782   ;;  %v5953_v40 = vmov 1326507024  }
  0x20   :  { %5255 = vmatprep.subr.bf16.mxu0 %v5946_v3  ;;  %s5961_s27 = smov 56   ;;  %s5962_s28 = smov 80  }
  0x21   :  { %v51_v9 = vsel %vm49_vm2, %v6006_v7, %v4957_v8  ;;  %s5963_s29 = smov 112   ;;  %s5964_s30 = smov 48  }
  0x22   :  { %v52_v10 = vcvt.s32.f32 %v51_v9  ;;  %s5965_s4 = smov 72   ;;  %s5966_s5 = smov 104  }
  0x23   :  { %s5967_s6 = smov 40  }
  0x24   :  { %v53_v11 = vmul.f32 -2.3025851, %v52_v10 }
  0x26   :  { %v54_v12 = vmul.f32 1.442695, %v53_v11 }
  0x28   :  { %5765 = vpow2.f32 %v54_v12 }
  0x35   :  { %v5766_v13 = vpop.eup %5765 }
  0x98   :  { %v59_v14 = vpop.permute.xlu0 %58 }
  0x99   :  { %v6013_v15 = vmul.f32 %v5766_v13, %v59_v14 }
  0x9b   :  { %v65_v16 = vand.u32 2139095040, %v6013_v15  ;;  %v62_v20 = vand.u32 2147483647, %v6013_v15  ;;  %vm64_vm10 = vcmp.lt.s32.totalorder %v6013_v15, 0 }
  0x9d   :  { %v66_v17 = vshrl.u32 %v65_v16, 23  ;;  %v69_v23 = vand.u32 8388607, %v62_v20  ;;  %vm63_vm11 = vcmp.le.f32.partialorder %v62_v20, 0.7853982 }
  0x9f   :  { %v4958_v18 = vadd.s32 4294967169, %v66_v17  ;;  %v70_v42 = vor.u32 8388608, %v69_v23 }
  0xa1   :  { %v72_v19 = vadd.s32 1, %v4958_v18  ;;  %v110_v56 = vshll.u32 %v70_v42, 8 }
  0xa3   :  { %vm73_vm3 = vcmp.gt.s32.totalorder %v72_v19, 0 }
  0xa4   :  { %v74_v21 = vsel %vm73_vm3, %v72_v19, 0 }
  0xa5   :  { %v76_v22 = vand.u32 31, %v74_v21  ;;  %v75_v25 = vshrl.u32 %v74_v21, 5 }
  0xa7   :  { %v77_v24 = vsub.s32 32, %v76_v22  ;;  %v79_v27 = vshll.u32 %v5948_v26, %v76_v22  ;;  %v82_v29 = vshll.u32 %v5949_v28, %v76_v22  ;;  %v85_v33 = vshll.u32 %v5950_v31, %v76_v22 }
  0xa8   :  { %v88_v36 = vshll.u32 %v5951_v34, %v76_v22  ;;  %v91_v39 = vshll.u32 %v5952_v37, %v76_v22  ;;  %vm94_vm4 = vcmp.lt.s32.totalorder %v75_v25, 1  ;;  %vm97_vm5 = vcmp.lt.s32.totalorder %v75_v25, 4 }
  0xa9   :  { %v80_v30 = vshrl.u32 %v5949_v28, %v77_v24  ;;  %v83_v32 = vshrl.u32 %v5950_v31, %v77_v24  ;;  %v86_v35 = vshrl.u32 %v5951_v34, %v77_v24  ;;  %v89_v38 = vshrl.u32 %v5952_v37, %v77_v24 }
  0xaa   :  { %v92_v41 = vshrl.u32 %v5953_v40, %v77_v24  ;;  %v78_v51 = vshrl.u32 %v5948_v26, %v77_v24  ;;  %vm96_vm6 = vcmp.lt.s32.totalorder %v75_v25, 3  ;;  %vm95_vm7 = vcmp.lt.s32.totalorder %v75_v25, 2 }
  0xab   :  { %v81_v43 = vor.u32 %v80_v30, %v79_v27  ;;  %v84_v44 = vor.u32 %v83_v32, %v82_v29  ;;  %v87_v45 = vor.u32 %v86_v35, %v85_v33  ;;  %v90_v46 = vor.u32 %v89_v38, %v88_v36 }
  0xac   :  { %v93_v47 = vor.u32 %v92_v41, %v91_v39 }
  0xad   :  { %v99_v48 = vsel %vm97_vm5, %v87_v45, 2102212464  ;;  %v102_v49 = vsel %vm94_vm4, %v81_v43, %v84_v44  ;;  %v106_v50 = vsel %vm94_vm4, %v84_v44, %v87_v45  ;;  %v103_v52 = vsel %vm97_vm5, %v90_v46, 920167782 }
  0xae   :  { %v107_v53 = vsel %vm97_vm5, %v93_v47, 1326507024  ;;  %v104_v54 = vsel %vm96_vm6, %v87_v45, %v103_v52  ;;  %v98_v57 = vsel %vm94_vm4, %v78_v51, %v81_v43  ;;  %v100_v58 = vsel %vm96_vm6, %v84_v44, %v99_v48  ;;  %v393_v48 = vld [vmem:[#allocation4 + $0x38] sm:$0xff] }
  0xaf   :  { %v108_v55 = vsel %vm96_vm6, %v90_v46, %v107_v53  ;;  %v105_v59 = vsel %vm95_vm7, %v102_v49, %v104_v54  ;;  %v101_v1 = vsel %vm95_vm7, %v98_v57, %v100_v58  ;;  %v394_v49 = vld [vmem:[#allocation4 + $0x40] sm:$0xff]  ;;  %vm154_vm5 = vweird.f32 %v6013_v15  ;;  %v391_v57 = vld [vmem:[#allocation2] sm:$0xff]  ;;  %v392_v58 = vld [vmem:[#allocation2 + $0x8] sm:$0xff] }
  0xb0   :  { %v109_v60 = vsel %vm95_vm7, %v106_v50, %v108_v55  ;;  %v6022_v63 = vmul.u32.u64.low %v110_v56, %v105_v59  ;;  %v6023_v0 = vmul.u32.u64.high %v110_v56, %v105_v59, %v6022_v63  ;;  %v117_v4 = vmul.u32 %v110_v56, %v101_v1  ;;  %v337_v59 = vld [vmem:[#allocation4 + $0x20] sm:$0xff]  ;;  %v4966_v1 = vld [vmem:[#allocation4 + $0x8] ss:$0 sm:$0xff] }
  0xb1   :  { %v6019_v61 = vmul.u32.u64.low %v110_v56, %v109_v60  ;;  %v6020_v62 = vmul.u32.u64.high %v110_v56, %v109_v60, %v6019_v61  ;;  %vm280_vm6 = vcmask 64512   ;;  %v396_v55 = vpack.c.bf16 %v394_v49, %v393_v48  ;;  %v338_v60 = vld [vmem:[#allocation4 + $0x28] sm:$0xff]  ;;  %v4973_v48 = vld [vmem:[#allocation4 + $0x70] ss:$0 sm:$0xff] }
  0xb2   :  { %v120_v2 = vadd.s32 1, %v6023_v0  ;;  %vm402_vm7 = vcmask 130048   ;;  %v341_v61 = vpack.c.bf16 %v338_v60, %v337_v59 }
  0xb3   :  { %vm119_vm8 = vc.u32 %v6020_v62, %v6022_v63  ;;  %v118_v19 = vadd.s32 %v6022_v63, %v6020_v62  ;;  %v335_v62 = vld [vmem:[#allocation4 + $0x10] sm:$0xff]  ;;  %v336_v63 = vld [vmem:[#allocation4 + $0x18] sm:$0xff] }
  0xb4   :  { %v121_v5 = vsel %vm119_vm8, %v120_v2, %v6023_v0  ;;  %5248 = vmatpush3.bf16.msra.mxu1 %v341_v61  ;;  %v340_v0 = vpack.c.bf16 %v336_v63, %v335_v62  ;;  %vm792_vm8 = vcmask 27648  }
  0xb5   :  { %v122_v8 = vadd.s32 %v121_v5, %v117_v4  ;;  %5249 = vmatprep.subr.bf16.mxu1 %v5946_v3 }
  0xb7   :  { %v123_v9 = vadd.s32 536870912, %v122_v8 }
  0xb8   :  { %5250 = vmatpush3.bf16.msra.mxu1 %v340_v0 }
  0xb9   :  { %v124_v10 = vshrl.u32 %v123_v9, 30  ;;  %5261 = vmatprep.subr.bf16.mxu1 %v5946_v3 }
  0xbb   :  { %v125_v11 = vshll.u32 %v124_v10, 30  ;;  %v148_v33 = vsub.s32 4, %v124_v10 }
  0xbd   :  { %v126_v12 = vsub.s32 %v122_v8, %v125_v11  ;;  %v149_v36 = vsel %vm64_vm10, %v148_v33, %v124_v10 }
  0xbe   :  { %v151_v37 = vsel %vm63_vm11, 0, %v149_v36  ;;  %v6053_v36 = vshrl.u32 %v43_v6, 7 }
  0xbf   :  { %v128_v13 = vsub.s32 0, %v126_v12  ;;  %v258_v38 = vadd.s32 3, %v151_v37  ;;  %v155_v39 = vand.u32 3, %v151_v37 }
  0xc1   :  { %v4959_v14 = vmin.u32 %v128_v13, %v126_v12  ;;  %v259_v40 = vand.u32 3, %v258_v38  ;;  %vm160_vm12 = vcmp.eq.s32.totalorder %v155_v39, 2  ;;  %vm157_vm14 = vcmp.eq.s32.totalorder %v155_v39, 0  ;;  %v4969_v38 = vld [vmem:[#allocation4 + $0x30] ss:$0 sm:$0xff] }
  0xc2   :  { %vm156_vm3 = vcmp.lt.s32.totalorder %v155_v39, 2 }
  0xc3   :  { %v130_v16 = vclz %v4959_v14  ;;  %vm264_vm13 = vcmp.eq.s32.totalorder %v259_v40, 2  ;;  %vm261_vm15 = vcmp.eq.s32.totalorder %v259_v40, 0  ;;  %vm260_vm4 = vcmp.lt.s32.totalorder %v259_v40, 2 }
  0xc5   :  { %v4960_v17 = vadd.s32 4294967294, %v130_v16 }
  0xc7   :  { %vm4961_vm9 = vcmp.lt.s32.totalorder %v4960_v17, 0 }
  0xc8   :  { %v133_v18 = vsel %vm4961_vm9, 0, %v4960_v17  ;;  %vm823_vm9 = vcmask 1041408  }
  0xc9   :  { %v134_v21 = vsub.s32 32, %v133_v18  ;;  %v138_v22 = vsub.s32 4294967266, %v133_v18  ;;  %v135_v23 = vshll.u32 %v126_v12, %v133_v18  ;;  %v4971_v18 = vld [vmem:[#allocation4 + $0x48] ss:$0 sm:$0xff] }
  0xcb   :  { %v136_v24 = vshrl.u32 %v118_v19, %v134_v21  ;;  %v139_v25 = vadd.s32 127, %v138_v22  ;;  %v451_v22 = vld [vmem:[#allocation4 + $0x60] sm:$0xff] }
  0xcd   :  { %v137_v26 = vor.u32 %v136_v24, %v135_v23  ;;  %v140_v27 = vshll.u32 %v139_v25, 23  ;;  %v452_v23 = vld [vmem:[#allocation4 + $0x68] sm:$0xff] }
  0xcf   :  { %v141_v28 = vor.u32 4788187, %v140_v27  ;;  %v144_v30 = vcvt.s32.f32 %v137_v26  ;;  %v455_v26 = vpack.c.bf16 %v452_v23, %v451_v22  ;;  %v4976_v22 = vld [vmem:[#allocation4 + $0x80] ss:$0 sm:$0xff] }
  0xd1   :  { %v142_v29 = vand.u32 2147483647, %v141_v28  ;;  %v449_v28 = vld [vmem:[#allocation4 + $0x50] sm:$0xff] }
  0xd3   :  { %v145_v31 = vmul.f32 %v144_v30, %v142_v29  ;;  %v450_v29 = vld [vmem:[#allocation4 + $0x58] sm:$0xff] }
  0xd4   :  { %v454_v30 = vpack.c.bf16 %v450_v29, %v449_v28 }
  0xd5   :  { %v146_v32 = vxor.u32 2147483648, %v145_v31 }
  0xd7   :  { %v147_v34 = vsel %vm64_vm10, %v146_v32, %v145_v31  ;;  %vm819_vm10 = vcmask 31744  }
  0xd8   :  { %v150_v35 = vsel %vm63_vm11, %v6013_v15, %v147_v34  ;;  %v395_v15 = vpack.c.bf16 %v392_v58, %v391_v57  ;;  %v5954_v34 = vmov 1966171168   ;;  %vm1925_vm11 = vcmask 523264  }
  0xd9   :  { %5767 = vcosq.f32 %v150_v35 }
  0xda   :  { %5769 = vsinq.f32 %v150_v35  ;;  %v507_v35 = vunpack.c.l.s4 %v5954_v34 }
  0xdc   :  { %v508_v37 = vunpack.c.0.s8 %v507_v35  ;;  %v629_v35 = vld [vmem:[#allocation4 + $0x98] sm:$0xff] }
  0xde   :  { %v511_v39 = vsub.s32 %v508_v37, %v6053_v36 }
  0xe6   :  { %v5768_v41 = vpop.eup %5767 }
  0xe7   :  { %v5770_v42 = vpop.eup %5769  ;;  %v161_v43 = vxor.u32 2147483648, %v5768_v41 }
  0xe8   :  { %v158_v44 = vxor.u32 2147483648, %v5770_v42 }
  0xe9   :  { %v162_v45 = vsel %vm160_vm12, %v161_v43, %v5770_v42  ;;  %v266_v20 = vsel %vm264_vm13, %v161_v43, %v5770_v42  ;;  %vm6337_vm12 = vcmp.le.s32.totalorder %v6006_v7, %v6053_v36 }
  0xea   :  { %v159_v46 = vsel %vm157_vm14, %v5768_v41, %v158_v44  ;;  %v263_v47 = vsel %vm261_vm15, %v5768_v41, %v158_v44 }
  0xeb   :  { %v163_v50 = vsel %vm156_vm3, %v159_v46, %v162_v45  ;;  %v267_v51 = vsel %vm260_vm4, %v263_v47, %v266_v20  ;;  %v530_v46 = vsub.s32 0, %v6053_v36 }
  0xec   :  { %v164_v52 = vsel %vm154_vm5, nan, %v163_v50  ;;  %v268_v53 = vsel %vm154_vm5, nan, %v267_v51 }
  0xed   :  { %v271_v54 = vsel %vm49_vm2, %v164_v52, %v268_v53  ;;  %vm347_vm2 = vcmask 261120  }
  0xee   :  { %v273_v56 = vpack.c.bf16 %v271_v54, %v271_v54 }
  0xf0   :  { %5244 = vmatmul.mubr.msk.bf16.vlgmr.msra.gmra.mxu0 %vm280_vm6, %v273_v56 }
  0xf1   :  { %5256 = vmatpush3.bf16.msra.mxu0 %v396_v55  ;;  %5257 = vmatprep.mubr.msk.bf16.mxu0 %vm5947_vm1, %v5946_v3 }
  0xf2   :  { %5269 = vmatprep.subr.bf16.mxu0 %v5946_v3 }
  0xf8   :  { %5258 = vmatmul.mubr.msk.bf16.vlgmr.msra.gmra.mxu0 %vm402_vm7, %v395_v15 }
  0xf9   :  { %5273 = vmatprep.mubr.msk.bf16.mxu0 %vm5947_vm1, %v5946_v3 }
 0x1b0   :  { %v322_v2 = vpop.f32.mrf.mxu0 }
 0x1b1   :  { %v323_v4 = vadd.f32 %v4966_v1, %v322_v2 }
 0x1b2   :  { %v5245_v5 = vpop.f32.mrf.mxu0 }
 0x1b3   :  { %v4968_v8 = vmul.f32 -1.442695, %v323_v4 }
 0x1b4   :  { %v325_v9 = vpop.f32.mrf.mxu0 }
 0x1b5   :  { %5771 = vpow2.f32 %v4968_v8 }
 0x1b6   :  { %v5246_v10 = vpop.f32.mrf.mxu0 }
 0x1b8   :  { %v440_v11 = vpop.f32.mrf.mxu0 }
 0x1b9   :  { %v441_v19 = vadd.f32 %v4971_v18, %v440_v11 }
 0x1ba   :  { %v5259_v12 = vpop.f32.mrf.mxu0 }
 0x1bc   :  { %v443_v13 = vpop.f32.mrf.mxu0 }
 0x1bd   :  { %v444_v21 = vadd.f32 %v4971_v18, %v443_v13 }
 0x1be   :  { %v5260_v14 = vpop.f32.mrf.mxu0 }
 0x1c2   :  { %v5772_v16 = vpop.eup %5771 }
 0x1c3   :  { %v331_v17 = vadd.f32 1.0, %v5772_v16 }
 0x1c5   :  { %5773 = vrcp.f32 %v331_v17  ;;  %v4975_v17 = vld [vmem:[#allocation4 + $0x78] ss:$0 sm:$0xff] }
 0x1c6   :  { %5775 = vtanh.f32 %v441_v19 }
 0x1c7   :  { %5777 = vtanh.f32 %v444_v21 }
 0x1d2   :  { %v5774_v24 = vpop.eup %5773 }
 0x1d3   :  { %v334_v25 = vmul.f32 %v5774_v24, %v323_v4  ;;  %v5776_v31 = vpop.eup %5775 }
 0x1d4   :  { %v5778_v32 = vpop.eup %5777 }
 0x1d5   :  { %v339_v27 = vpack.c.bf16 %v334_v25, %v334_v25  ;;  %v453_v33 = vpack.c.bf16 %v5778_v32, %v5776_v31  ;;  %v630_v31 = vld [vmem:[#allocation4 + $0xa0] sm:$0xff]  ;;  %v631_v32 = vld [vmem:[#allocation4 + $0xa8] sm:$0xff] }
 0x1d6   :  { %v638_v34 = vpack.c.bf16 %v631_v32, %v630_v31 }
 0x1d7   :  { %5252 = vmatmul.mubr.msk.bf16.vlgmr.msra.gmra.mxu1 %vm347_vm2, %v339_v27 }
 0x1d8   :  { %5262 = vmatpush3.bf16.msra.mxu1 %v455_v26  ;;  %5265 = vmatprep.mubr.msk.bf16.mxu1 %vm5947_vm1, %v5946_v3 }
 0x1d9   :  { %5263 = vmatprep.subr.bf16.mxu1 %v5946_v3  ;;  %5270 = vmatpush3.bf16.msra.mxu0 %v638_v34 }
 0x1da   :  { %5271 = vmatprep.subr.bf16.mxu0 %v5946_v3 }
 0x1dc   :  { %5264 = vmatpush3.bf16.msra.mxu1 %v454_v30 }
 0x1dd   :  { %5277 = vmatprep.subr.bf16.mxu1 %v5946_v3 }
 0x1df   :  { %5266 = vmatmul.mubr.msk.bf16.vlgmr.msra.gmra.mxu1 %vm347_vm2, %v453_v33  ;;  %v628_v33 = vld [vmem:[#allocation4 + $0x90] sm:$0xff] }
 0x1e0   :  { %5279 = vmatprep.mubr.msk.bf16.mxu1 %vm5947_vm1, %v5946_v3  ;;  %v637_v37 = vpack.c.bf16 %v629_v35, %v628_v33 }
 0x1e2   :  { %5272 = vmatpush3.bf16.msra.mxu0 %v637_v37 }
 0x1e3   :  { %5283 = vmatprep.subr.bf16.mxu0 %v5946_v3 }
 0x297   :  { %v385_v40 = vpop.f32.mrf.mxu1 }
 0x298   :  { %v386_v41 = vadd.f32 %v4969_v38, %v385_v40 }
 0x299   :  { %v5253_v42 = vpop.f32.mrf.mxu1 }
 0x29a   :  { %v512_v43 = vrot.slane %v386_v41, %v511_v39  ;;  %v5955_v41 = vmov 839922192  }
 0x29b   :  { %v388_v44 = vpop.f32.mrf.mxu1  ;;  %v601_v42 = vunpack.c.l.s4 %v5955_v41 }
 0x29c   :  { %v513_v45 = vcombine.high %v512_v43, %v512_v43  ;;  %v520_v20 = vrot.slane %v512_v43, %v511_v39  ;;  %v5956_v43 = vmov 1985246804  }
 0x29d   :  { %v5254_v47 = vpop.f32.mrf.mxu1  ;;  %v608_v44 = vunpack.c.l.s4 %v5956_v43 }
 0x29e   :  { %v531_v51 = vrot.slane %v520_v20, %v530_v46  ;;  %v527_v6 = vrot.slane %v513_v45, %v511_v39  ;;  %v602_v45 = vunpack.c.0.s8 %v601_v42 }
 0x29f   :  { %v498_v49 = vpop.f32.mrf.mxu1  ;;  %v609_v20 = vunpack.c.0.s8 %v608_v44 }
 0x2a0   :  { %v499_v50 = vadd.f32 %v4973_v48, %v498_v49  ;;  %v535_v57 = vrot.slane %v527_v6, %v530_v46  ;;  %v6073_v46 = vsub.s32 %v602_v45, %v6053_v36 }
 0x2a1   :  { %v5267_v52 = vpop.f32.mrf.mxu1  ;;  %v6076_v47 = vsub.s32 %v609_v20, %v6053_v36 }
 0x2a2   :  { %v538_v53 = vadd.f32 %v531_v51, %v499_v50 }
 0x2a3   :  { %v501_v54 = vpop.f32.mrf.mxu1 }
 0x2a4   :  { %v502_v55 = vadd.f32 %v4973_v48, %v501_v54  ;;  %v540_v56 = vsel %vm347_vm2, %v538_v53, 0.0  ;;  %v4977_v48 = vld [vmem:[#allocation4 + $0x88] ss:$0 sm:$0xff] }
 0x2a5   :  { %541 = vadd.xlane.f32.xlu0 %v540_v56  ;;  %v5268_v58 = vpop.f32.mrf.mxu1  ;;  %v624_v6 = vcombine.high %v4977_v48, %v4977_v48 }
 0x2a6   :  { %v539_v15 = vadd.f32 %v535_v57, %v502_v55  ;;  %v4978_v58 = vld [vmem:[#allocation4 + $0xb0] ss:$0 sm:$0xff] }
 0x2a8   :  { %v543_v59 = vsel %vm347_vm2, %v539_v15, 0.0 }
 0x2a9   :  { %544 = vadd.xlane.f32.xlu1 %v543_v59 }
 0x32e   :  { %v542_v60 = vpop.xlane.xlu0 %541 }
 0x32f   :  { %v547_v61 = vmul.f32 0.03125, %v542_v60 }
 0x331   :  { %v549_v62 = vsub.f32 %v538_v53, %v547_v61 }
 0x332   :  { %v545_v63 = vpop.xlane.xlu1 %544 }
 0x333   :  { %v548_v0 = vmul.f32 0.03125, %v545_v63  ;;  %v551_v1 = vmul.f32 %v549_v62, %v549_v62 }
 0x335   :  { %v550_v2 = vsub.f32 %v539_v15, %v548_v0  ;;  %v553_v4 = vsel %vm347_vm2, %v551_v1, 0.0 }
 0x336   :  { %554 = vadd.xlane.f32.xlu1 %v553_v4 }
 0x337   :  { %v552_v5 = vmul.f32 %v550_v2, %v550_v2 }
 0x339   :  { %v556_v8 = vsel %vm347_vm2, %v552_v5, 0.0 }
 0x33a   :  { %557 = vadd.xlane.f32.xlu1 %v556_v8 }
 0x3bf   :  { %v555_v9 = vpop.xlane.xlu1 %554 }
 0x3c0   :  { %v559_v10 = vmul.f32 0.03125, %v555_v9 }
 0x3c2   :  { %v561_v11 = vadd.f32 1e-12, %v559_v10 }
 0x3c3   :  { %v558_v12 = vpop.xlane.xlu1 %557 }
 0x3c4   :  { %5779 = vrsqrt.f32 %v561_v11  ;;  %v560_v13 = vmul.f32 0.03125, %v558_v12 }
 0x3c6   :  { %v562_v14 = vadd.f32 1e-12, %v560_v13 }
 0x3c8   :  { %5781 = vrsqrt.f32 %v562_v14 }
 0x3d1   :  { %v5780_v16 = vpop.eup %5779 }
 0x3d2   :  { %v565_v18 = vmul.f32 %v5780_v16, %v549_v62 }
 0x3d4   :  { %v572_v19 = vmul.f32 %v4975_v17, %v565_v18 }
 0x3d5   :  { %v5782_v21 = vpop.eup %5781 }
 0x3d6   :  { %v566_v23 = vmul.f32 %v5782_v21, %v550_v2  ;;  %v6061_v25 = vadd.f32 %v4976_v22, %v572_v19 }
 0x3d8   :  { %v573_v24 = vmul.f32 %v4975_v17, %v566_v23  ;;  %v587_v27 = vmul.f32 %v6061_v25, %v6061_v25 }
 0x3da   :  { %v6063_v26 = vadd.f32 %v4976_v22, %v573_v24 }
 0x3dc   :  { %v588_v28 = vmul.f32 %v6063_v26, %v6063_v26 }
 0x3de   :  { %v591_v29 = vcombine.low %v587_v27, %v588_v28 }
 0x3e0   :  { %v593_v30 = vsel %vm347_vm2, %v591_v29, 0.0 }
 0x3e1   :  { %594 = vadd.xlane.f32.xlu1 %v593_v30 }
 0x46a   :  { %v595_v38 = vpop.xlane.xlu1 %594 }
 0x46b   :  { %v596_v39 = vmul.f32 0.03125, %v595_v38 }
 0x46d   :  { %v597_v40 = vadd.f32 1e-06, %v596_v39 }
 0x46f   :  { %5783 = vrsqrt.f32 %v597_v40 }
 0x47c   :  { %v5784_v49 = vpop.eup %5783 }
 0x47d   :  { %v606_v50 = vrot.slane %v5784_v49, %v6073_v46  ;;  %v613_v51 = vrot.slane %v5784_v49, %v6076_v47 }
 0x47f   :  { %v616_v52 = vmul.f32 %v606_v50, %v6061_v25  ;;  %v617_v53 = vmul.f32 %v613_v51, %v6063_v26 }
 0x481   :  { %v626_v54 = vmul.f32 %v4977_v48, %v616_v52  ;;  %v627_v55 = vmul.f32 %v624_v6, %v617_v53 }
 0x483   :  { %v634_v56 = vcombine.low %v626_v54, %v627_v55 }
 0x485   :  { %v636_v57 = vpack.c.bf16 %v634_v56, %v634_v56 }
 0x487   :  { %5274 = vmatmul.mubr.msk.bf16.vlgmr.msra.gmra.mxu0 %vm347_vm2, %v636_v57 }
 0x488   :  { %5285 = vmatprep.mubr.msk.bf16.mxu0 %vm5947_vm1, %v5946_v3 }
 0x547   :  { %v681_v15 = vpop.f32.mrf.mxu0 }
 0x548   :  { %v682_v59 = vadd.f32 %v4978_v58, %v681_v15 }
 0x549   :  { %v5275_v60 = vpop.f32.mrf.mxu0 }
 0x54a   :  { %v688_v61 = vcombine.high %v682_v59, %v682_v59  ;;  %v6085_v62 = vpack.c.bf16 %v682_v59, %v682_v59 }
 0x54b   :  { %v684_v63 = vpop.f32.mrf.mxu0 }
 0x54c   :  { %693 = vrot.lane.b32.xlu1 %v6085_v62, %s5957_s1  ;;  %v6089_v1 = vpack.c.bf16 %v688_v61, %v688_v61 }
 0x54d   :  { %v5276_v0 = vpop.f32.mrf.mxu0 }
 0x550   :  { %742 = vrot.lane.b32.xlu1 %v6089_v1, %s5957_s1 }
 0x5be   :  { %v694_v2 = vpop.permute.xlu1 %693 }
 0x5bf   :  { %v699_v4 = vsel %vm280_vm6, %v694_v2, 0 }
 0x5c0   :  { %5278 = vmatpush3.bf16.xpose.msra.mxu1 %v699_v4 }
 0x5c1   :  { %5289 = vmatprep.subr.bf16.mxu1 %v5946_v3 }
 0x5c2   :  { %v743_v5 = vpop.permute.xlu1 %742 }
 0x5c3   :  { %v748_v8 = vsel %vm280_vm6, %v743_v5, 0 }
 0x5c4   :  { %5284 = vmatpush3.bf16.xpose.msra.mxu0 %v748_v8 }
 0x5c5   :  { %5295 = vmatprep.subr.bf16.mxu0 %v5946_v3 }
 0x5c7   :  { %5280 = vmatmul.mubr.msk.bf16.vlgmr.msra.gmra.mxu1 %vm280_vm6, %v6085_v62 }
 0x5c8   :  { %5291 = vmatprep.mubr.msk.bf16.mxu1 %vm5947_vm1, %v5946_v3 }
 0x5cb   :  { %5286 = vmatmul.mubr.msk.bf16.vlgmr.msra.gmra.mxu0 %vm280_vm6, %v6089_v1 }
 0x5cc   :  { %5297 = vmatprep.mubr.msk.bf16.mxu0 %vm5947_vm1, %v5946_v3 }
 0x687   :  { %v735_v9 = vpop.f32.mrf.mxu1 }
 0x688   :  { %v790_v10 = vmul.f32 0.35355338, %v735_v9 }
 0x689   :  { %v5281_v11 = vpop.f32.mrf.mxu1 }
 0x68a   :  { %v793_v12 = vsel %vm792_vm8, %v790_v10, -inf }
 0x68b   :  { %794 = vmax.xlane.f32.xlu0 %v793_v12  ;;  %v738_v13 = vpop.f32.mrf.mxu1  ;;  %v784_v14 = vpop.f32.mrf.mxu0 }
 0x68c   :  { %v791_v16 = vmul.f32 0.35355338, %v784_v14 }
 0x68d   :  { %v5282_v17 = vpop.f32.mrf.mxu1  ;;  %v5287_v18 = vpop.f32.mrf.mxu0 }
 0x68e   :  { %v796_v19 = vsel %vm792_vm8, %v791_v16, -inf }
 0x68f   :  { %797 = vmax.xlane.f32.xlu1 %v796_v19  ;;  %v787_v21 = vpop.f32.mrf.mxu0 }
 0x691   :  { %v5288_v22 = vpop.f32.mrf.mxu0 }
 0x6a0   :  { %974 = vrot.lane.b32.xlu1 %v6089_v1, %s5958_s2 }
 0x6a1   :  { %817 = vrot.lane.b32.xlu0 %v6085_v62, %s5959_s25 }
 0x6a5   :  { %867 = vrot.lane.b32.xlu0 %v6089_v1, %s5959_s25 }
 0x714   :  { %v795_v23 = vpop.xlane.xlu0 %794 }
 0x715   :  { %v799_v24 = vsub.f32 %v790_v10, %v795_v23 }
 0x717   :  { %v801_v27 = vmul.f32 1.442695, %v799_v24 }
 0x718   :  { %v818_v28 = vpop.permute.xlu0 %817  ;;  %v798_v29 = vpop.xlane.xlu1 %797 }
 0x719   :  { %5785 = vpow2.f32 %v801_v27  ;;  %v825_v30 = vsel %vm823_vm9, %v818_v28, 0  ;;  %v800_v31 = vsub.f32 %v791_v16, %v798_v29 }
 0x71a   :  { %5290 = vmatpush3.bf16.msra.mxu1 %v825_v30 }
 0x71b   :  { %v803_v32 = vmul.f32 1.442695, %v800_v31  ;;  %5301 = vmatprep.subr.bf16.mxu1 %v5946_v3 }
 0x71c   :  { %v868_v33 = vpop.permute.xlu0 %867  ;;  %v975_v50 = vpop.permute.xlu1 %974 }
 0x71d   :  { %5787 = vpow2.f32 %v803_v32  ;;  %v873_v34 = vsel %vm823_vm9, %v868_v33, 0  ;;  %v980_v6 = vsel %vm280_vm6, %v975_v50, 0  ;;  %v1144_v50 = vld [vmem:[#allocation4 + $0xc0] sm:$0xff] }
 0x71e   :  { %5296 = vmatpush3.bf16.msra.mxu0 %v873_v34 }
 0x71f   :  { %5307 = vmatprep.subr.bf16.mxu0 %v5946_v3 }
 0x726   :  { %v5786_v35 = vpop.eup %5785 }
 0x727   :  { %v805_v37 = vsel %vm792_vm8, %v5786_v35, 0.0 }
 0x728   :  { %806 = vadd.xlane.f32.xlu0 %v805_v37  ;;  %v915_v37 = vld [vmem:[#allocation4 + $0xb8] sm:$0xff] }
 0x72a   :  { %v5788_v38 = vpop.eup %5787 }
 0x72b   :  { %v808_v39 = vsel %vm792_vm8, %v5788_v38, 0.0 }
 0x72c   :  { %809 = vadd.xlane.f32.xlu0 %v808_v39 }
 0x742   :  { %924 = vrot.lane.b32.xlu0 %v6085_v62, %s5958_s2 }
 0x746   :  { %922 = vrot.lane.b32.xlu0 %v6085_v62, %s5960_s26 }
 0x74a   :  { %972 = vrot.lane.b32.xlu0 %v6089_v1, %s5960_s26 }
 0x7b1   :  { %v807_v40 = vpop.xlane.xlu0 %806 }
 0x7b2   :  { %5789 = vrcp.f32 %v807_v40  ;;  %v921_v40 = vpack.c.bf16 %v915_v37, %v915_v37 }
 0x7b5   :  { %v810_v41 = vpop.xlane.xlu0 %809 }
 0x7b6   :  { %5791 = vrcp.f32 %v810_v41 }
 0x7b9   :  { %v925_v44 = vpop.permute.xlu0 %924 }
 0x7ba   :  { %v930_v48 = vsel %vm280_vm6, %v925_v44, 0  ;;  %v1201_v44 = vsel %vm284_vm0, %v921_v40, 0 }
 0x7bd   :  { %v923_v52 = vpop.permute.xlu0 %922 }
 0x7bf   :  { %v5790_v42 = vpop.eup %5789 }
 0x7c0   :  { %v813_v43 = vmul.f32 %v5790_v42, %v5786_v35 }
 0x7c1   :  { %v973_v53 = vpop.permute.xlu0 %972 }
 0x7c2   :  { %v815_v45 = vpack.c.bf16 %v813_v43, %v813_v43 }
 0x7c3   :  { %v5792_v20 = vpop.eup %5791 }
 0x7c4   :  { %5292 = vmatmul.mubr.msk.bf16.vlgmr.msra.gmra.mxu1 %vm819_vm10, %v815_v45  ;;  %v814_v49 = vmul.f32 %v5792_v20, %v5788_v38 }
 0x7c5   :  { %5302 = vmatpush3.bf16.xpose.msra.mxu1 %v930_v48  ;;  %5303 = vmatprep.mubr.msk.bf16.mxu1 %vm5947_vm1, %v5946_v3 }
 0x7c6   :  { %v816_v51 = vpack.c.bf16 %v814_v49, %v814_v49  ;;  %5313 = vmatprep.subr.bf16.mxu1 %v5946_v3 }
 0x7c8   :  { %5298 = vmatmul.mubr.msk.bf16.vlgmr.msra.gmra.mxu0 %vm819_vm10, %v816_v51  ;;  %v1150_v51 = vpack.c.bf16 %v1144_v50, %v1144_v50 }
 0x7c9   :  { %5308 = vmatpush3.bf16.xpose.msra.mxu0 %v980_v6  ;;  %5309 = vmatprep.mubr.msk.bf16.mxu0 %vm5947_vm1, %v5946_v3 }
 0x7ca   :  { %5319 = vmatprep.subr.bf16.mxu0 %v5946_v3  ;;  %v1155_v6 = vsel %vm284_vm0, %v1150_v51, 0 }
 0x7cc   :  { %5304 = vmatmul.mubr.msk.bf16.vlgmr.msra.gmra.mxu1 %vm280_vm6, %v923_v52 }
 0x7cd   :  { %5315 = vmatprep.mubr.msk.bf16.mxu1 %vm5947_vm1, %v5946_v3 }
 0x7d0   :  { %5310 = vmatmul.mubr.msk.bf16.vlgmr.msra.gmra.mxu0 %vm280_vm6, %v973_v53 }
 0x7d1   :  { %5321 = vmatprep.mubr.msk.bf16.mxu0 %vm5947_vm1, %v5946_v3 }
 0x884   :  { %v861_v54 = vpop.f32.mrf.mxu1 }
 0x886   :  { %v5293_v55 = vpop.f32.mrf.mxu1 }
 0x888   :  { %v864_v56 = vpop.f32.mrf.mxu1  ;;  %v909_v57 = vpop.f32.mrf.mxu0 }
 0x889   :  { %v6141_v58 = vcombine.low %v861_v54, %v909_v57 }
 0x88a   :  { %v5294_v15 = vpop.f32.mrf.mxu1  ;;  %v5299_v59 = vpop.f32.mrf.mxu0 }
 0x88b   :  { %v920_v20 = vpack.c.bf16 %v6141_v58, %v6141_v58 }
 0x88c   :  { %v912_v60 = vpop.f32.mrf.mxu0  ;;  %v966_v61 = vpop.f32.mrf.mxu1 }
 0x88d   :  { %v1022_v63 = vmul.f32 0.35355338, %v966_v61 }
 0x88e   :  { %v5300_v0 = vpop.f32.mrf.mxu0  ;;  %v5305_v2 = vpop.f32.mrf.mxu1 }
 0x88f   :  { %v1024_v4 = vsel %vm792_vm8, %v1022_v63, -inf }
 0x890   :  { %1025 = vmax.xlane.f32.xlu0 %v1024_v4  ;;  %v969_v5 = vpop.f32.mrf.mxu1  ;;  %v1016_v8 = vpop.f32.mrf.mxu0 }
 0x891   :  { %v1023_v9 = vmul.f32 0.35355338, %v1016_v8 }
 0x892   :  { %v5306_v10 = vpop.f32.mrf.mxu1  ;;  %v5311_v11 = vpop.f32.mrf.mxu0 }
 0x893   :  { %v1027_v12 = vsel %vm792_vm8, %v1023_v9, -inf }
 0x894   :  { %1028 = vmax.xlane.f32.xlu1 %v1027_v12  ;;  %v1019_v13 = vpop.f32.mrf.mxu0 }
 0x896   :  { %v5312_v14 = vpop.f32.mrf.mxu0 }
 0x8a5   :  { %1096 = vrot.lane.b32.xlu1 %v6089_v1, %s5961_s27 }
 0x8a9   :  { %1245 = vrot.lane.b32.xlu1 %v6085_v62, %s5962_s28 }
 0x8ad   :  { %1243 = vrot.lane.b32.xlu1 %v6085_v62, %s5963_s29 }
 0x919   :  { %v1026_v16 = vpop.xlane.xlu0 %1025 }
 0x91a   :  { %v1030_v17 = vsub.f32 %v1022_v63, %v1026_v16 }
 0x91c   :  { %v1032_v18 = vmul.f32 1.442695, %v1030_v17 }
 0x91d   :  { %v1029_v19 = vpop.xlane.xlu1 %1028 }
 0x91e   :  { %5793 = vpow2.f32 %v1032_v18  ;;  %v1031_v21 = vsub.f32 %v1023_v9, %v1029_v19 }
 0x920   :  { %v1034_v22 = vmul.f32 1.442695, %v1031_v21 }
 0x921   :  { %v1097_v23 = vpop.permute.xlu1 %1096 }
 0x922   :  { %5795 = vpow2.f32 %v1034_v22  ;;  %v1102_v24 = vsel %vm823_vm9, %v1097_v23, 0 }
 0x923   :  { %5320 = vmatpush3.bf16.msra.mxu0 %v1102_v24 }
 0x924   :  { %5331 = vmatprep.subr.bf16.mxu0 %v5946_v3 }
 0x925   :  { %v1246_v56 = vpop.permute.xlu1 %1245 }
 0x926   :  { %v1251_v61 = vsel %vm280_vm6, %v1246_v56, 0 }
 0x929   :  { %v1244_v4 = vpop.permute.xlu1 %1243 }
 0x92b   :  { %v5794_v27 = vpop.eup %5793 }
 0x92c   :  { %v1036_v28 = vsel %vm792_vm8, %v5794_v27, 0.0 }
 0x92d   :  { %1037 = vadd.xlane.f32.xlu0 %v1036_v28 }
 0x92f   :  { %v5796_v29 = vpop.eup %5795 }
 0x930   :  { %v1039_v30 = vsel %vm792_vm8, %v5796_v29, 0.0 }
 0x931   :  { %1040 = vadd.xlane.f32.xlu0 %v1039_v30 }
 0x947   :  { %1048 = vrot.lane.b32.xlu0 %v6085_v62, %s5961_s27 }
 0x94b   :  { %1295 = vrot.lane.b32.xlu0 %v6089_v1, %s5962_s28 }
 0x94f   :  { %1293 = vrot.lane.b32.xlu0 %v6089_v1, %s5963_s29 }
 0x9b6   :  { %v1038_v31 = vpop.xlane.xlu0 %1037 }
 0x9b7   :  { %5797 = vrcp.f32 %v1038_v31 }
 0x9ba   :  { %v1041_v32 = vpop.xlane.xlu0 %1040 }
 0x9bb   :  { %5799 = vrcp.f32 %v1041_v32 }
 0x9be   :  { %v1049_v33 = vpop.permute.xlu0 %1048 }
 0x9bf   :  { %v1054_v34 = vsel %vm823_vm9, %v1049_v33, 0 }
 0x9c0   :  { %5314 = vmatpush3.bf16.msra.mxu1 %v1054_v34 }
 0x9c1   :  { %5325 = vmatprep.subr.bf16.mxu1 %v5946_v3 }
 0x9c2   :  { %v1296_v45 = vpop.permute.xlu0 %1295 }
 0x9c3   :  { %v1301_v48 = vsel %vm280_vm6, %v1296_v45, 0 }
 0x9c4   :  { %v5798_v35 = vpop.eup %5797 }
 0x9c5   :  { %v1044_v38 = vmul.f32 %v5798_v35, %v5794_v27 }
 0x9c6   :  { %v1294_v49 = vpop.permute.xlu0 %1293 }
 0x9c7   :  { %v1046_v39 = vpack.c.bf16 %v1044_v38, %v1044_v38 }
 0x9c8   :  { %v5800_v41 = vpop.eup %5799 }
 0x9c9   :  { %5316 = vmatmul.mubr.msk.bf16.vlgmr.msra.gmra.mxu1 %vm819_vm10, %v1046_v39  ;;  %v1045_v42 = vmul.f32 %v5800_v41, %v5796_v29 }
 0x9ca   :  { %5327 = vmatprep.mubr.msk.bf16.mxu1 %vm5947_vm1, %v5946_v3  ;;  %5326 = vmatpush3.bf16.msra.mxu1 %v1155_v6 }
 0x9cb   :  { %v1047_v43 = vpack.c.bf16 %v1045_v42, %v1045_v42  ;;  %5337 = vmatprep.subr.bf16.mxu1 %v5946_v3 }
 0x9cd   :  { %5322 = vmatmul.mubr.msk.bf16.vlgmr.msra.gmra.mxu0 %vm819_vm10, %v1047_v43 }
 0x9ce   :  { %5332 = vmatpush3.bf16.msra.mxu0 %v1201_v44  ;;  %5333 = vmatprep.mubr.msk.bf16.mxu0 %vm5947_vm1, %v5946_v3 }
 0x9cf   :  { %5343 = vmatprep.subr.bf16.mxu0 %v5946_v3 }
 0x9d5   :  { %5334 = vmatmul.mubr.msk.bf16.vlgmr.msra.gmra.mxu0 %vm280_vm6, %v920_v20 }
 0x9d6   :  { %5344 = vmatpush3.bf16.xpose.msra.mxu0 %v1301_v48  ;;  %5345 = vmatprep.mubr.msk.bf16.mxu0 %vm5947_vm1, %v5946_v3 }
 0x9d7   :  { %5355 = vmatprep.subr.bf16.mxu0 %v5946_v3 }
 0x9dd   :  { %5346 = vmatmul.mubr.msk.bf16.vlgmr.msra.gmra.mxu0 %vm280_vm6, %v1294_v49 }
 0x9de   :  { %5357 = vmatprep.mubr.msk.bf16.mxu0 %vm5947_vm1, %v5946_v3 }
 0xa89   :  { %v1090_v52 = vpop.f32.mrf.mxu1 }
 0xa8b   :  { %v5317_v53 = vpop.f32.mrf.mxu1 }
 0xa8d   :  { %v1093_v54 = vpop.f32.mrf.mxu1  ;;  %v1138_v55 = vpop.f32.mrf.mxu0 }
 0xa8e   :  { %v1147_v57 = vcombine.low %v1090_v52, %v1138_v55 }
 0xa8f   :  { %v5318_v58 = vpop.f32.mrf.mxu1  ;;  %v5323_v15 = vpop.f32.mrf.mxu0 }
 0xa90   :  { %v1149_v59 = vpack.c.bf16 %v1147_v57, %v1147_v57 }
 0xa91   :  { %v1141_v60 = vpop.f32.mrf.mxu0 }
 0xa92   :  { %5328 = vmatmul.mubr.msk.bf16.vlgmr.msra.gmra.mxu1 %vm280_vm6, %v1149_v59 }
 0xa93   :  { %5338 = vmatpush3.bf16.xpose.msra.mxu1 %v1251_v61  ;;  %v5324_v63 = vpop.f32.mrf.mxu0  ;;  %5339 = vmatprep.mubr.msk.bf16.mxu1 %vm5947_vm1, %v5946_v3 }
 0xa94   :  { %5349 = vmatprep.subr.bf16.mxu1 %v5946_v3 }
 0xa95   :  { %v6188_v0 = vpop.f32.mrf.mxu0 }
 0xa97   :  { %v5335_v2 = vpop.f32.mrf.mxu0 }
 0xa99   :  { %v1240_v5 = vpop.f32.mrf.mxu0 }
 0xa9a   :  { %5340 = vmatmul.mubr.msk.bf16.vlgmr.msra.gmra.mxu1 %vm280_vm6, %v1244_v4  ;;  %v1465_v4 = vld [vmem:[#allocation4 + $0xc8] sm:$0xff] }
 0xa9b   :  { %v5336_v8 = vpop.f32.mrf.mxu0  ;;  %5351 = vmatprep.mubr.msk.bf16.mxu1 %vm5947_vm1, %v5946_v3  ;;  %v1471_v5 = vpack.c.bf16 %v1465_v4, %v1465_v4 }
 0xa9d   :  { %v1337_v9 = vpop.f32.mrf.mxu0  ;;  %v1476_v8 = vsel %vm284_vm0, %v1471_v5, 0 }
 0xa9e   :  { %v1344_v10 = vmul.f32 0.35355338, %v1337_v9 }
 0xa9f   :  { %v5347_v11 = vpop.f32.mrf.mxu0 }
 0xaa0   :  { %v1348_v12 = vsel %vm792_vm8, %v1344_v10, -inf }
 0xaa1   :  { %1349 = vmax.xlane.f32.xlu0 %v1348_v12  ;;  %v1340_v13 = vpop.f32.mrf.mxu0 }
 0xaa3   :  { %v5348_v14 = vpop.f32.mrf.mxu0 }
 0xb2a   :  { %v1350_v16 = vpop.xlane.xlu0 %1349 }
 0xb2b   :  { %v1352_v17 = vsub.f32 %v1344_v10, %v1350_v16 }
 0xb2d   :  { %v1355_v18 = vmul.f32 1.442695, %v1352_v17 }
 0xb2f   :  { %5801 = vpow2.f32 %v1355_v18 }
 0xb3c   :  { %v5802_v30 = vpop.eup %5801 }
 0xb3d   :  { %v1360_v33 = vsel %vm792_vm8, %v5802_v30, 0.0 }
 0xb52   :  { %v6194_v19 = vpop.f32.mrf.mxu1 }
 0xb54   :  { %v5329_v21 = vpop.f32.mrf.mxu1 }
 0xb56   :  { %v1194_v22 = vpop.f32.mrf.mxu1 }
 0xb58   :  { %v5330_v23 = vpop.f32.mrf.mxu1 }
 0xb5a   :  { %v1287_v24 = vpop.f32.mrf.mxu1 }
 0xb5b   :  { %v1343_v27 = vmul.f32 0.35355338, %v1287_v24  ;;  %v1238_v24 = vadd.f32 %v6188_v0, %v6194_v19  ;;  %v6247_v0 = vcombine.high %v6063_v26, %v6063_v26  ;;  %v6251_v19 = vcombine.high %v6061_v25, %v6061_v25 }
 0xb5c   :  { %v5341_v28 = vpop.f32.mrf.mxu1 }
 0xb5d   :  { %v1345_v29 = vsel %vm792_vm8, %v1343_v27, -inf }
 0xb5e   :  { %1346 = vmax.xlane.f32.xlu1 %v1345_v29  ;;  %v1290_v31 = vpop.f32.mrf.mxu1 }
 0xb60   :  { %v5342_v32 = vpop.f32.mrf.mxu1 }
 0xb62   :  { %1361 = vadd.xlane.f32.xlu1 %v1360_v33 }
 0xb73   :  { %1417 = vrot.lane.b32.xlu1 %v6089_v1, %s5964_s30 }
 0xb77   :  { %1521 = vrot.lane.b32.xlu1 %v6085_v62, %s5965_s4 }
 0xb7b   :  { %1519 = vrot.lane.b32.xlu1 %v6085_v62, %s5966_s5 }
 0xbe7   :  { %v1347_v34 = vpop.xlane.xlu1 %1346 }
 0xbe8   :  { %v1351_v35 = vsub.f32 %v1343_v27, %v1347_v34 }
 0xbea   :  { %v1353_v37 = vmul.f32 1.442695, %v1351_v35 }
 0xbeb   :  { %v1362_v38 = vpop.xlane.xlu1 %1361 }
 0xbec   :  { %5803 = vpow2.f32 %v1353_v37 }
 0xbed   :  { %5805 = vrcp.f32 %v1362_v38 }
 0xbef   :  { %v1418_v39 = vpop.permute.xlu1 %1417 }
 0xbf0   :  { %v1423_v40 = vsel %vm823_vm9, %v1418_v39, 0 }
 0xbf1   :  { %5356 = vmatpush3.bf16.msra.mxu0 %v1423_v40 }
 0xbf2   :  { %5367 = vmatprep.subr.bf16.mxu0 %v5946_v3 }
 0xbf3   :  { %v1522_v45 = vpop.permute.xlu1 %1521 }
 0xbf4   :  { %v1527_v48 = vsel %vm280_vm6, %v1522_v45, 0 }
 0xbf7   :  { %v1520_v49 = vpop.permute.xlu1 %1519 }
 0xbf9   :  { %v5804_v41 = vpop.eup %5803 }
 0xbfa   :  { %v5806_v42 = vpop.eup %5805  ;;  %v1357_v43 = vsel %vm792_vm8, %v5804_v41, 0.0 }
 0xbfb   :  { %1358 = vadd.xlane.f32.xlu0 %v1357_v43  ;;  %v1366_v44 = vmul.f32 %v5806_v42, %v5802_v30  ;;  %v2015_v42 = vmul.f32 %v6251_v19, %v6251_v19 }
 0xbfd   :  { %v1368_v20 = vpack.c.bf16 %v1366_v44, %v1366_v44 }
 0xbff   :  { %5358 = vmatmul.mubr.msk.bf16.vlgmr.msra.gmra.mxu0 %vm819_vm10, %v1368_v20 }
 0xc00   :  { %5368 = vmatpush3.bf16.xpose.msra.mxu0 %v1527_v48  ;;  %5369 = vmatprep.mubr.msk.bf16.mxu0 %vm5947_vm1, %v5946_v3 }
 0xc01   :  { %5379 = vmatprep.subr.bf16.mxu0 %v5946_v3 }
 0xc07   :  { %5370 = vmatmul.mubr.msk.bf16.vlgmr.msra.gmra.mxu0 %vm280_vm6, %v1520_v49 }
 0xc08   :  { %5381 = vmatprep.mubr.msk.bf16.mxu0 %vm5947_vm1, %v5946_v3 }
 0xc11   :  { %1369 = vrot.lane.b32.xlu0 %v6085_v62, %s5964_s30 }
 0xc15   :  { %1571 = vrot.lane.b32.xlu0 %v6089_v1, %s5965_s4 }
 0xc19   :  { %1569 = vrot.lane.b32.xlu0 %v6089_v1, %s5966_s5 }
 0xc84   :  { %v1359_v50 = vpop.xlane.xlu0 %1358 }
 0xc85   :  { %5807 = vrcp.f32 %v1359_v50 }
 0xc88   :  { %v1370_v51 = vpop.permute.xlu0 %1369 }
 0xc89   :  { %v1375_v6 = vsel %vm823_vm9, %v1370_v51, 0 }
 0xc8a   :  { %5350 = vmatpush3.bf16.msra.mxu1 %v1375_v6 }
 0xc8b   :  { %5361 = vmatprep.subr.bf16.mxu1 %v5946_v3 }
 0xc8c   :  { %v1572_v11 = vpop.permute.xlu0 %1571 }
 0xc8d   :  { %v1577_v16 = vsel %vm280_vm6, %v1572_v11, 0 }
 0xc90   :  { %v1570_v18 = vpop.permute.xlu0 %1569 }
 0xc92   :  { %v5808_v52 = vpop.eup %5807 }
 0xc93   :  { %v1365_v53 = vmul.f32 %v5808_v52, %v5804_v41  ;;  %v2016_v41 = vmul.f32 %v6247_v0, %v6247_v0 }
 0xc95   :  { %v1367_v54 = vpack.c.bf16 %v1365_v53, %v1365_v53  ;;  %v2019_v43 = vcombine.low %v2015_v42, %v2016_v41  ;;  %v1912_v42 = vld [vmem:[#allocation4 + $0x138] sm:$0xff] }
 0xc97   :  { %5352 = vmatmul.mubr.msk.bf16.vlgmr.msra.gmra.mxu1 %vm819_vm10, %v1367_v54  ;;  %v2021_v44 = vsel %vm347_vm2, %v2019_v43, 0.0 }
 0xc98   :  { %5363 = vmatprep.mubr.msk.bf16.mxu1 %vm5947_vm1, %v5946_v3  ;;  %5362 = vmatpush3.bf16.msra.mxu1 %v1476_v8 }
 0xc99   :  { %5373 = vmatprep.subr.bf16.mxu1 %v5946_v3 }
 0xcbf   :  { %v1459_v55 = vpop.f32.mrf.mxu0 }
 0xcc1   :  { %v5359_v56 = vpop.f32.mrf.mxu0 }
 0xcc3   :  { %v1462_v57 = vpop.f32.mrf.mxu0 }
 0xcc5   :  { %v5360_v58 = vpop.f32.mrf.mxu0 }
 0xcc7   :  { %v1563_v15 = vpop.f32.mrf.mxu0 }
 0xcc8   :  { %v1619_v59 = vmul.f32 0.35355338, %v1563_v15 }
 0xcc9   :  { %v5371_v60 = vpop.f32.mrf.mxu0 }
 0xcca   :  { %v1621_v61 = vsel %vm792_vm8, %v1619_v59, -inf }
 0xccb   :  { %1622 = vmax.xlane.f32.xlu1 %v1621_v61  ;;  %v1566_v63 = vpop.f32.mrf.mxu0 }
 0xccd   :  { %v5372_v2 = vpop.f32.mrf.mxu0 }
 0xd54   :  { %v1623_v21 = vpop.xlane.xlu1 %1622 }
 0xd55   :  { %v1627_v22 = vsub.f32 %v1619_v59, %v1623_v21 }
 0xd57   :  { %v1411_v9 = vpop.f32.mrf.mxu1  ;;  %v1629_v23 = vmul.f32 1.442695, %v1627_v22 }
 0xd58   :  { %v1468_v10 = vcombine.low %v1411_v9, %v1459_v55  ;;  %v1741_v55 = vld [vmem:[#allocation4 + $0xd0] sm:$0xff] }
 0xd59   :  { %v5353_v12 = vpop.f32.mrf.mxu1  ;;  %5809 = vpow2.f32 %v1629_v23  ;;  %v1747_v56 = vpack.c.bf16 %v1741_v55, %v1741_v55 }
 0xd5a   :  { %v1470_v13 = vpack.c.bf16 %v1468_v10, %v1468_v10 }
 0xd5b   :  { %v1414_v14 = vpop.f32.mrf.mxu1  ;;  %v1752_v57 = vsel %vm284_vm0, %v1747_v56, 0 }
 0xd5c   :  { %5364 = vmatmul.mubr.msk.bf16.vlgmr.msra.gmra.mxu1 %vm280_vm6, %v1470_v13 }
 0xd5d   :  { %5374 = vmatpush3.bf16.xpose.msra.mxu1 %v1577_v16  ;;  %v5354_v17 = vpop.f32.mrf.mxu1  ;;  %5375 = vmatprep.mubr.msk.bf16.mxu1 %vm5947_vm1, %v5946_v3  ;;  %v5000_v16 = vld [vmem:[#allocation4 + $0xd8] ss:$0 sm:$0xff] }
 0xd5e   :  { %5385 = vmatprep.subr.bf16.mxu1 %v5946_v3 }
 0xd64   :  { %5376 = vmatmul.mubr.msk.bf16.vlgmr.msra.gmra.mxu1 %vm280_vm6, %v1570_v18 }
 0xd65   :  { %5387 = vmatprep.mubr.msk.bf16.mxu1 %vm5947_vm1, %v5946_v3 }
 0xd66   :  { %v5810_v37 = vpop.eup %5809 }
 0xd67   :  { %v1633_v40 = vsel %vm792_vm8, %v5810_v37, 0.0 }
 0xe1c   :  { %v1512_v27 = vpop.f32.mrf.mxu1 }
 0xe1d   :  { %v6239_v28 = vadd.f32 %v1512_v27, %v1238_v24 }
 0xe1e   :  { %v5365_v29 = vpop.f32.mrf.mxu1 }
 0xe20   :  { %v1515_v30 = vpop.f32.mrf.mxu1 }
 0xe22   :  { %v5366_v31 = vpop.f32.mrf.mxu1 }
 0xe24   :  { %v1613_v32 = vpop.f32.mrf.mxu1 }
 0xe25   :  { %v1620_v33 = vmul.f32 0.35355338, %v1613_v32 }
 0xe26   :  { %v5377_v34 = vpop.f32.mrf.mxu1 }
 0xe27   :  { %v1624_v35 = vsel %vm792_vm8, %v1620_v33, -inf  ;;  %v1850_v34 = vld [vmem:[#allocation4 + $0x100] sm:$0xff] }
 0xe28   :  { %1625 = vmax.xlane.f32.xlu0 %v1624_v35  ;;  %v1616_v38 = vpop.f32.mrf.mxu1  ;;  %v1847_v35 = vld [vmem:[#allocation4 + $0xe8] sm:$0xff] }
 0xe2a   :  { %v5378_v39 = vpop.f32.mrf.mxu1 }
 0xe2b   :  { %v1914_v39 = vld [vmem:[#allocation4 + $0x148] sm:$0xff] }
 0xe2c   :  { %1634 = vadd.xlane.f32.xlu0 %v1633_v40  ;;  %v1911_v40 = vld [vmem:[#allocation4 + $0x130] sm:$0xff] }
 0xe2d   :  { %v1918_v43 = vpack.c.bf16 %v1912_v42, %v1911_v40 }
 0xe42   :  { %1645 = vrot.lane.b32.xlu0 %v6085_v62, %s5967_s6 }
 0xe61   :  { %2022 = vadd.xlane.f32.xlu0 %v2021_v44 }
 0xeb1   :  { %v1626_v45 = vpop.xlane.xlu0 %1625 }
 0xeb2   :  { %v1628_v62 = vsub.f32 %v1620_v33, %v1626_v45  ;;  %v1849_v33 = vld [vmem:[#allocation4 + $0xf8] sm:$0xff] }
 0xeb4   :  { %v1631_v20 = vmul.f32 1.442695, %v1628_v62 }
 0xeb5   :  { %v1635_v48 = vpop.xlane.xlu0 %1634 }
 0xeb6   :  { %5811 = vpow2.f32 %v1631_v20 }
 0xeb7   :  { %5813 = vrcp.f32 %v1635_v48 }
 0xeb9   :  { %v1646_v49 = vpop.permute.xlu0 %1645 }
 0xeba   :  { %v1651_v50 = vsel %vm823_vm9, %v1646_v49, 0 }
 0xebb   :  { %5380 = vmatpush3.bf16.msra.mxu0 %v1651_v50 }
 0xebc   :  { %5391 = vmatprep.subr.bf16.mxu0 %v5946_v3 }
 0xec3   :  { %v5812_v51 = vpop.eup %5811 }
 0xec4   :  { %v5814_v6 = vpop.eup %5813  ;;  %v1636_v52 = vsel %vm792_vm8, %v5812_v51, 0.0 }
 0xec5   :  { %1637 = vadd.xlane.f32.xlu1 %v1636_v52  ;;  %v1641_v53 = vmul.f32 %v5814_v6, %v5810_v37  ;;  %v1857_v37 = vpack.c.bf16 %v1850_v34, %v1849_v33 }
 0xec7   :  { %v1643_v54 = vpack.c.bf16 %v1641_v53, %v1641_v53 }
 0xec9   :  { %5382 = vmatmul.mubr.msk.bf16.vlgmr.msra.gmra.mxu0 %vm819_vm10, %v1643_v54 }
 0xeca   :  { %5393 = vmatprep.mubr.msk.bf16.mxu0 %vm5947_vm1, %v5946_v3  ;;  %5392 = vmatpush3.bf16.msra.mxu0 %v1752_v57  ;;  %v5007_v57 = vld [vmem:[#allocation4 + $0x160] ss:$0 sm:$0xff] }
 0xecb   :  { %5405 = vmatprep.subr.bf16.mxu0 %v5946_v3 }
 0xed6   :  { %1693 = vrot.lane.b32.xlu1 %v6089_v1, %s5967_s6 }
 0xeea   :  { %v2023_v44 = vpop.xlane.xlu0 %2022 }
 0xeeb   :  { %v2024_v45 = vmul.f32 0.03125, %v2023_v44 }
 0xeed   :  { %v2025_v62 = vadd.f32 1e-06, %v2024_v45 }
 0xf4e   :  { %v1638_v58 = vpop.xlane.xlu1 %1637 }
 0xf4f   :  { %5815 = vrcp.f32 %v1638_v58 }
 0xf50   :  { %5817 = vrsqrt.f32 %v2025_v62 }
 0xf52   :  { %v1694_v15 = vpop.permute.xlu1 %1693 }
 0xf53   :  { %v1699_v59 = vsel %vm823_vm9, %v1694_v15, 0 }
 0xf54   :  { %5386 = vmatpush3.bf16.msra.mxu1 %v1699_v59  ;;  %v2052_v59 = vcombine.high %v5007_v57, %v5007_v57 }
 0xf55   :  { %5397 = vmatprep.subr.bf16.mxu1 %v5946_v3 }
 0xf5c   :  { %v5816_v60 = vpop.eup %5815 }
 0xf5d   :  { %v1642_v61 = vmul.f32 %v5816_v60, %v5812_v51  ;;  %v5818_v50 = vpop.eup %5817  ;;  %v5001_v51 = vld [vmem:[#allocation4 + $0xe0] ss:$0 sm:$0xff] }
 0xf5e   :  { %v2034_v52 = vrot.slane %v5818_v50, %v6073_v46  ;;  %v2041_v53 = vrot.slane %v5818_v50, %v6076_v47  ;;  %v1843_v56 = vcombine.high %v5001_v51, %v5001_v51 }
 0xf5f   :  { %v1644_v63 = vpack.c.bf16 %v1642_v61, %v1642_v61 }
 0xf61   :  { %5388 = vmatmul.mubr.msk.bf16.vlgmr.msra.gmra.mxu1 %vm819_vm10, %v1644_v63  ;;  %v2058_v63 = vld [vmem:[#allocation4 + $0x178] sm:$0xff] }
 0xf62   :  { %5401 = vmatprep.mubr.msk.bf16.mxu1 %vm5947_vm1, %v5946_v3  ;;  %5398 = vmatpush3.bf16.msra.mxu1 %v1857_v37 }
 0xf63   :  { %5399 = vmatprep.subr.bf16.mxu1 %v5946_v3 }
 0xf89   :  { %v1687_v1 = vpop.f32.mrf.mxu0 }
 0xf8b   :  { %v5383_v2 = vpop.f32.mrf.mxu0 }
 0xf8c   :  { %v2044_v2 = vmul.f32 %v2034_v52, %v6251_v19 }
 0xf8d   :  { %v1690_v4 = vpop.f32.mrf.mxu0 }
 0xf8e   :  { %v2045_v4 = vmul.f32 %v2041_v53, %v6247_v0 }
 0xf8f   :  { %v5384_v5 = vpop.f32.mrf.mxu0 }
0x1021   :  { %v1735_v8 = vpop.f32.mrf.mxu1 }
0x1022   :  { %v1744_v9 = vcombine.low %v1687_v1, %v1735_v8  ;;  %v2059_v1 = vld [vmem:[#allocation4 + $0x180] sm:$0xff] }
0x1023   :  { %v5389_v10 = vpop.f32.mrf.mxu1  ;;  %v2066_v8 = vpack.c.bf16 %v2059_v1, %v2058_v63 }
0x1024   :  { %v1746_v11 = vpack.c.bf16 %v1744_v9, %v1744_v9  ;;  %v2056_v10 = vld [vmem:[#allocation4 + $0x168] sm:$0xff] }
0x1025   :  { %v1738_v12 = vpop.f32.mrf.mxu1 }
0x1026   :  { %5394 = vmatmul.mubr.msk.bf16.vlgmr.msra.gmra.mxu0 %vm280_vm6, %v1746_v11  ;;  %v2057_v11 = vld [vmem:[#allocation4 + $0x170] sm:$0xff]  ;;  %v2054_v12 = vmul.f32 %v5007_v57, %v2044_v2 }
0x1027   :  { %v5390_v13 = vpop.f32.mrf.mxu1  ;;  %5413 = vmatprep.mubr.msk.bf16.mxu0 %vm5947_vm1, %v5946_v3 }
0x1028   :  { %v2055_v13 = vmul.f32 %v2052_v59, %v2045_v4 }
0x10e6   :  { %v1788_v14 = vpop.f32.mrf.mxu0 }
0x10e7   :  { %v1794_v17 = vadd.f32 %v1788_v14, %v6239_v28  ;;  %v2065_v14 = vpack.c.bf16 %v2057_v11, %v2056_v10 }
0x10e8   :  { %v5395_v18 = vpop.f32.mrf.mxu0 }
0x10e9   :  { %v1800_v21 = vadd.f32 %v5000_v16, %v1794_v17  ;;  %v2062_v16 = vcombine.low %v2054_v12, %v2055_v13  ;;  %v1909_v18 = vld [vmem:[#allocation4 + $0x120] sm:$0xff] }
0x10ea   :  { %v1791_v22 = vpop.f32.mrf.mxu0 }
0x10eb   :  { %v1802_v23 = vcombine.high %v1800_v21, %v1800_v21  ;;  %v6278_v24 = vadd.f32 %v1800_v21, %v6061_v25  ;;  %v1848_v25 = vld [vmem:[#allocation4 + $0xf0] sm:$0xff]  ;;  %v2064_v17 = vpack.c.bf16 %v2062_v16, %v2062_v16  ;;  %v1910_v21 = vld [vmem:[#allocation4 + $0x128] sm:$0xff] }
0x10ec   :  { %v5396_v27 = vpop.f32.mrf.mxu0  ;;  %v1856_v38 = vpack.c.bf16 %v1848_v25, %v1847_v35  ;;  %v1917_v22 = vpack.c.bf16 %v1910_v21, %v1909_v18 }
0x10ed   :  { %v6281_v29 = vadd.f32 %v1802_v23, %v6063_v26  ;;  %v1806_v30 = vmul.f32 %v6278_v24, %v6278_v24  ;;  %v1913_v26 = vld [vmem:[#allocation4 + $0x140] sm:$0xff]  ;;  %v1907_v23 = vld [vmem:[#allocation4 + $0x110] sm:$0xff]  ;;  %v1908_v27 = vld [vmem:[#allocation4 + $0x118] sm:$0xff] }
0x10ee   :  { %5400 = vmatpush3.bf16.msra.mxu1 %v1856_v38  ;;  %v1919_v41 = vpack.c.bf16 %v1914_v39, %v1913_v26  ;;  %v5008_v38 = vld [vmem:[#allocation4 + $0x188] ss:$0 sm:$0xff] }
0x10ef   :  { %v1807_v31 = vmul.f32 %v6281_v29, %v6281_v29  ;;  %5417 = vmatprep.subr.bf16.mxu1 %v5946_v3 }
0x10f0   :  { %5406 = vmatpush3.bf16.msra.mxu0 %v1919_v41 }
0x10f1   :  { %v1810_v32 = vcombine.low %v1806_v30, %v1807_v31  ;;  %5407 = vmatprep.subr.bf16.mxu0 %v5946_v3  ;;  %v1916_v30 = vpack.c.bf16 %v1908_v27, %v1907_v23  ;;  %v5002_v31 = vld [vmem:[#allocation4 + $0x108] ss:$0 sm:$0xff] }
0x10f3   :  { %v1812_v28 = vsel %vm347_vm2, %v1810_v32, 0.0 }
0x10f4   :  { %1813 = vadd.xlane.f32.xlu1 %v1812_v28  ;;  %5408 = vmatpush3.bf16.msra.mxu0 %v1918_v43 }
0x10f5   :  { %5409 = vmatprep.subr.bf16.mxu0 %v5946_v3 }
0x10f8   :  { %5410 = vmatpush3.bf16.msra.mxu0 %v1917_v22 }
0x10f9   :  { %5411 = vmatprep.subr.bf16.mxu0 %v5946_v3 }
0x10fc   :  { %5412 = vmatpush3.bf16.msra.mxu0 %v1916_v30 }
0x10fd   :  { %5431 = vmatprep.subr.bf16.mxu0 %v5946_v3 }
0x117d   :  { %v1814_v20 = vpop.xlane.xlu1 %1813 }
0x117e   :  { %v1815_v48 = vmul.f32 0.03125, %v1814_v20 }
0x1180   :  { %v1816_v49 = vadd.f32 1e-06, %v1815_v48 }
0x1182   :  { %5819 = vrsqrt.f32 %v1816_v49 }
0x118f   :  { %v5820_v6 = vpop.eup %5819 }
0x1190   :  { %v1825_v54 = vrot.slane %v5820_v6, %v6073_v46  ;;  %v1832_v55 = vrot.slane %v5820_v6, %v6076_v47 }
0x1192   :  { %v1835_v58 = vmul.f32 %v1825_v54, %v6278_v24  ;;  %v1836_v15 = vmul.f32 %v1832_v55, %v6281_v29 }
0x1194   :  { %v1845_v60 = vmul.f32 %v5001_v51, %v1835_v58  ;;  %v1846_v61 = vmul.f32 %v1843_v56, %v1836_v15 }
0x1196   :  { %v1853_v5 = vcombine.low %v1845_v60, %v1846_v61 }
0x1198   :  { %v1855_v9 = vpack.c.bf16 %v1853_v5, %v1853_v5 }
0x119a   :  { %5402 = vmatmul.mubr.msk.bf16.vlgmr.msra.gmra.mxu1 %vm347_vm2, %v1855_v9 }
0x119b   :  { %5418 = vmatpush3.bf16.msra.mxu1 %v2066_v8  ;;  %5421 = vmatprep.mubr.msk.bf16.mxu1 %vm5947_vm1, %v5946_v3 }
0x119c   :  { %5419 = vmatprep.subr.bf16.mxu1 %v5946_v3 }
0x119f   :  { %5420 = vmatpush3.bf16.msra.mxu1 %v2065_v14 }
0x11a0   :  { %5425 = vmatprep.subr.bf16.mxu1 %v5946_v3 }
0x11a2   :  { %5422 = vmatmul.mubr.msk.bf16.vlgmr.msra.gmra.mxu1 %vm347_vm2, %v2064_v17 }
0x11a3   :  { %5427 = vmatprep.mubr.msk.bf16.mxu1 %vm5947_vm1, %v5946_v3 }
0x125a   :  { %v1900_v32 = vpop.f32.mrf.mxu1 }
0x125b   :  { %v1901_v28 = vadd.f32 %v5002_v31, %v1900_v32 }
0x125c   :  { %v5403_v33 = vpop.f32.mrf.mxu1 }
0x125d   :  { %v1906_v34 = vmax.f32 %v1901_v28, 0.0 }
0x125e   :  { %v1903_v35 = vpop.f32.mrf.mxu1 }
0x125f   :  { %v1915_v37 = vpack.c.bf16 %v1906_v34, %v1906_v34 }
0x1260   :  { %v5404_v25 = vpop.f32.mrf.mxu1 }
0x1261   :  { %5414 = vmatmul.mubr.msk.bf16.vlgmr.msra.gmra.mxu0 %vm1925_vm11, %v1915_v37 }
0x1262   :  { %v2109_v26 = vpop.f32.mrf.mxu1  ;;  %5433 = vmatprep.mubr.msk.bf16.mxu0 %vm5947_vm1, %v5946_v3 }
0x1263   :  { %v2110_v39 = vadd.f32 %v5008_v38, %v2109_v26 }
0x1264   :  { %v5423_v40 = vpop.f32.mrf.mxu1 }
0x1265   :  { %v2116_v41 = vcombine.high %v2110_v39, %v2110_v39  ;;  %v6313_v42 = vpack.c.bf16 %v2110_v39, %v2110_v39 }
0x1266   :  { %v2112_v43 = vpop.f32.mrf.mxu1 }
0x1267   :  { %v6315_v44 = vpack.c.bf16 %v2116_v41, %v2116_v41  ;;  %2121 = vrot.lane.b32.xlu0 %v6313_v42, %s5957_s1 }
0x1268   :  { %v5424_v45 = vpop.f32.mrf.mxu1 }
0x1269   :  { %2170 = vrot.lane.b32.xlu1 %v6315_v44, %s5957_s1 }
0x12d9   :  { %v2122_v62 = vpop.permute.xlu0 %2121 }
0x12da   :  { %v2127_v20 = vsel %vm280_vm6, %v2122_v62, 0 }
0x12db   :  { %5426 = vmatpush3.bf16.xpose.msra.mxu1 %v2127_v20  ;;  %v2171_v48 = vpop.permute.xlu1 %2170 }
0x12dc   :  { %v2176_v49 = vsel %vm280_vm6, %v2171_v48, 0  ;;  %5437 = vmatprep.subr.bf16.mxu1 %v5946_v3 }
0x12dd   :  { %5432 = vmatpush3.bf16.xpose.msra.mxu0 %v2176_v49 }
0x12de   :  { %5443 = vmatprep.subr.bf16.mxu0 %v5946_v3 }
0x12e2   :  { %5428 = vmatmul.mubr.msk.bf16.vlgmr.msra.gmra.mxu1 %vm280_vm6, %v6313_v42 }
0x12e3   :  { %5439 = vmatprep.mubr.msk.bf16.mxu1 %vm5947_vm1, %v5946_v3 }
0x12e4   :  { %5434 = vmatmul.mubr.msk.bf16.vlgmr.msra.gmra.mxu0 %vm280_vm6, %v6315_v44 }
0x12e5   :  { %5445 = vmatprep.mubr.msk.bf16.mxu0 %vm5947_vm1, %v5946_v3 }
0x1321   :  { %v6333_v50 = vpop.f32.mrf.mxu0 }
0x1323   :  { %v5415_v51 = vpop.f32.mrf.mxu0 }
0x1325   :  { %v1966_v6 = vpop.f32.mrf.mxu0 }
0x1327   :  { %v5416_v52 = vpop.f32.mrf.mxu0 }
0x13a2   :  { %v2163_v53 = vpop.f32.mrf.mxu1 }
0x13a3   :  { %v2218_v55 = vmul.f32 0.35355338, %v2163_v53 }
0x13a4   :  { %v5429_v56 = vpop.f32.mrf.mxu1  ;;  %v2212_v57 = vpop.f32.mrf.mxu0 }
0x13a5   :  { %v2219_v58 = vmul.f32 0.35355338, %v2212_v57  ;;  %v2222_v15 = vsel %vm6337_vm12, %v2218_v55, -1e+09 }
0x13a6   :  { %v2166_v59 = vpop.f32.mrf.mxu1  ;;  %v5435_v60 = vpop.f32.mrf.mxu0  ;;  %v2224_v61 = vsel %vm792_vm8, %v2222_v15, -inf }
0x13a7   :  { %2225 = vmax.xlane.f32.xlu1 %v2224_v61  ;;  %v2223_v63 = vsel %vm6337_vm12, %v2219_v58, -1e+09 }
0x13a8   :  { %v5430_v1 = vpop.f32.mrf.mxu1  ;;  %v2215_v7 = vpop.f32.mrf.mxu0  ;;  %v2227_v36 = vsel %vm792_vm8, %v2223_v63, -inf }
0x13a9   :  { %2228 = vmax.xlane.f32.xlu0 %v2227_v36 }
0x13aa   :  { %v5436_v2 = vpop.f32.mrf.mxu0 }
0x13b8   :  { %2296 = vrot.lane.b32.xlu1 %v6315_v44, %s5959_s25 }
0x13bf   :  { %2248 = vrot.lane.b32.xlu0 %v6313_v42, %s5959_s25 }
0x1430   :  { %v2226_v4 = vpop.xlane.xlu1 %2225 }
0x1431   :  { %v2230_v5 = vsub.f32 %v2222_v15, %v2226_v4 }
0x1432   :  { %v2229_v8 = vpop.xlane.xlu0 %2228 }
0x1433   :  { %v2232_v9 = vmul.f32 1.442695, %v2230_v5  ;;  %v2231_v10 = vsub.f32 %v2223_v63, %v2229_v8 }
0x1434   :  { %v2297_v11 = vpop.permute.xlu1 %2296 }
0x1435   :  { %5821 = vpow2.f32 %v2232_v9  ;;  %v2234_v12 = vmul.f32 1.442695, %v2231_v10  ;;  %v2302_v13 = vsel %vm823_vm9, %v2297_v11, 0 }
0x1436   :  { %5444 = vmatpush3.bf16.msra.mxu0 %v2302_v13  ;;  %v2249_v14 = vpop.permute.xlu0 %2248 }
0x1437   :  { %5823 = vpow2.f32 %v2234_v12  ;;  %v2254_v16 = vsel %vm823_vm9, %v2249_v14, 0  ;;  %5455 = vmatprep.subr.bf16.mxu0 %v5946_v3 }
0x1438   :  { %5438 = vmatpush3.bf16.msra.mxu1 %v2254_v16 }
0x1439   :  { %5449 = vmatprep.subr.bf16.mxu1 %v5946_v3 }
0x1442   :  { %v5822_v17 = vpop.eup %5821 }
0x1443   :  { %v2236_v18 = vsel %vm792_vm8, %v5822_v17, 0.0 }
0x1444   :  { %v5824_v21 = vpop.eup %5823  ;;  %2237 = vadd.xlane.f32.xlu0 %v2236_v18 }
0x1445   :  { %v2239_v22 = vsel %vm792_vm8, %v5824_v21, 0.0 }
0x1446   :  { %2240 = vadd.xlane.f32.xlu1 %v2239_v22 }
0x1457   :  { %2353 = vrot.lane.b32.xlu1 %v6313_v42, %s5958_s2 }
0x145a   :  { %2403 = vrot.lane.b32.xlu0 %v6315_v44, %s5958_s2 }
0x145b   :  { %2351 = vrot.lane.b32.xlu1 %v6313_v42, %s5960_s26 }
0x145e   :  { %2401 = vrot.lane.b32.xlu0 %v6315_v44, %s5960_s26 }
0x14cd   :  { %v2238_v23 = vpop.xlane.xlu0 %2237 }
0x14ce   :  { %5825 = vrcp.f32 %v2238_v23  ;;  %v2344_v23 = vld [vmem:[#allocation4 + $0x190] sm:$0xff] }
0x14cf   :  { %v2241_v27 = vpop.xlane.xlu1 %2240 }
0x14d0   :  { %5827 = vrcp.f32 %v2241_v27 }
0x14d1   :  { %v2404_v35 = vpop.permute.xlu0 %2403 }
0x14d2   :  { %v2409_v38 = vsel %vm280_vm6, %v2404_v35, 0 }
0x14d3   :  { %v2354_v28 = vpop.permute.xlu1 %2353 }
0x14d4   :  { %v2359_v37 = vsel %vm280_vm6, %v2354_v28, 0 }
0x14d5   :  { %v2402_v39 = vpop.permute.xlu0 %2401 }
0x14d7   :  { %v2352_v26 = vpop.permute.xlu1 %2351 }
0x14db   :  { %v5826_v30 = vpop.eup %5825 }
0x14dc   :  { %v2244_v31 = vmul.f32 %v5826_v30, %v5822_v17 }
0x14dd   :  { %v5828_v32 = vpop.eup %5827 }
0x14de   :  { %v2246_v33 = vpack.c.bf16 %v2244_v31, %v2244_v31  ;;  %v2245_v34 = vmul.f32 %v5828_v32, %v5824_v21  ;;  %v2350_v31 = vpack.c.bf16 %v2344_v23, %v2344_v23 }
0x14e0   :  { %5440 = vmatmul.mubr.msk.bf16.vlgmr.msra.gmra.mxu1 %vm819_vm10, %v2246_v33  ;;  %v2247_v25 = vpack.c.bf16 %v2245_v34, %v2245_v34  ;;  %v2632_v35 = vsel %vm284_vm0, %v2350_v31, 0 }
0x14e1   :  { %5450 = vmatpush3.bf16.xpose.msra.mxu1 %v2359_v37  ;;  %5451 = vmatprep.mubr.msk.bf16.mxu1 %vm5947_vm1, %v5946_v3 }
0x14e2   :  { %5446 = vmatmul.mubr.msk.bf16.vlgmr.msra.gmra.mxu0 %vm819_vm10, %v2247_v25  ;;  %5461 = vmatprep.subr.bf16.mxu1 %v5946_v3 }
0x14e3   :  { %5456 = vmatpush3.bf16.xpose.msra.mxu0 %v2409_v38  ;;  %5457 = vmatprep.mubr.msk.bf16.mxu0 %vm5947_vm1, %v5946_v3 }
0x14e4   :  { %5467 = vmatprep.subr.bf16.mxu0 %v5946_v3 }
0x14e8   :  { %5452 = vmatmul.mubr.msk.bf16.vlgmr.msra.gmra.mxu1 %vm280_vm6, %v2352_v26 }
0x14e9   :  { %5463 = vmatprep.mubr.msk.bf16.mxu1 %vm5947_vm1, %v5946_v3 }
0x14ea   :  { %5458 = vmatmul.mubr.msk.bf16.vlgmr.msra.gmra.mxu0 %vm280_vm6, %v2402_v39  ;;  %v2575_v39 = vld [vmem:[#allocation4 + $0x198] sm:$0xff] }
0x14eb   :  { %5469 = vmatprep.mubr.msk.bf16.mxu0 %vm5947_vm1, %v5946_v3 }
0x15a0   :  { %v2290_v40 = vpop.f32.mrf.mxu1 }
0x15a2   :  { %v5441_v41 = vpop.f32.mrf.mxu1  ;;  %v2338_v43 = vpop.f32.mrf.mxu0 }
0x15a3   :  { %v6381_v45 = vcombine.low %v2290_v40, %v2338_v43  ;;  %v2581_v40 = vpack.c.bf16 %v2575_v39, %v2575_v39 }
0x15a4   :  { %v2293_v62 = vpop.f32.mrf.mxu1  ;;  %v5447_v20 = vpop.f32.mrf.mxu0 }
0x15a5   :  { %v2349_v25 = vpack.c.bf16 %v6381_v45, %v6381_v45  ;;  %v2586_v41 = vsel %vm284_vm0, %v2581_v40, 0 }
0x15a6   :  { %v5442_v48 = vpop.f32.mrf.mxu1  ;;  %v2341_v49 = vpop.f32.mrf.mxu0 }
0x15a8   :  { %v5448_v51 = vpop.f32.mrf.mxu0  ;;  %v2395_v6 = vpop.f32.mrf.mxu1 }
0x15a9   :  { %v2451_v52 = vmul.f32 0.35355338, %v2395_v6 }
0x15aa   :  { %v5453_v53 = vpop.f32.mrf.mxu1  ;;  %v2445_v55 = vpop.f32.mrf.mxu0 }
0x15ab   :  { %v2452_v56 = vmul.f32 0.35355338, %v2445_v55  ;;  %v2453_v57 = vsel %vm6337_vm12, %v2451_v52, -1e+09 }
0x15ac   :  { %v2398_v58 = vpop.f32.mrf.mxu1  ;;  %v5459_v15 = vpop.f32.mrf.mxu0  ;;  %v2455_v59 = vsel %vm792_vm8, %v2453_v57, -inf }
0x15ad   :  { %2456 = vmax.xlane.f32.xlu1 %v2455_v59  ;;  %v2454_v60 = vsel %vm6337_vm12, %v2452_v56, -1e+09 }
0x15ae   :  { %v5454_v61 = vpop.f32.mrf.mxu1  ;;  %v2448_v63 = vpop.f32.mrf.mxu0  ;;  %v2458_v1 = vsel %vm792_vm8, %v2454_v60, -inf }
0x15af   :  { %2459 = vmax.xlane.f32.xlu0 %v2458_v1 }
0x15b0   :  { %v5460_v7 = vpop.f32.mrf.mxu0 }
0x1636   :  { %v2457_v36 = vpop.xlane.xlu1 %2456 }
0x1637   :  { %v2461_v2 = vsub.f32 %v2453_v57, %v2457_v36 }
0x1638   :  { %v2460_v4 = vpop.xlane.xlu0 %2459 }
0x1639   :  { %v2463_v5 = vmul.f32 1.442695, %v2461_v2  ;;  %v2462_v8 = vsub.f32 %v2454_v60, %v2460_v4 }
0x163b   :  { %5829 = vpow2.f32 %v2463_v5  ;;  %v2465_v9 = vmul.f32 1.442695, %v2462_v8 }
0x163d   :  { %5831 = vpow2.f32 %v2465_v9 }
0x1648   :  { %v5830_v10 = vpop.eup %5829 }
0x1649   :  { %v2467_v11 = vsel %vm792_vm8, %v5830_v10, 0.0 }
0x164a   :  { %v5832_v12 = vpop.eup %5831  ;;  %2468 = vadd.xlane.f32.xlu0 %v2467_v11 }
0x164b   :  { %v2470_v13 = vsel %vm792_vm8, %v5832_v12, 0.0 }
0x164c   :  { %2471 = vadd.xlane.f32.xlu1 %v2470_v13 }
0x165d   :  { %2527 = vrot.lane.b32.xlu1 %v6315_v44, %s5961_s27 }
0x1660   :  { %2479 = vrot.lane.b32.xlu0 %v6313_v42, %s5961_s27 }
0x1661   :  { %2676 = vrot.lane.b32.xlu1 %v6313_v42, %s5962_s28 }
0x1664   :  { %2726 = vrot.lane.b32.xlu0 %v6315_v44, %s5962_s28 }
0x1665   :  { %2674 = vrot.lane.b32.xlu1 %v6313_v42, %s5963_s29 }
0x1668   :  { %2724 = vrot.lane.b32.xlu0 %v6315_v44, %s5963_s29 }
0x16d3   :  { %v2469_v14 = vpop.xlane.xlu0 %2468 }
0x16d4   :  { %5833 = vrcp.f32 %v2469_v14 }
0x16d5   :  { %v2472_v16 = vpop.xlane.xlu1 %2471 }
0x16d6   :  { %5835 = vrcp.f32 %v2472_v16 }
0x16d7   :  { %v2480_v17 = vpop.permute.xlu0 %2479 }
0x16d8   :  { %v2485_v18 = vsel %vm823_vm9, %v2480_v17, 0 }
0x16d9   :  { %v2528_v21 = vpop.permute.xlu1 %2527  ;;  %5462 = vmatpush3.bf16.msra.mxu1 %v2485_v18 }
0x16da   :  { %v2533_v22 = vsel %vm823_vm9, %v2528_v21, 0  ;;  %5473 = vmatprep.subr.bf16.mxu1 %v5946_v3 }
0x16db   :  { %5468 = vmatpush3.bf16.msra.mxu0 %v2533_v22  ;;  %v2727_v37 = vpop.permute.xlu0 %2726 }
0x16dc   :  { %5479 = vmatprep.subr.bf16.mxu0 %v5946_v3  ;;  %v2732_v38 = vsel %vm280_vm6, %v2727_v37, 0 }
0x16dd   :  { %v2677_v20 = vpop.permute.xlu1 %2676 }
0x16de   :  { %v2682_v55 = vsel %vm280_vm6, %v2677_v20, 0 }
0x16df   :  { %v2725_v26 = vpop.permute.xlu0 %2724 }
0x16e1   :  { %v5834_v27 = vpop.eup %5833  ;;  %v2675_v15 = vpop.permute.xlu1 %2674 }
0x16e2   :  { %v2475_v30 = vmul.f32 %v5834_v27, %v5830_v10 }
0x16e3   :  { %v5836_v32 = vpop.eup %5835 }
0x16e4   :  { %v2477_v28 = vpack.c.bf16 %v2475_v30, %v2475_v30  ;;  %v2476_v33 = vmul.f32 %v5836_v32, %v5832_v12 }
0x16e6   :  { %5464 = vmatmul.mubr.msk.bf16.vlgmr.msra.gmra.mxu1 %vm819_vm10, %v2477_v28  ;;  %v2478_v34 = vpack.c.bf16 %v2476_v33, %v2476_v33 }
0x16e7   :  { %5475 = vmatprep.mubr.msk.bf16.mxu1 %vm5947_vm1, %v5946_v3  ;;  %5474 = vmatpush3.bf16.msra.mxu1 %v2586_v41 }
0x16e8   :  { %5470 = vmatmul.mubr.msk.bf16.vlgmr.msra.gmra.mxu0 %vm819_vm10, %v2478_v34  ;;  %5485 = vmatprep.subr.bf16.mxu1 %v5946_v3 }
0x16e9   :  { %5480 = vmatpush3.bf16.msra.mxu0 %v2632_v35  ;;  %5481 = vmatprep.mubr.msk.bf16.mxu0 %vm5947_vm1, %v5946_v3 }
0x16ea   :  { %5491 = vmatprep.subr.bf16.mxu0 %v5946_v3 }
0x16f0   :  { %5482 = vmatmul.mubr.msk.bf16.vlgmr.msra.gmra.mxu0 %vm280_vm6, %v2349_v25 }
0x16f1   :  { %5492 = vmatpush3.bf16.xpose.msra.mxu0 %v2732_v38  ;;  %5493 = vmatprep.mubr.msk.bf16.mxu0 %vm5947_vm1, %v5946_v3 }
0x16f2   :  { %5503 = vmatprep.subr.bf16.mxu0 %v5946_v3 }
0x16f8   :  { %5494 = vmatmul.mubr.msk.bf16.vlgmr.msra.gmra.mxu0 %vm280_vm6, %v2725_v26 }
0x16f9   :  { %5505 = vmatprep.mubr.msk.bf16.mxu0 %vm5947_vm1, %v5946_v3 }
0x17a6   :  { %v2521_v43 = vpop.f32.mrf.mxu1 }
0x17a8   :  { %v5465_v45 = vpop.f32.mrf.mxu1  ;;  %v2569_v62 = vpop.f32.mrf.mxu0 }
0x17a9   :  { %v2578_v48 = vcombine.low %v2521_v43, %v2569_v62 }
0x17aa   :  { %v2524_v49 = vpop.f32.mrf.mxu1  ;;  %v5471_v51 = vpop.f32.mrf.mxu0 }
0x17ab   :  { %v2580_v6 = vpack.c.bf16 %v2578_v48, %v2578_v48 }
0x17ac   :  { %v5466_v52 = vpop.f32.mrf.mxu1  ;;  %v2572_v53 = vpop.f32.mrf.mxu0 }
0x17ad   :  { %5476 = vmatmul.mubr.msk.bf16.vlgmr.msra.gmra.mxu1 %vm280_vm6, %v2580_v6 }
0x17ae   :  { %5486 = vmatpush3.bf16.xpose.msra.mxu1 %v2682_v55  ;;  %v5472_v56 = vpop.f32.mrf.mxu0  ;;  %5487 = vmatprep.mubr.msk.bf16.mxu1 %vm5947_vm1, %v5946_v3 }
0x17af   :  { %5497 = vmatprep.subr.bf16.mxu1 %v5946_v3 }
0x17b0   :  { %v6432_v57 = vpop.f32.mrf.mxu0 }
0x17b2   :  { %v5483_v58 = vpop.f32.mrf.mxu0 }
0x17b4   :  { %v2671_v59 = vpop.f32.mrf.mxu0 }
0x17b5   :  { %5488 = vmatmul.mubr.msk.bf16.vlgmr.msra.gmra.mxu1 %vm280_vm6, %v2675_v15 }
0x17b6   :  { %v5484_v60 = vpop.f32.mrf.mxu0  ;;  %5499 = vmatprep.mubr.msk.bf16.mxu1 %vm5947_vm1, %v5946_v3 }
0x17b8   :  { %v2768_v61 = vpop.f32.mrf.mxu0 }
0x17b9   :  { %v2775_v63 = vmul.f32 0.35355338, %v2768_v61 }
0x17ba   :  { %v5495_v1 = vpop.f32.mrf.mxu0 }
0x17bb   :  { %v2777_v7 = vsel %vm6337_vm12, %v2775_v63, -1e+09  ;;  %v2898_v1 = vld [vmem:[#allocation4 + $0x1a0] sm:$0xff] }
0x17bc   :  { %v2771_v36 = vpop.f32.mrf.mxu0  ;;  %v2781_v2 = vsel %vm792_vm8, %v2777_v7, -inf }
0x17bd   :  { %2782 = vmax.xlane.f32.xlu0 %v2781_v2 }
0x17be   :  { %v5496_v4 = vpop.f32.mrf.mxu0 }
0x1846   :  { %v2783_v5 = vpop.xlane.xlu0 %2782 }
0x1847   :  { %v2785_v8 = vsub.f32 %v2777_v7, %v2783_v5  ;;  %v2904_v7 = vpack.c.bf16 %v2898_v1, %v2898_v1 }
0x1849   :  { %v2788_v9 = vmul.f32 1.442695, %v2785_v8  ;;  %v2909_v36 = vsel %vm284_vm0, %v2904_v7, 0 }
0x184b   :  { %5837 = vpow2.f32 %v2788_v9 }
0x1858   :  { %v5838_v23 = vpop.eup %5837 }
0x1859   :  { %v2793_v30 = vsel %vm792_vm8, %v5838_v23, 0.0 }
0x186d   :  { %v6440_v10 = vpop.f32.mrf.mxu1 }
0x186f   :  { %v5477_v11 = vpop.f32.mrf.mxu1 }
0x1871   :  { %v2625_v12 = vpop.f32.mrf.mxu1 }
0x1873   :  { %v5478_v13 = vpop.f32.mrf.mxu1 }
0x1875   :  { %v2718_v14 = vpop.f32.mrf.mxu1 }
0x1876   :  { %v2774_v16 = vmul.f32 0.35355338, %v2718_v14 }
0x1877   :  { %v5489_v17 = vpop.f32.mrf.mxu1 }
0x1878   :  { %v2776_v18 = vsel %vm6337_vm12, %v2774_v16, -1e+09 }
0x1879   :  { %v2721_v21 = vpop.f32.mrf.mxu1  ;;  %v2778_v22 = vsel %vm792_vm8, %v2776_v18, -inf }
0x187a   :  { %2779 = vmax.xlane.f32.xlu1 %v2778_v22  ;;  %v2669_v21 = vadd.f32 %v6432_v57, %v6440_v10 }
0x187b   :  { %v5490_v27 = vpop.f32.mrf.mxu1 }
0x187e   :  { %2794 = vadd.xlane.f32.xlu1 %v2793_v30 }
0x188f   :  { %2850 = vrot.lane.b32.xlu1 %v6315_v44, %s5964_s30 }
0x1893   :  { %2954 = vrot.lane.b32.xlu1 %v6313_v42, %s5965_s4 }
0x1897   :  { %2952 = vrot.lane.b32.xlu1 %v6313_v42, %s5966_s5 }
0x1903   :  { %v2780_v31 = vpop.xlane.xlu1 %2779 }
0x1904   :  { %v2784_v32 = vsub.f32 %v2776_v18, %v2780_v31 }
0x1906   :  { %v2786_v28 = vmul.f32 1.442695, %v2784_v32 }
0x1907   :  { %v2795_v33 = vpop.xlane.xlu1 %2794 }
0x1908   :  { %5839 = vpow2.f32 %v2786_v28 }
0x1909   :  { %5841 = vrcp.f32 %v2795_v33 }
0x190b   :  { %v2851_v34 = vpop.permute.xlu1 %2850 }
0x190c   :  { %v2856_v35 = vsel %vm823_vm9, %v2851_v34, 0 }
0x190d   :  { %5504 = vmatpush3.bf16.msra.mxu0 %v2856_v35 }
0x190e   :  { %5515 = vmatprep.subr.bf16.mxu0 %v5946_v3 }
0x190f   :  { %v2955_v39 = vpop.permute.xlu1 %2954 }
0x1910   :  { %v2960_v41 = vsel %vm280_vm6, %v2955_v39, 0 }
0x1913   :  { %v2953_v43 = vpop.permute.xlu1 %2952 }
0x1915   :  { %v5840_v37 = vpop.eup %5839 }
0x1916   :  { %v5842_v25 = vpop.eup %5841  ;;  %v2790_v38 = vsel %vm792_vm8, %v5840_v37, 0.0 }
0x1917   :  { %2791 = vadd.xlane.f32.xlu0 %v2790_v38  ;;  %v2799_v26 = vmul.f32 %v5842_v25, %v5838_v23 }
0x1919   :  { %v2801_v40 = vpack.c.bf16 %v2799_v26, %v2799_v26 }
0x191b   :  { %5506 = vmatmul.mubr.msk.bf16.vlgmr.msra.gmra.mxu0 %vm819_vm10, %v2801_v40 }
0x191c   :  { %5516 = vmatpush3.bf16.xpose.msra.mxu0 %v2960_v41  ;;  %5517 = vmatprep.mubr.msk.bf16.mxu0 %vm5947_vm1, %v5946_v3 }
0x191d   :  { %5527 = vmatprep.subr.bf16.mxu0 %v5946_v3 }
0x1923   :  { %5518 = vmatmul.mubr.msk.bf16.vlgmr.msra.gmra.mxu0 %vm280_vm6, %v2953_v43 }
0x1924   :  { %5529 = vmatprep.mubr.msk.bf16.mxu0 %vm5947_vm1, %v5946_v3 }
0x192d   :  { %2802 = vrot.lane.b32.xlu0 %v6313_v42, %s5964_s30 }
0x1931   :  { %3004 = vrot.lane.b32.xlu0 %v6315_v44, %s5965_s4 }
0x1935   :  { %3002 = vrot.lane.b32.xlu0 %v6315_v44, %s5966_s5 }
0x19a0   :  { %v2792_v45 = vpop.xlane.xlu0 %2791 }
0x19a1   :  { %5843 = vrcp.f32 %v2792_v45 }
0x19a4   :  { %v2803_v62 = vpop.permute.xlu0 %2802 }
0x19a5   :  { %v2808_v20 = vsel %vm823_vm9, %v2803_v62, 0 }
0x19a6   :  { %5498 = vmatpush3.bf16.msra.mxu1 %v2808_v20 }
0x19a7   :  { %5509 = vmatprep.subr.bf16.mxu1 %v5946_v3 }
0x19a8   :  { %v3005_v5 = vpop.permute.xlu0 %3004 }
0x19a9   :  { %v3010_v12 = vsel %vm280_vm6, %v3005_v5, 0 }
0x19ac   :  { %v3003_v14 = vpop.permute.xlu0 %3002 }
0x19ae   :  { %v5844_v48 = vpop.eup %5843 }
0x19af   :  { %v2798_v49 = vmul.f32 %v5844_v48, %v5840_v37 }
0x19b1   :  { %v2800_v51 = vpack.c.bf16 %v2798_v49, %v2798_v49 }
0x19b3   :  { %5500 = vmatmul.mubr.msk.bf16.vlgmr.msra.gmra.mxu1 %vm819_vm10, %v2800_v51 }
0x19b4   :  { %5511 = vmatprep.mubr.msk.bf16.mxu1 %vm5947_vm1, %v5946_v3  ;;  %5510 = vmatpush3.bf16.msra.mxu1 %v2909_v36 }
0x19b5   :  { %5521 = vmatprep.subr.bf16.mxu1 %v5946_v3 }
0x19db   :  { %v2892_v6 = vpop.f32.mrf.mxu0 }
0x19dd   :  { %v5507_v52 = vpop.f32.mrf.mxu0 }
0x19df   :  { %v2895_v53 = vpop.f32.mrf.mxu0 }
0x19e1   :  { %v5508_v55 = vpop.f32.mrf.mxu0 }
0x19e3   :  { %v2996_v56 = vpop.f32.mrf.mxu0 }
0x19e4   :  { %v3052_v58 = vmul.f32 0.35355338, %v2996_v56 }
0x19e5   :  { %v5519_v15 = vpop.f32.mrf.mxu0 }
0x19e6   :  { %v3054_v59 = vsel %vm6337_vm12, %v3052_v58, -1e+09  ;;  %v3176_v15 = vld [vmem:[#allocation4 + $0x1a8] sm:$0xff] }
0x19e7   :  { %v2999_v60 = vpop.f32.mrf.mxu0  ;;  %v3056_v61 = vsel %vm792_vm8, %v3054_v59, -inf }
0x19e8   :  { %3057 = vmax.xlane.f32.xlu1 %v3056_v61 }
0x19e9   :  { %v5520_v63 = vpop.f32.mrf.mxu0 }
0x1a71   :  { %v3058_v16 = vpop.xlane.xlu1 %3057 }
0x1a72   :  { %v3062_v17 = vsub.f32 %v3054_v59, %v3058_v16  ;;  %v3182_v59 = vpack.c.bf16 %v3176_v15, %v3176_v15  ;;  %v3344_v16 = vld [vmem:[#allocation4 + $0x200] sm:$0xff] }
0x1a73   :  { %v2844_v2 = vpop.f32.mrf.mxu1 }
0x1a74   :  { %v2901_v4 = vcombine.low %v2844_v2, %v2892_v6  ;;  %v3064_v18 = vmul.f32 1.442695, %v3062_v17  ;;  %v3187_v60 = vsel %vm284_vm0, %v3182_v59, 0  ;;  %v3284_v59 = vld [vmem:[#allocation4 + $0x1d0] sm:$0xff] }
0x1a75   :  { %v5501_v8 = vpop.f32.mrf.mxu1 }
0x1a76   :  { %v2903_v9 = vpack.c.bf16 %v2901_v4, %v2901_v4  ;;  %5845 = vpow2.f32 %v3064_v18 }
0x1a77   :  { %v2847_v11 = vpop.f32.mrf.mxu1 }
0x1a78   :  { %5512 = vmatmul.mubr.msk.bf16.vlgmr.msra.gmra.mxu1 %vm280_vm6, %v2903_v9 }
0x1a79   :  { %5522 = vmatpush3.bf16.xpose.msra.mxu1 %v3010_v12  ;;  %v5502_v13 = vpop.f32.mrf.mxu1  ;;  %5523 = vmatprep.mubr.msk.bf16.mxu1 %vm5947_vm1, %v5946_v3 }
0x1a7a   :  { %5533 = vmatprep.subr.bf16.mxu1 %v5946_v3  ;;  %v5006_v13 = vld [vmem:[#allocation4 + $0x158] ss:$0 sm:$0xff] }
0x1a80   :  { %5524 = vmatmul.mubr.msk.bf16.vlgmr.msra.gmra.mxu1 %vm280_vm6, %v3003_v14  ;;  %v3343_v14 = vld [vmem:[#allocation4 + $0x1f8] sm:$0xff] }
0x1a81   :  { %5535 = vmatprep.mubr.msk.bf16.mxu1 %vm5947_vm1, %v5946_v3 }
0x1a83   :  { %v5846_v25 = vpop.eup %5845 }
0x1a84   :  { %v3068_v57 = vsel %vm792_vm8, %v5846_v25, 0.0 }
0x1b38   :  { %v2945_v22 = vpop.f32.mrf.mxu1 }
0x1b39   :  { %v6489_v23 = vadd.f32 %v2945_v22, %v2669_v21  ;;  %v2011_v21 = vcombine.high %v5006_v13, %v5006_v13 }
0x1b3a   :  { %v5513_v27 = vpop.f32.mrf.mxu1 }
0x1b3c   :  { %v2948_v30 = vpop.f32.mrf.mxu1 }
0x1b3e   :  { %v5514_v31 = vpop.f32.mrf.mxu1 }
0x1b3f   :  { %v3351_v31 = vpack.c.bf16 %v3344_v16, %v3343_v14 }
0x1b40   :  { %v3046_v32 = vpop.f32.mrf.mxu1 }
0x1b41   :  { %v3053_v28 = vmul.f32 0.35355338, %v3046_v32 }
0x1b42   :  { %v5525_v33 = vpop.f32.mrf.mxu1 }
0x1b43   :  { %v3055_v34 = vsel %vm6337_vm12, %v3053_v28, -1e+09  ;;  %v3341_v28 = vld [vmem:[#allocation4 + $0x1e8] sm:$0xff]  ;;  %v3342_v33 = vld [vmem:[#allocation4 + $0x1f0] sm:$0xff] }
0x1b44   :  { %v3049_v35 = vpop.f32.mrf.mxu1  ;;  %v3059_v37 = vsel %vm792_vm8, %v3055_v34, -inf }
0x1b45   :  { %3060 = vmax.xlane.f32.xlu0 %v3059_v37 }
0x1b46   :  { %v5526_v38 = vpop.f32.mrf.mxu1 }
0x1b47   :  { %v3350_v38 = vpack.c.bf16 %v3342_v33, %v3341_v28 }
0x1b49   :  { %3069 = vadd.xlane.f32.xlu0 %v3068_v57 }
0x1b5f   :  { %3080 = vrot.lane.b32.xlu0 %v6313_v42, %s5967_s6  ;;  %v5004_v42 = vld [vmem:[#allocation4 + $0x150] ss:$0 sm:$0xff] }
0x1b60   :  { %v1964_v49 = vadd.f32 %v5004_v42, %v6333_v50 }
0x1b62   :  { %v1970_v51 = vcombine.high %v1964_v49, %v1964_v49  ;;  %v1972_v52 = vadd.f32 %v1964_v49, %v6278_v24 }
0x1b64   :  { %v1973_v6 = vadd.f32 %v1970_v51, %v6281_v29  ;;  %v1974_v55 = vmul.f32 %v1972_v52, %v1972_v52 }
0x1b66   :  { %v1975_v53 = vmul.f32 %v1973_v6, %v1973_v6 }
0x1b68   :  { %v1978_v56 = vcombine.low %v1974_v55, %v1975_v53 }
0x1b6a   :  { %v1980_v58 = vsel %vm347_vm2, %v1978_v56, 0.0 }
0x1bce   :  { %v3061_v10 = vpop.xlane.xlu0 %3060 }
0x1bcf   :  { %v3063_v26 = vsub.f32 %v3055_v34, %v3061_v10 }
0x1bd1   :  { %v3066_v39 = vmul.f32 1.442695, %v3063_v26 }
0x1bd2   :  { %v3070_v40 = vpop.xlane.xlu0 %3069 }
0x1bd3   :  { %5847 = vpow2.f32 %v3066_v39  ;;  %v5030_v39 = vld [vmem:[#allocation4 + $0x1b0] ss:$0 sm:$0xff] }
0x1bd4   :  { %5849 = vrcp.f32 %v3070_v40 }
0x1bd6   :  { %v3081_v54 = vpop.permute.xlu0 %3080 }
0x1bd7   :  { %v3086_v41 = vsel %vm823_vm9, %v3081_v54, 0 }
0x1bd8   :  { %5528 = vmatpush3.bf16.msra.mxu0 %v3086_v41 }
0x1bd9   :  { %5539 = vmatprep.subr.bf16.mxu0 %v5946_v3 }
0x1be0   :  { %v5848_v43 = vpop.eup %5847 }
0x1be1   :  { %v5850_v45 = vpop.eup %5849  ;;  %v3071_v62 = vsel %vm792_vm8, %v5848_v43, 0.0 }
0x1be2   :  { %3072 = vadd.xlane.f32.xlu1 %v3071_v62  ;;  %v3076_v20 = vmul.f32 %v5850_v45, %v5846_v25 }
0x1be4   :  { %v3078_v48 = vpack.c.bf16 %v3076_v20, %v3076_v20 }
0x1be6   :  { %5530 = vmatmul.mubr.msk.bf16.vlgmr.msra.gmra.mxu0 %vm819_vm10, %v3078_v48  ;;  %v5034_v48 = vld [vmem:[#allocation4 + $0x208] ss:$0 sm:$0xff] }
0x1be7   :  { %5541 = vmatprep.mubr.msk.bf16.mxu0 %vm5947_vm1, %v5946_v3  ;;  %5540 = vmatpush3.bf16.msra.mxu0 %v3187_v60  ;;  %v3285_v60 = vld [vmem:[#allocation4 + $0x1d8] sm:$0xff] }
0x1be8   :  { %5553 = vmatprep.subr.bf16.mxu0 %v5946_v3 }
0x1bf3   :  { %3128 = vrot.lane.b32.xlu1 %v6315_v44, %s5967_s6 }
0x1c17   :  { %1981 = vadd.xlane.f32.xlu1 %v1980_v58 }
0x1c6b   :  { %v3073_v44 = vpop.xlane.xlu1 %3072 }
0x1c6c   :  { %5851 = vrcp.f32 %v3073_v44  ;;  %v3282_v44 = vld [vmem:[#allocation4 + $0x1c0] sm:$0xff] }
0x1c6f   :  { %v3129_v50 = vpop.permute.xlu1 %3128 }
0x1c70   :  { %v3134_v29 = vsel %vm823_vm9, %v3129_v50, 0  ;;  %v3292_v50 = vpack.c.bf16 %v3285_v60, %v3284_v59 }
0x1c71   :  { %5534 = vmatpush3.bf16.msra.mxu1 %v3134_v29  ;;  %v3283_v29 = vld [vmem:[#allocation4 + $0x1c8] sm:$0xff] }
0x1c72   :  { %5545 = vmatprep.subr.bf16.mxu1 %v5946_v3 }
0x1c79   :  { %v5852_v24 = vpop.eup %5851 }
0x1c7a   :  { %v3077_v61 = vmul.f32 %v5852_v24, %v5848_v43  ;;  %v3291_v24 = vpack.c.bf16 %v3283_v29, %v3282_v44 }
0x1c7c   :  { %v3079_v63 = vpack.c.bf16 %v3077_v61, %v3077_v61 }
0x1c7e   :  { %5536 = vmatmul.mubr.msk.bf16.vlgmr.msra.gmra.mxu1 %vm819_vm10, %v3079_v63 }
0x1c7f   :  { %5549 = vmatprep.mubr.msk.bf16.mxu1 %vm5947_vm1, %v5946_v3  ;;  %5546 = vmatpush3.bf16.msra.mxu1 %v3292_v50 }
0x1c80   :  { %5547 = vmatprep.subr.bf16.mxu1 %v5946_v3 }
0x1c83   :  { %5548 = vmatpush3.bf16.msra.mxu1 %v3291_v24 }
0x1c84   :  { %5561 = vmatprep.subr.bf16.mxu1 %v5946_v3 }
0x1ca0   :  { %v1982_v4 = vpop.xlane.xlu1 %1981 }
0x1ca1   :  { %v1983_v5 = vmul.f32 0.03125, %v1982_v4 }
0x1ca3   :  { %v1984_v8 = vadd.f32 1e-06, %v1983_v5 }
0x1ca5   :  { %5853 = vrsqrt.f32 %v1984_v8 }
0x1ca6   :  { %v3122_v1 = vpop.f32.mrf.mxu0 }
0x1ca8   :  { %v5531_v7 = vpop.f32.mrf.mxu0 }
0x1ca9   :  { %v5031_v7 = vld [vmem:[#allocation4 + $0x1b8] ss:$0 sm:$0xff] }
0x1caa   :  { %v3125_v36 = vpop.f32.mrf.mxu0  ;;  %v3278_v5 = vcombine.high %v5031_v7, %v5031_v7 }
0x1cac   :  { %v5532_v2 = vpop.f32.mrf.mxu0 }
0x1cb2   :  { %v5854_v9 = vpop.eup %5853 }
0x1cb3   :  { %v1993_v11 = vrot.slane %v5854_v9, %v6073_v46  ;;  %v2000_v12 = vrot.slane %v5854_v9, %v6076_v47 }
0x1cb5   :  { %v2003_v17 = vmul.f32 %v1993_v11, %v1972_v52  ;;  %v2004_v18 = vmul.f32 %v2000_v12, %v1973_v6 }
0x1cb7   :  { %v2013_v34 = vmul.f32 %v5006_v13, %v2003_v17  ;;  %v2014_v35 = vmul.f32 %v2011_v21, %v2004_v18  ;;  %v5032_v18 = vld [vmem:[#allocation4 + $0x1e0] ss:$0 sm:$0xff] }
0x1cb9   :  { %v3347_v57 = vcombine.low %v2013_v34, %v2014_v35 }
0x1cbb   :  { %v6522_v10 = vpack.c.bf16 %v3347_v57, %v3347_v57 }
0x1d3e   :  { %v3170_v22 = vpop.f32.mrf.mxu1 }
0x1d3f   :  { %v3179_v27 = vcombine.low %v3122_v1, %v3170_v22 }
0x1d40   :  { %v5537_v30 = vpop.f32.mrf.mxu1 }
0x1d41   :  { %v3181_v32 = vpack.c.bf16 %v3179_v27, %v3179_v27 }
0x1d42   :  { %v3173_v37 = vpop.f32.mrf.mxu1 }
0x1d43   :  { %5542 = vmatmul.mubr.msk.bf16.vlgmr.msra.gmra.mxu0 %vm280_vm6, %v3181_v32 }
0x1d44   :  { %v5538_v25 = vpop.f32.mrf.mxu1  ;;  %5554 = vmatpush3.bf16.msra.mxu0 %v3351_v31  ;;  %5557 = vmatprep.mubr.msk.bf16.mxu0 %vm5947_vm1, %v5946_v3 }
0x1d45   :  { %5555 = vmatprep.subr.bf16.mxu0 %v5946_v3 }
0x1d48   :  { %5556 = vmatpush3.bf16.msra.mxu0 %v3350_v38 }
0x1d49   :  { %5567 = vmatprep.subr.bf16.mxu0 %v5946_v3 }
0x1d4b   :  { %5558 = vmatmul.mubr.msk.bf16.vlgmr.msra.gmra.mxu0 %vm347_vm2, %v6522_v10 }
0x1d4c   :  { %5569 = vmatprep.mubr.msk.bf16.mxu0 %vm5947_vm1, %v5946_v3 }
0x1e03   :  { %v3223_v26 = vpop.f32.mrf.mxu0 }
0x1e04   :  { %v3229_v40 = vadd.f32 %v3223_v26, %v6489_v23 }
0x1e05   :  { %v5543_v54 = vpop.f32.mrf.mxu0 }
0x1e06   :  { %v3235_v41 = vadd.f32 %v5030_v39, %v3229_v40 }
0x1e07   :  { %v3226_v43 = vpop.f32.mrf.mxu0 }
0x1e08   :  { %v3237_v45 = vcombine.high %v3235_v41, %v3235_v41  ;;  %v6531_v62 = vadd.f32 %v3235_v41, %v6251_v19 }
0x1e09   :  { %v5544_v20 = vpop.f32.mrf.mxu0 }
0x1e0a   :  { %v6534_v42 = vadd.f32 %v3237_v45, %v6247_v0  ;;  %v3241_v6 = vmul.f32 %v6531_v62, %v6531_v62 }
0x1e0b   :  { %v3394_v49 = vpop.f32.mrf.mxu0 }
0x1e0c   :  { %v3395_v51 = vadd.f32 %v5034_v48, %v3394_v49  ;;  %v3242_v23 = vmul.f32 %v6534_v42, %v6534_v42 }
0x1e0d   :  { %v5559_v52 = vpop.f32.mrf.mxu0 }
0x1e0e   :  { %v3404_v53 = vcombine.high %v3395_v51, %v3395_v51  ;;  %v3245_v55 = vcombine.low %v3241_v6, %v3242_v23  ;;  %v6552_v13 = vpack.c.bf16 %v3395_v51, %v3395_v51 }
0x1e0f   :  { %v3397_v56 = vpop.f32.mrf.mxu0 }
0x1e10   :  { %v6540_v58 = vpack.c.bf16 %v3404_v53, %v3404_v53  ;;  %v3247_v19 = vsel %vm347_vm2, %v3245_v55, 0.0  ;;  %v3414_v17 = vsel %vm280_vm6, %v6552_v13, 0 }
0x1e11   :  { %3248 = vadd.xlane.f32.xlu0 %v3247_v19  ;;  %v5560_v15 = vpop.f32.mrf.mxu0 }
0x1e12   :  { %v3460_v0 = vsel %vm280_vm6, %v6540_v58, 0 }
0x1e13   :  { %5568 = vmatpush3.bf16.xpose.msra.mxu0 %v3460_v0 }
0x1e14   :  { %5579 = vmatprep.subr.bf16.mxu0 %v5946_v3 }
0x1e9a   :  { %v3249_v61 = vpop.xlane.xlu0 %3248 }
0x1e9b   :  { %v3250_v63 = vmul.f32 0.03125, %v3249_v61 }
0x1e9d   :  { %v3251_v1 = vadd.f32 1e-06, %v3250_v63 }
0x1e9f   :  { %5855 = vrsqrt.f32 %v3251_v1 }
0x1eac   :  { %v5856_v36 = vpop.eup %5855 }
0x1ead   :  { %v3260_v2 = vrot.slane %v5856_v36, %v6073_v46  ;;  %v3267_v4 = vrot.slane %v5856_v36, %v6076_v47 }
0x1eaf   :  { %v3270_v8 = vmul.f32 %v3260_v2, %v6531_v62  ;;  %v3271_v9 = vmul.f32 %v3267_v4, %v6534_v42 }
0x1eb1   :  { %v3280_v11 = vmul.f32 %v5031_v7, %v3270_v8  ;;  %v3281_v12 = vmul.f32 %v3278_v5, %v3271_v9 }
0x1eb3   :  { %v3288_v14 = vcombine.low %v3280_v11, %v3281_v12 }
0x1eb5   :  { %v3290_v16 = vpack.c.bf16 %v3288_v14, %v3288_v14 }
0x1eb7   :  { %5550 = vmatmul.mubr.msk.bf16.vlgmr.msra.gmra.mxu1 %vm347_vm2, %v3290_v16 }
0x1eb8   :  { %5562 = vmatpush3.bf16.xpose.msra.mxu1 %v3414_v17  ;;  %5563 = vmatprep.mubr.msk.bf16.mxu1 %vm5947_vm1, %v5946_v3 }
0x1eb9   :  { %5573 = vmatprep.subr.bf16.mxu1 %v5946_v3 }
0x1f77   :  { %v3335_v21 = vpop.f32.mrf.mxu1 }
0x1f78   :  { %v3336_v22 = vadd.f32 %v5032_v18, %v3335_v21 }
0x1f79   :  { %v5551_v27 = vpop.f32.mrf.mxu1 }
0x1f7a   :  { %v3401_v30 = vcombine.high %v3336_v22, %v3336_v22  ;;  %v6560_v31 = vpack.c.bf16 %v3336_v22, %v3336_v22 }
0x1f7b   :  { %v3338_v32 = vpop.f32.mrf.mxu1 }
0x1f7c   :  { %v6562_v28 = vpack.c.bf16 %v3401_v30, %v3401_v30  ;;  %5564 = vmatmul.mubr.msk.bf16.vlgmr.msra.gmra.mxu1 %vm280_vm6, %v6560_v31 }
0x1f7d   :  { %v5552_v33 = vpop.f32.mrf.mxu1  ;;  %5575 = vmatprep.mubr.msk.bf16.mxu1 %vm5947_vm1, %v5946_v3 }
0x1f7e   :  { %5570 = vmatmul.mubr.msk.bf16.vlgmr.msra.gmra.mxu0 %vm280_vm6, %v6562_v28 }
0x1f7f   :  { %5581 = vmatprep.mubr.msk.bf16.mxu0 %vm5947_vm1, %v5946_v3 }
0x203c   :  { %v3450_v34 = vpop.f32.mrf.mxu1 }
0x203d   :  { %v3502_v35 = vmul.f32 0.35355338, %v3450_v34 }
0x203e   :  { %v5565_v37 = vpop.f32.mrf.mxu1  ;;  %v3496_v25 = vpop.f32.mrf.mxu0 }
0x203f   :  { %v3503_v38 = vmul.f32 0.35355338, %v3496_v25  ;;  %v3504_v57 = vsel %vm792_vm8, %v3502_v35, -inf }
0x2040   :  { %3505 = vmax.xlane.f32.xlu0 %v3504_v57  ;;  %v3453_v26 = vpop.f32.mrf.mxu1  ;;  %v5571_v39 = vpop.f32.mrf.mxu0 }
0x2041   :  { %v3507_v40 = vsel %vm792_vm8, %v3503_v38, -inf }
0x2042   :  { %v5566_v54 = vpop.f32.mrf.mxu1  ;;  %3508 = vmax.xlane.f32.xlu1 %v3507_v40  ;;  %v3499_v41 = vpop.f32.mrf.mxu0 }
0x2044   :  { %v5572_v43 = vpop.f32.mrf.mxu0 }
0x2053   :  { %3578 = vrot.lane.b32.xlu1 %v6540_v58, %s5957_s1 }
0x2056   :  { %3529 = vrot.lane.b32.xlu0 %v6552_v13, %s5957_s1 }
0x20c9   :  { %v3506_v45 = vpop.xlane.xlu0 %3505 }
0x20ca   :  { %v3510_v20 = vsub.f32 %v3502_v35, %v3506_v45 }
0x20cb   :  { %v3509_v48 = vpop.xlane.xlu1 %3508 }
0x20cc   :  { %v3512_v49 = vmul.f32 1.442695, %v3510_v20  ;;  %v3511_v51 = vsub.f32 %v3503_v38, %v3509_v48 }
0x20cd   :  { %v3530_v6 = vpop.permute.xlu0 %3529 }
0x20ce   :  { %5857 = vpow2.f32 %v3512_v49  ;;  %v3514_v23 = vmul.f32 1.442695, %v3511_v51  ;;  %v3535_v52 = vsel %vm823_vm9, %v3530_v6, 0 }
0x20cf   :  { %5574 = vmatpush3.bf16.msra.mxu1 %v3535_v52  ;;  %v3579_v53 = vpop.permute.xlu1 %3578 }
0x20d0   :  { %5859 = vpow2.f32 %v3514_v23  ;;  %v3584_v55 = vsel %vm823_vm9, %v3579_v53, 0  ;;  %5585 = vmatprep.subr.bf16.mxu1 %v5946_v3 }
0x20d1   :  { %5580 = vmatpush3.bf16.msra.mxu0 %v3584_v55 }
0x20d2   :  { %5591 = vmatprep.subr.bf16.mxu0 %v5946_v3 }
0x20db   :  { %v5858_v56 = vpop.eup %5857 }
0x20dc   :  { %v3516_v19 = vsel %vm792_vm8, %v5858_v56, 0.0 }
0x20dd   :  { %v5860_v15 = vpop.eup %5859  ;;  %3517 = vadd.xlane.f32.xlu0 %v3516_v19  ;;  %v3626_v19 = vld [vmem:[#allocation4 + $0x210] sm:$0xff] }
0x20de   :  { %v3519_v0 = vsel %vm792_vm8, %v5860_v15, 0.0 }
0x20df   :  { %3520 = vadd.xlane.f32.xlu1 %v3519_v0 }
0x20f0   :  { %3636 = vrot.lane.b32.xlu1 %v6552_v13, %s5960_s26 }
0x20f3   :  { %3687 = vrot.lane.b32.xlu0 %v6540_v58, %s5960_s26 }
0x20f4   :  { %3634 = vrot.lane.b32.xlu1 %v6560_v31, %s5960_s26 }
0x20f7   :  { %3685 = vrot.lane.b32.xlu0 %v6562_v28, %s5960_s26 }
0x2166   :  { %v3518_v59 = vpop.xlane.xlu0 %3517 }
0x2167   :  { %5861 = vrcp.f32 %v3518_v59  ;;  %v3632_v59 = vpack.c.bf16 %v3626_v19, %v3626_v19 }
0x2168   :  { %v3521_v60 = vpop.xlane.xlu1 %3520 }
0x2169   :  { %5863 = vrcp.f32 %v3521_v60 }
0x216a   :  { %v3688_v1 = vpop.permute.xlu0 %3687 }
0x216b   :  { %v3693_v2 = vsel %vm280_vm6, %v3688_v1, 0 }
0x216c   :  { %v3637_v24 = vpop.permute.xlu1 %3636 }
0x216d   :  { %v3642_v7 = vsel %vm280_vm6, %v3637_v24, 0  ;;  %v3914_v24 = vsel %vm284_vm0, %v3632_v59, 0 }
0x216e   :  { %v3686_v5 = vpop.permute.xlu0 %3685 }
0x2170   :  { %v3635_v4 = vpop.permute.xlu1 %3634 }
0x2174   :  { %v5862_v44 = vpop.eup %5861 }
0x2175   :  { %v3524_v50 = vmul.f32 %v5862_v44, %v5858_v56 }
0x2176   :  { %v5864_v29 = vpop.eup %5863 }
0x2177   :  { %v3526_v61 = vpack.c.bf16 %v3524_v50, %v3524_v50  ;;  %v3525_v63 = vmul.f32 %v5864_v29, %v5860_v15 }
0x2179   :  { %5576 = vmatmul.mubr.msk.bf16.vlgmr.msra.gmra.mxu1 %vm819_vm10, %v3526_v61  ;;  %v3527_v36 = vpack.c.bf16 %v3525_v63, %v3525_v63 }
0x217a   :  { %5586 = vmatpush3.bf16.xpose.msra.mxu1 %v3642_v7  ;;  %5587 = vmatprep.mubr.msk.bf16.mxu1 %vm5947_vm1, %v5946_v3 }
0x217b   :  { %5582 = vmatmul.mubr.msk.bf16.vlgmr.msra.gmra.mxu0 %vm819_vm10, %v3527_v36  ;;  %5597 = vmatprep.subr.bf16.mxu1 %v5946_v3  ;;  %v3857_v36 = vld [vmem:[#allocation4 + $0x218] sm:$0xff] }
0x217c   :  { %5592 = vmatpush3.bf16.xpose.msra.mxu0 %v3693_v2  ;;  %5593 = vmatprep.mubr.msk.bf16.mxu0 %vm5947_vm1, %v5946_v3  ;;  %v3863_v2 = vpack.c.bf16 %v3857_v36, %v3857_v36 }
0x217d   :  { %5603 = vmatprep.subr.bf16.mxu0 %v5946_v3 }
0x2181   :  { %5588 = vmatmul.mubr.msk.bf16.vlgmr.msra.gmra.mxu1 %vm280_vm6, %v3635_v4  ;;  %v3868_v4 = vsel %vm284_vm0, %v3863_v2, 0 }
0x2182   :  { %5599 = vmatprep.mubr.msk.bf16.mxu1 %vm5947_vm1, %v5946_v3 }
0x2183   :  { %5594 = vmatmul.mubr.msk.bf16.vlgmr.msra.gmra.mxu0 %vm280_vm6, %v3686_v5 }
0x2184   :  { %5605 = vmatprep.mubr.msk.bf16.mxu0 %vm5947_vm1, %v5946_v3 }
0x2239   :  { %v3571_v8 = vpop.f32.mrf.mxu1 }
0x223b   :  { %v5577_v9 = vpop.f32.mrf.mxu1  ;;  %v3620_v11 = vpop.f32.mrf.mxu0 }
0x223c   :  { %v6608_v12 = vcombine.low %v3571_v8, %v3620_v11 }
0x223d   :  { %v3574_v14 = vpop.f32.mrf.mxu1  ;;  %v5583_v16 = vpop.f32.mrf.mxu0 }
0x223e   :  { %v3631_v63 = vpack.c.bf16 %v6608_v12, %v6608_v12 }
0x223f   :  { %v5578_v17 = vpop.f32.mrf.mxu1  ;;  %v3623_v18 = vpop.f32.mrf.mxu0 }
0x2241   :  { %v5584_v21 = vpop.f32.mrf.mxu0  ;;  %v3678_v22 = vpop.f32.mrf.mxu1 }
0x2242   :  { %v3735_v27 = vmul.f32 0.35355338, %v3678_v22 }
0x2243   :  { %v5589_v30 = vpop.f32.mrf.mxu1  ;;  %v3729_v32 = vpop.f32.mrf.mxu0 }
0x2244   :  { %v3736_v33 = vmul.f32 0.35355338, %v3729_v32  ;;  %v3737_v34 = vsel %vm792_vm8, %v3735_v27, -inf }
0x2245   :  { %3738 = vmax.xlane.f32.xlu1 %v3737_v34  ;;  %v3681_v35 = vpop.f32.mrf.mxu1  ;;  %v5595_v37 = vpop.f32.mrf.mxu0 }
0x2246   :  { %v3740_v25 = vsel %vm792_vm8, %v3736_v33, -inf }
0x2247   :  { %v5590_v38 = vpop.f32.mrf.mxu1  ;;  %3741 = vmax.xlane.f32.xlu0 %v3740_v25  ;;  %v3732_v57 = vpop.f32.mrf.mxu0 }
0x2249   :  { %v5596_v26 = vpop.f32.mrf.mxu0 }
0x22ce   :  { %v3739_v39 = vpop.xlane.xlu1 %3738 }
0x22cf   :  { %v3743_v40 = vsub.f32 %v3735_v27, %v3739_v39 }
0x22d0   :  { %v3742_v54 = vpop.xlane.xlu0 %3741 }
0x22d1   :  { %v3745_v41 = vmul.f32 1.442695, %v3743_v40  ;;  %v3744_v43 = vsub.f32 %v3736_v33, %v3742_v54 }
0x22d3   :  { %5865 = vpow2.f32 %v3745_v41  ;;  %v3747_v45 = vmul.f32 1.442695, %v3744_v43 }
0x22d5   :  { %5867 = vpow2.f32 %v3747_v45 }
0x22e0   :  { %v5866_v20 = vpop.eup %5865 }
0x22e1   :  { %v3749_v48 = vsel %vm792_vm8, %v5866_v20, 0.0 }
0x22e2   :  { %v5868_v49 = vpop.eup %5867  ;;  %3750 = vadd.xlane.f32.xlu0 %v3749_v48 }
0x22e3   :  { %v3752_v51 = vsel %vm792_vm8, %v5868_v49, 0.0 }
0x22e4   :  { %3753 = vadd.xlane.f32.xlu1 %v3752_v51 }
0x22f5   :  { %3809 = vrot.lane.b32.xlu1 %v6540_v58, %s5958_s2 }
0x22f8   :  { %3761 = vrot.lane.b32.xlu0 %v6552_v13, %s5958_s2 }
0x22f9   :  { %3958 = vrot.lane.b32.xlu1 %v6552_v13, %s5963_s29 }
0x22fc   :  { %4008 = vrot.lane.b32.xlu0 %v6540_v58, %s5963_s29 }
0x22fd   :  { %3956 = vrot.lane.b32.xlu1 %v6560_v31, %s5963_s29 }
0x2300   :  { %4006 = vrot.lane.b32.xlu0 %v6562_v28, %s5963_s29 }
0x236b   :  { %v3751_v6 = vpop.xlane.xlu0 %3750 }
0x236c   :  { %5869 = vrcp.f32 %v3751_v6 }
0x236d   :  { %v3754_v23 = vpop.xlane.xlu1 %3753 }
0x236e   :  { %5871 = vrcp.f32 %v3754_v23 }
0x236f   :  { %v3762_v52 = vpop.permute.xlu0 %3761 }
0x2370   :  { %v3767_v53 = vsel %vm823_vm9, %v3762_v52, 0 }
0x2371   :  { %v3810_v55 = vpop.permute.xlu1 %3809  ;;  %5598 = vmatpush3.bf16.msra.mxu1 %v3767_v53 }
0x2372   :  { %v3815_v56 = vsel %vm823_vm9, %v3810_v55, 0  ;;  %5609 = vmatprep.subr.bf16.mxu1 %v5946_v3 }
0x2373   :  { %5604 = vmatpush3.bf16.msra.mxu0 %v3815_v56  ;;  %v4009_v61 = vpop.permute.xlu0 %4008 }
0x2374   :  { %5615 = vmatprep.subr.bf16.mxu0 %v5946_v3  ;;  %v4014_v1 = vsel %vm280_vm6, %v4009_v61, 0 }
0x2375   :  { %v3959_v11 = vpop.permute.xlu1 %3958 }
0x2376   :  { %v3964_v22 = vsel %vm280_vm6, %v3959_v11, 0 }
0x2377   :  { %v4007_v7 = vpop.permute.xlu0 %4006 }
0x2379   :  { %v5870_v15 = vpop.eup %5869  ;;  %v3957_v33 = vpop.permute.xlu1 %3956 }
0x237a   :  { %v3757_v0 = vmul.f32 %v5870_v15, %v5866_v20 }
0x237b   :  { %v5872_v60 = vpop.eup %5871 }
0x237c   :  { %v3759_v44 = vpack.c.bf16 %v3757_v0, %v3757_v0  ;;  %v3758_v50 = vmul.f32 %v5872_v60, %v5868_v49 }
0x237e   :  { %v3760_v29 = vpack.c.bf16 %v3758_v50, %v3758_v50  ;;  %5600 = vmatmul.mubr.msk.bf16.vlgmr.msra.gmra.mxu1 %vm819_vm10, %v3759_v44 }
0x237f   :  { %5611 = vmatprep.mubr.msk.bf16.mxu1 %vm5947_vm1, %v5946_v3  ;;  %5610 = vmatpush3.bf16.msra.mxu1 %v3868_v4 }
0x2380   :  { %5606 = vmatmul.mubr.msk.bf16.vlgmr.msra.gmra.mxu0 %vm819_vm10, %v3760_v29  ;;  %5621 = vmatprep.subr.bf16.mxu1 %v5946_v3 }
0x2381   :  { %5616 = vmatpush3.bf16.msra.mxu0 %v3914_v24  ;;  %5617 = vmatprep.mubr.msk.bf16.mxu0 %vm5947_vm1, %v5946_v3 }
0x2382   :  { %5627 = vmatprep.subr.bf16.mxu0 %v5946_v3 }
0x2388   :  { %5618 = vmatmul.mubr.msk.bf16.vlgmr.msra.gmra.mxu0 %vm280_vm6, %v3631_v63 }
0x2389   :  { %5628 = vmatpush3.bf16.xpose.msra.mxu0 %v4014_v1  ;;  %5629 = vmatprep.mubr.msk.bf16.mxu0 %vm5947_vm1, %v5946_v3 }
0x238a   :  { %5639 = vmatprep.subr.bf16.mxu0 %v5946_v3 }
0x2390   :  { %5630 = vmatmul.mubr.msk.bf16.vlgmr.msra.gmra.mxu0 %vm280_vm6, %v4007_v7 }
0x2391   :  { %5641 = vmatprep.mubr.msk.bf16.mxu0 %vm5947_vm1, %v5946_v3 }
0x243e   :  { %v3803_v5 = vpop.f32.mrf.mxu1 }
0x2440   :  { %v5601_v8 = vpop.f32.mrf.mxu1  ;;  %v3851_v9 = vpop.f32.mrf.mxu0 }
0x2441   :  { %v3860_v12 = vcombine.low %v3803_v5, %v3851_v9 }
0x2442   :  { %v3806_v14 = vpop.f32.mrf.mxu1  ;;  %v5607_v16 = vpop.f32.mrf.mxu0 }
0x2443   :  { %v3862_v17 = vpack.c.bf16 %v3860_v12, %v3860_v12 }
0x2444   :  { %v5602_v18 = vpop.f32.mrf.mxu1  ;;  %v3854_v21 = vpop.f32.mrf.mxu0 }
0x2445   :  { %5612 = vmatmul.mubr.msk.bf16.vlgmr.msra.gmra.mxu1 %vm280_vm6, %v3862_v17 }
0x2446   :  { %5622 = vmatpush3.bf16.xpose.msra.mxu1 %v3964_v22  ;;  %v5608_v27 = vpop.f32.mrf.mxu0  ;;  %5623 = vmatprep.mubr.msk.bf16.mxu1 %vm5947_vm1, %v5946_v3 }
0x2447   :  { %5633 = vmatprep.subr.bf16.mxu1 %v5946_v3 }
0x2448   :  { %v6655_v30 = vpop.f32.mrf.mxu0 }
0x244a   :  { %v5619_v32 = vpop.f32.mrf.mxu0 }
0x244b   :  { %v4178_v32 = vld [vmem:[#allocation4 + $0x220] sm:$0xff] }
0x244c   :  { %v3953_v34 = vpop.f32.mrf.mxu0 }
0x244d   :  { %5624 = vmatmul.mubr.msk.bf16.vlgmr.msra.gmra.mxu1 %vm280_vm6, %v3957_v33  ;;  %v4184_v33 = vpack.c.bf16 %v4178_v32, %v4178_v32 }
0x244e   :  { %v5620_v35 = vpop.f32.mrf.mxu0  ;;  %5635 = vmatprep.mubr.msk.bf16.mxu1 %vm5947_vm1, %v5946_v3 }
0x244f   :  { %v4189_v34 = vsel %vm284_vm0, %v4184_v33, 0 }
0x2450   :  { %v4050_v37 = vpop.f32.mrf.mxu0 }
0x2451   :  { %v4057_v25 = vmul.f32 0.35355338, %v4050_v37 }
0x2452   :  { %v5631_v38 = vpop.f32.mrf.mxu0 }
0x2453   :  { %v4061_v57 = vsel %vm792_vm8, %v4057_v25, -inf }
0x2454   :  { %4062 = vmax.xlane.f32.xlu0 %v4061_v57  ;;  %v4053_v26 = vpop.f32.mrf.mxu0 }
0x2456   :  { %v5632_v39 = vpop.f32.mrf.mxu0 }
0x24dd   :  { %v4063_v40 = vpop.xlane.xlu0 %4062 }
0x24de   :  { %v4065_v54 = vsub.f32 %v4057_v25, %v4063_v40 }
0x24e0   :  { %v4068_v41 = vmul.f32 1.442695, %v4065_v54 }
0x24e2   :  { %5873 = vpow2.f32 %v4068_v41 }
0x24ef   :  { %v5874_v52 = vpop.eup %5873 }
0x24f0   :  { %v4073_v56 = vsel %vm792_vm8, %v5874_v52, 0.0 }
0x2505   :  { %v6661_v43 = vpop.f32.mrf.mxu1 }
0x2507   :  { %v5613_v45 = vpop.f32.mrf.mxu1 }
0x2509   :  { %v3907_v20 = vpop.f32.mrf.mxu1 }
0x250b   :  { %v5614_v48 = vpop.f32.mrf.mxu1 }
0x250c   :  { %v3951_v48 = vadd.f32 %v6655_v30, %v6661_v43 }
0x250d   :  { %v4000_v49 = vpop.f32.mrf.mxu1 }
0x250e   :  { %v4056_v51 = vmul.f32 0.35355338, %v4000_v49 }
0x250f   :  { %v5625_v6 = vpop.f32.mrf.mxu1 }
0x2510   :  { %v4058_v23 = vsel %vm792_vm8, %v4056_v51, -inf }
0x2511   :  { %4059 = vmax.xlane.f32.xlu1 %v4058_v23  ;;  %v4003_v53 = vpop.f32.mrf.mxu1 }
0x2513   :  { %v5626_v55 = vpop.f32.mrf.mxu1 }
0x2515   :  { %4074 = vadd.xlane.f32.xlu1 %v4073_v56 }
0x2526   :  { %4130 = vrot.lane.b32.xlu1 %v6540_v58, %s5962_s28 }
0x252a   :  { %4234 = vrot.lane.b32.xlu1 %v6552_v13, %s5966_s5 }
0x252e   :  { %4232 = vrot.lane.b32.xlu1 %v6560_v31, %s5966_s5 }
0x259a   :  { %v4060_v19 = vpop.xlane.xlu1 %4059 }
0x259b   :  { %v4064_v15 = vsub.f32 %v4056_v51, %v4060_v19 }
0x259d   :  { %v4066_v0 = vmul.f32 1.442695, %v4064_v15 }
0x259e   :  { %v4075_v59 = vpop.xlane.xlu1 %4074 }
0x259f   :  { %5875 = vpow2.f32 %v4066_v0 }
0x25a0   :  { %5877 = vrcp.f32 %v4075_v59 }
0x25a2   :  { %v4131_v60 = vpop.permute.xlu1 %4130 }
0x25a3   :  { %v4136_v44 = vsel %vm823_vm9, %v4131_v60, 0 }
0x25a4   :  { %5640 = vmatpush3.bf16.msra.mxu0 %v4136_v44 }
0x25a5   :  { %5651 = vmatprep.subr.bf16.mxu0 %v5946_v3 }
0x25a6   :  { %v4235_v63 = vpop.permute.xlu1 %4234 }
0x25a7   :  { %v4240_v1 = vsel %vm280_vm6, %v4235_v63, 0 }
0x25aa   :  { %v4233_v7 = vpop.permute.xlu1 %4232 }
0x25ac   :  { %v5876_v50 = vpop.eup %5875 }
0x25ad   :  { %v5878_v29 = vpop.eup %5877  ;;  %v4070_v24 = vsel %vm792_vm8, %v5876_v50, 0.0 }
0x25ae   :  { %v4079_v61 = vmul.f32 %v5878_v29, %v5874_v52  ;;  %4071 = vadd.xlane.f32.xlu0 %v4070_v24 }
0x25b0   :  { %v4081_v31 = vpack.c.bf16 %v4079_v61, %v4079_v61 }
0x25b2   :  { %5642 = vmatmul.mubr.msk.bf16.vlgmr.msra.gmra.mxu0 %vm819_vm10, %v4081_v31 }
0x25b3   :  { %5652 = vmatpush3.bf16.xpose.msra.mxu0 %v4240_v1  ;;  %5653 = vmatprep.mubr.msk.bf16.mxu0 %vm5947_vm1, %v5946_v3 }
0x25b4   :  { %5663 = vmatprep.subr.bf16.mxu0 %v5946_v3 }
0x25ba   :  { %5654 = vmatmul.mubr.msk.bf16.vlgmr.msra.gmra.mxu0 %vm280_vm6, %v4233_v7 }
0x25bb   :  { %5665 = vmatprep.mubr.msk.bf16.mxu0 %vm5947_vm1, %v5946_v3 }
0x25c4   :  { %4082 = vrot.lane.b32.xlu0 %v6552_v13, %s5962_s28 }
0x25c8   :  { %4284 = vrot.lane.b32.xlu0 %v6540_v58, %s5966_s5 }
0x25cc   :  { %4282 = vrot.lane.b32.xlu0 %v6562_v28, %s5966_s5 }
0x2637   :  { %v4072_v36 = vpop.xlane.xlu0 %4071 }
0x2638   :  { %5879 = vrcp.f32 %v4072_v36 }
0x263b   :  { %v4083_v2 = vpop.permute.xlu0 %4082 }
0x263c   :  { %v4088_v4 = vsel %vm823_vm9, %v4083_v2, 0 }
0x263d   :  { %5634 = vmatpush3.bf16.msra.mxu1 %v4088_v4 }
0x263e   :  { %5645 = vmatprep.subr.bf16.mxu1 %v5946_v3 }
0x263f   :  { %v4285_v25 = vpop.permute.xlu0 %4284 }
0x2640   :  { %v4290_v39 = vsel %vm280_vm6, %v4285_v25, 0 }
0x2643   :  { %v4283_v54 = vpop.permute.xlu0 %4282 }
0x2645   :  { %v5880_v5 = vpop.eup %5879 }
0x2646   :  { %v4078_v8 = vmul.f32 %v5880_v5, %v5876_v50 }
0x2648   :  { %v4080_v9 = vpack.c.bf16 %v4078_v8, %v4078_v8 }
0x264a   :  { %5636 = vmatmul.mubr.msk.bf16.vlgmr.msra.gmra.mxu1 %vm819_vm10, %v4080_v9 }
0x264b   :  { %5647 = vmatprep.mubr.msk.bf16.mxu1 %vm5947_vm1, %v5946_v3  ;;  %5646 = vmatpush3.bf16.msra.mxu1 %v4189_v34  ;;  %v5056_v34 = vld [vmem:[#allocation4 + $0x230] ss:$0 sm:$0xff] }
0x264c   :  { %5657 = vmatprep.subr.bf16.mxu1 %v5946_v3 }
0x2672   :  { %v4172_v11 = vpop.f32.mrf.mxu0 }
0x2674   :  { %v5643_v12 = vpop.f32.mrf.mxu0 }
0x2676   :  { %v4175_v14 = vpop.f32.mrf.mxu0 }
0x2678   :  { %v5644_v28 = vpop.f32.mrf.mxu0 }
0x267a   :  { %v4276_v16 = vpop.f32.mrf.mxu0 }
0x267b   :  { %v4332_v17 = vmul.f32 0.35355338, %v4276_v16 }
0x267c   :  { %v5655_v18 = vpop.f32.mrf.mxu0 }
0x267d   :  { %v4334_v21 = vsel %vm792_vm8, %v4332_v17, -inf }
0x267e   :  { %4335 = vmax.xlane.f32.xlu1 %v4334_v21  ;;  %v4279_v22 = vpop.f32.mrf.mxu0 }
0x2680   :  { %v5656_v27 = vpop.f32.mrf.mxu0 }
0x2707   :  { %v4336_v41 = vpop.xlane.xlu1 %4335 }
0x2708   :  { %v4340_v45 = vsub.f32 %v4332_v17, %v4336_v41 }
0x270a   :  { %v4124_v35 = vpop.f32.mrf.mxu1  ;;  %v4342_v20 = vmul.f32 1.442695, %v4340_v45 }
0x270b   :  { %v4181_v37 = vcombine.low %v4124_v35, %v4172_v11 }
0x270c   :  { %v5637_v38 = vpop.f32.mrf.mxu1  ;;  %5881 = vpow2.f32 %v4342_v20 }
0x270d   :  { %v4183_v57 = vpack.c.bf16 %v4181_v37, %v4181_v37 }
0x270e   :  { %v4127_v26 = vpop.f32.mrf.mxu1 }
0x270f   :  { %5648 = vmatmul.mubr.msk.bf16.vlgmr.msra.gmra.mxu1 %vm280_vm6, %v4183_v57 }
0x2710   :  { %5658 = vmatpush3.bf16.xpose.msra.mxu1 %v4290_v39  ;;  %v5638_v40 = vpop.f32.mrf.mxu1  ;;  %5659 = vmatprep.mubr.msk.bf16.mxu1 %vm5947_vm1, %v5946_v3 }
0x2711   :  { %5669 = vmatprep.subr.bf16.mxu1 %v5946_v3 }
0x2717   :  { %5660 = vmatmul.mubr.msk.bf16.vlgmr.msra.gmra.mxu1 %vm280_vm6, %v4283_v54 }
0x2718   :  { %5671 = vmatprep.mubr.msk.bf16.mxu1 %vm5947_vm1, %v5946_v3 }
0x2719   :  { %v5882_v15 = vpop.eup %5881 }
0x271a   :  { %v4346_v60 = vsel %vm792_vm8, %v5882_v15, 0.0 }
0x27cf   :  { %v4225_v49 = vpop.f32.mrf.mxu1 }
0x27d0   :  { %v6706_v51 = vadd.f32 %v4225_v49, %v3951_v48  ;;  %v4562_v48 = vld [vmem:[#allocation4 + $0x250] sm:$0xff]  ;;  %v4563_v49 = vld [vmem:[#allocation4 + $0x258] sm:$0xff] }
0x27d1   :  { %v5649_v6 = vpop.f32.mrf.mxu1 }
0x27d2   :  { %v4560_v6 = vld [vmem:[#allocation4 + $0x240] sm:$0xff] }
0x27d3   :  { %v4228_v23 = vpop.f32.mrf.mxu1 }
0x27d5   :  { %v5650_v52 = vpop.f32.mrf.mxu1 }
0x27d6   :  { %v4627_v52 = vld [vmem:[#allocation4 + $0x2a0] sm:$0xff] }
0x27d7   :  { %v4326_v53 = vpop.f32.mrf.mxu1 }
0x27d8   :  { %v4333_v55 = vmul.f32 0.35355338, %v4326_v53  ;;  %v4624_v53 = vld [vmem:[#allocation4 + $0x288] sm:$0xff] }
0x27d9   :  { %v5661_v56 = vpop.f32.mrf.mxu1 }
0x27da   :  { %v4337_v19 = vsel %vm792_vm8, %v4333_v55, -inf  ;;  %v4625_v56 = vld [vmem:[#allocation4 + $0x290] sm:$0xff] }
0x27db   :  { %4338 = vmax.xlane.f32.xlu0 %v4337_v19  ;;  %v4329_v0 = vpop.f32.mrf.mxu1  ;;  %v4631_v19 = vpack.c.bf16 %v4625_v56, %v4624_v53 }
0x27dd   :  { %v5662_v59 = vpop.f32.mrf.mxu1 }
0x27df   :  { %4347 = vadd.xlane.f32.xlu0 %v4346_v60  ;;  %v5057_v60 = vld [vmem:[#allocation4 + $0x238] ss:$0 sm:$0xff] }
0x27f5   :  { %4358 = vrot.lane.b32.xlu0 %v6552_v13, %s5965_s4  ;;  %v4454_v13 = vld [vmem:[#allocation4 + $0x228] sm:$0xff] }
0x27f6   :  { %v4460_v36 = vpack.c.bf16 %v4454_v13, %v4454_v13 }
0x27f8   :  { %v4465_v2 = vsel %vm284_vm0, %v4460_v36, 0 }
0x2864   :  { %v4339_v30 = vpop.xlane.xlu0 %4338 }
0x2865   :  { %v4341_v43 = vsub.f32 %v4333_v55, %v4339_v30 }
0x2867   :  { %v4344_v44 = vmul.f32 1.442695, %v4341_v43  ;;  %v4556_v43 = vcombine.high %v5057_v60, %v5057_v60 }
0x2868   :  { %v4348_v50 = vpop.xlane.xlu0 %4347 }
0x2869   :  { %5883 = vpow2.f32 %v4344_v44 }
0x286a   :  { %5885 = vrcp.f32 %v4348_v50 }
0x286c   :  { %v4359_v29 = vpop.permute.xlu0 %4358 }
0x286d   :  { %v4364_v24 = vsel %vm823_vm9, %v4359_v29, 0 }
0x286e   :  { %5664 = vmatpush3.bf16.msra.mxu0 %v4364_v24 }
0x286f   :  { %5675 = vmatprep.subr.bf16.mxu0 %v5946_v3 }
0x2876   :  { %v5884_v61 = vpop.eup %5883 }
0x2877   :  { %v5886_v63 = vpop.eup %5885  ;;  %v4349_v31 = vsel %vm792_vm8, %v5884_v61, 0.0 }
0x2878   :  { %v4354_v1 = vmul.f32 %v5886_v63, %v5882_v15  ;;  %4350 = vadd.xlane.f32.xlu1 %v4349_v31  ;;  %v4729_v31 = vld [vmem:[#allocation4 + $0x2c8] sm:$0xff] }
0x287a   :  { %v4356_v7 = vpack.c.bf16 %v4354_v1, %v4354_v1  ;;  %v4730_v1 = vld [vmem:[#allocation4 + $0x2d0] sm:$0xff] }
0x287b   :  { %v4732_v13 = vpack.c.bf16 %v4730_v1, %v4729_v31 }
0x287c   :  { %5666 = vmatmul.mubr.msk.bf16.vlgmr.msra.gmra.mxu0 %vm819_vm10, %v4356_v7 }
0x287d   :  { %5677 = vmatprep.mubr.msk.bf16.mxu0 %vm5947_vm1, %v5946_v3  ;;  %5676 = vmatpush3.bf16.msra.mxu0 %v4465_v2  ;;  %v4727_v2 = vld [vmem:[#allocation4 + $0x2b8] sm:$0xff] }
0x287e   :  { %5689 = vmatprep.subr.bf16.mxu0 %v5946_v3 }
0x2889   :  { %4406 = vrot.lane.b32.xlu1 %v6540_v58, %s5965_s4 }
0x2901   :  { %v4351_v4 = vpop.xlane.xlu1 %4350 }
0x2902   :  { %5887 = vrcp.f32 %v4351_v4  ;;  %v4728_v4 = vld [vmem:[#allocation4 + $0x2c0] sm:$0xff] }
0x2905   :  { %v4407_v5 = vpop.permute.xlu1 %4406 }
0x2906   :  { %v4412_v8 = vsel %vm823_vm9, %v4407_v5, 0  ;;  %v4731_v5 = vpack.c.bf16 %v4728_v4, %v4727_v2 }
0x2907   :  { %5670 = vmatpush3.bf16.msra.mxu1 %v4412_v8  ;;  %v4622_v8 = vld [vmem:[#allocation4 + $0x278] sm:$0xff] }
0x2908   :  { %5681 = vmatprep.subr.bf16.mxu1 %v5946_v3 }
0x290f   :  { %v5888_v9 = vpop.eup %5887 }
0x2910   :  { %v4355_v11 = vmul.f32 %v5888_v9, %v5884_v61  ;;  %v4623_v9 = vld [vmem:[#allocation4 + $0x280] sm:$0xff] }
0x2912   :  { %v4357_v12 = vpack.c.bf16 %v4355_v11, %v4355_v11  ;;  %v4630_v11 = vpack.c.bf16 %v4623_v9, %v4622_v8 }
0x2914   :  { %5672 = vmatmul.mubr.msk.bf16.vlgmr.msra.gmra.mxu1 %vm819_vm10, %v4357_v12  ;;  %v4620_v12 = vld [vmem:[#allocation4 + $0x268] sm:$0xff] }
0x2915   :  { %5685 = vmatprep.mubr.msk.bf16.mxu1 %vm5947_vm1, %v5946_v3 }
0x293c   :  { %v4400_v58 = vpop.f32.mrf.mxu0 }
0x293e   :  { %v5667_v14 = vpop.f32.mrf.mxu0 }
0x2940   :  { %v4403_v28 = vpop.f32.mrf.mxu0 }
0x2941   :  { %v4781_v28 = vld [vmem:[#allocation4 + $0x2f0] sm:$0xff] }
0x2942   :  { %v5668_v16 = vpop.f32.mrf.mxu0 }
0x2943   :  { %v4782_v16 = vld [vmem:[#allocation4 + $0x2f8] sm:$0xff] }
0x29d4   :  { %v4448_v17 = vpop.f32.mrf.mxu1 }
0x29d5   :  { %v4457_v18 = vcombine.low %v4400_v58, %v4448_v17  ;;  %v4621_v58 = vld [vmem:[#allocation4 + $0x270] sm:$0xff]  ;;  %v4785_v17 = vpack.c.bf16 %v4782_v16, %v4781_v28 }
0x29d6   :  { %v5673_v21 = vpop.f32.mrf.mxu1  ;;  %v4629_v14 = vpack.c.bf16 %v4621_v58, %v4620_v12 }
0x29d7   :  { %v4459_v22 = vpack.c.bf16 %v4457_v18, %v4457_v18  ;;  %v4780_v18 = vld [vmem:[#allocation4 + $0x2e8] sm:$0xff] }
0x29d8   :  { %v4451_v27 = vpop.f32.mrf.mxu1 }
0x29d9   :  { %5678 = vmatmul.mubr.msk.bf16.vlgmr.msra.gmra.mxu0 %vm280_vm6, %v4459_v22  ;;  %v5058_v22 = vld [vmem:[#allocation4 + $0x260] ss:$0 sm:$0xff] }
0x29da   :  { %v5674_v32 = vpop.f32.mrf.mxu1  ;;  %5697 = vmatprep.mubr.msk.bf16.mxu0 %vm5947_vm1, %v5946_v3 }
0x2a99   :  { %v4501_v33 = vpop.f32.mrf.mxu0 }
0x2a9a   :  { %v4507_v35 = vadd.f32 %v4501_v33, %v6706_v51  ;;  %v4570_v51 = vpack.c.bf16 %v4563_v49, %v4562_v48  ;;  %v5060_v49 = vld [vmem:[#allocation4 + $0x2a8] ss:$0 sm:$0xff] }
0x2a9b   :  { %v5679_v37 = vpop.f32.mrf.mxu0 }
0x2a9c   :  { %v4513_v25 = vadd.f32 %v5056_v34, %v4507_v35  ;;  %5682 = vmatpush3.bf16.msra.mxu1 %v4570_v51 }
0x2a9d   :  { %v4504_v38 = vpop.f32.mrf.mxu0  ;;  %5683 = vmatprep.subr.bf16.mxu1 %v5946_v3 }
0x2a9e   :  { %v4515_v57 = vcombine.high %v4513_v25, %v4513_v25  ;;  %v6732_v26 = vadd.f32 %v4513_v25, %v6531_v62  ;;  %v4561_v62 = vld [vmem:[#allocation4 + $0x248] sm:$0xff]  ;;  %v5063_v38 = vld [vmem:[#allocation4 + $0x2d8] ss:$0 sm:$0xff] }
0x2a9f   :  { %v5680_v39 = vpop.f32.mrf.mxu0  ;;  %v4569_v23 = vpack.c.bf16 %v4561_v62, %v4560_v6 }
0x2aa0   :  { %v6735_v40 = vadd.f32 %v4515_v57, %v6534_v42  ;;  %v4519_v54 = vmul.f32 %v6732_v26, %v6732_v26  ;;  %v4626_v42 = vld [vmem:[#allocation4 + $0x298] sm:$0xff] }
0x2aa1   :  { %5684 = vmatpush3.bf16.msra.mxu1 %v4569_v23  ;;  %v4632_v55 = vpack.c.bf16 %v4627_v52, %v4626_v42 }
0x2aa2   :  { %v4520_v41 = vmul.f32 %v6735_v40, %v6735_v40  ;;  %5701 = vmatprep.subr.bf16.mxu1 %v5946_v3 }
0x2aa3   :  { %5690 = vmatpush3.bf16.msra.mxu0 %v4632_v55 }
0x2aa4   :  { %v4523_v45 = vcombine.low %v4519_v54, %v4520_v41  ;;  %5691 = vmatprep.subr.bf16.mxu0 %v5946_v3 }
0x2aa6   :  { %v4525_v20 = vsel %vm347_vm2, %v4523_v45, 0.0 }
0x2aa7   :  { %4526 = vadd.xlane.f32.xlu1 %v4525_v20  ;;  %5692 = vmatpush3.bf16.msra.mxu0 %v4631_v19 }
0x2aa8   :  { %5693 = vmatprep.subr.bf16.mxu0 %v5946_v3 }
0x2aab   :  { %5694 = vmatpush3.bf16.msra.mxu0 %v4630_v11 }
0x2aac   :  { %5695 = vmatprep.subr.bf16.mxu0 %v5946_v3 }
0x2aaf   :  { %5696 = vmatpush3.bf16.msra.mxu0 %v4629_v14 }
0x2ab0   :  { %5717 = vmatprep.subr.bf16.mxu0 %v5946_v3 }
0x2b30   :  { %v4527_v15 = vpop.xlane.xlu1 %4526 }
0x2b31   :  { %v4528_v0 = vmul.f32 0.03125, %v4527_v15 }
0x2b33   :  { %v4529_v59 = vadd.f32 1e-06, %v4528_v0 }
0x2b35   :  { %5889 = vrsqrt.f32 %v4529_v59  ;;  %v5065_v59 = vld [vmem:[#allocation4 + $0x300] ss:$0 sm:$0xff] }
0x2b42   :  { %v5890_v30 = vpop.eup %5889 }
0x2b43   :  { %v4538_v44 = vrot.slane %v5890_v30, %v6073_v46  ;;  %v4545_v50 = vrot.slane %v5890_v30, %v6076_v47 }
0x2b45   :  { %v4548_v29 = vmul.f32 %v4538_v44, %v6732_v26  ;;  %v4549_v24 = vmul.f32 %v4545_v50, %v6735_v40 }
0x2b47   :  { %v4558_v61 = vmul.f32 %v5057_v60, %v4548_v29  ;;  %v4559_v63 = vmul.f32 %v4556_v43, %v4549_v24  ;;  %v5062_v29 = vld [vmem:[#allocation4 + $0x2b0] ss:$0 sm:$0xff] }
0x2b49   :  { %v4566_v7 = vcombine.low %v4558_v61, %v4559_v63  ;;  %v4723_v61 = vcombine.high %v5062_v29, %v5062_v29 }
0x2b4b   :  { %v4568_v36 = vpack.c.bf16 %v4566_v7, %v4566_v7 }
0x2b4d   :  { %5686 = vmatmul.mubr.msk.bf16.vlgmr.msra.gmra.mxu1 %vm347_vm2, %v4568_v36 }
0x2b4e   :  { %5702 = vmatpush3.bf16.msra.mxu1 %v4732_v13  ;;  %5705 = vmatprep.mubr.msk.bf16.mxu1 %vm5947_vm1, %v5946_v3 }
0x2b4f   :  { %5703 = vmatprep.subr.bf16.mxu1 %v5946_v3 }
0x2b52   :  { %5704 = vmatpush3.bf16.msra.mxu1 %v4731_v5 }
0x2b53   :  { %5709 = vmatprep.subr.bf16.mxu1 %v5946_v3 }
0x2b55   :  { %5706 = vmatmul.mubr.msk.bf16.vlgmr.msra.gmra.mxu1 %vm347_vm2, %v6522_v10  ;;  %v4779_v10 = vld [vmem:[#allocation4 + $0x2e0] sm:$0xff] }
0x2b56   :  { %5713 = vmatprep.mubr.msk.bf16.mxu1 %vm5947_vm1, %v5946_v3  ;;  %5710 = vmatpush3.bf16.msra.mxu1 %v4785_v17  ;;  %v4784_v21 = vpack.c.bf16 %v4780_v18, %v4779_v10 }
0x2b57   :  { %5711 = vmatprep.subr.bf16.mxu1 %v5946_v3 }
0x2b5a   :  { %5712 = vmatpush3.bf16.msra.mxu1 %v4784_v21 }
0x2b5b   :  { %5725 = vmatprep.subr.bf16.mxu1 %v5946_v3 }
0x2c0d   :  { %v4613_v27 = vpop.f32.mrf.mxu1 }
0x2c0e   :  { %v4614_v32 = vadd.f32 %v5058_v22, %v4613_v27 }
0x2c0f   :  { %v5687_v33 = vpop.f32.mrf.mxu1 }
0x2c10   :  { %v4619_v34 = vmax.f32 %v4614_v32, 0.0 }
0x2c11   :  { %v4616_v35 = vpop.f32.mrf.mxu1 }
0x2c12   :  { %v4628_v37 = vpack.c.bf16 %v4619_v34, %v4619_v34 }
0x2c13   :  { %v5688_v25 = vpop.f32.mrf.mxu1 }
0x2c14   :  { %5698 = vmatmul.mubr.msk.bf16.vlgmr.msra.gmra.mxu0 %vm1925_vm11, %v4628_v37 }
0x2c15   :  { %v4772_v57 = vpop.f32.mrf.mxu1  ;;  %5718 = vmatpush3.bf16.msra.mxu0 %v4732_v13  ;;  %5721 = vmatprep.mubr.msk.bf16.mxu0 %vm5947_vm1, %v5946_v3 }
0x2c16   :  { %v4773_v39 = vadd.f32 %v5063_v38, %v4772_v57  ;;  %5719 = vmatprep.subr.bf16.mxu0 %v5946_v3 }
0x2c17   :  { %v5707_v54 = vpop.f32.mrf.mxu1 }
0x2c18   :  { %5891 = vtanh.f32 %v4773_v39 }
0x2c19   :  { %v4775_v41 = vpop.f32.mrf.mxu1  ;;  %5720 = vmatpush3.bf16.msra.mxu0 %v4731_v5 }
0x2c1b   :  { %v5708_v45 = vpop.f32.mrf.mxu1 }
0x2c25   :  { %v5892_v20 = vpop.eup %5891 }
0x2c26   :  { %v4783_v48 = vpack.c.bf16 %v5892_v20, %v5892_v20 }
0x2c28   :  { %5714 = vmatmul.mubr.msk.bf16.vlgmr.msra.gmra.mxu1 %vm347_vm2, %v4783_v48 }
0x2c29   :  { %5726 = vmatpush3.bf16.msra.mxu1 %v4785_v17  ;;  %5729 = vmatprep.mubr.msk.bf16.mxu1 %vm5947_vm1, %v5946_v3 }
0x2c2a   :  { %5727 = vmatprep.subr.bf16.mxu1 %v5946_v3 }
0x2c2d   :  { %5728 = vmatpush3.bf16.msra.mxu1 %v4784_v21 }
0x2cd4   :  { %v4675_v51 = vpop.f32.mrf.mxu0 }
0x2cd5   :  { %v4676_v6 = vadd.f32 %v5060_v49, %v4675_v51 }
0x2cd6   :  { %v5699_v62 = vpop.f32.mrf.mxu0 }
0x2cd7   :  { %v4682_v23 = vcombine.high %v4676_v6, %v4676_v6  ;;  %v4684_v42 = vadd.f32 %v4676_v6, %v6732_v26 }
0x2cd8   :  { %v4678_v52 = vpop.f32.mrf.mxu0 }
0x2cd9   :  { %v4685_v53 = vadd.f32 %v4682_v23, %v6735_v40  ;;  %v4686_v56 = vmul.f32 %v4684_v42, %v4684_v42 }
0x2cda   :  { %v5700_v55 = vpop.f32.mrf.mxu0 }
0x2cdb   :  { %v4687_v19 = vmul.f32 %v4685_v53, %v4685_v53 }
0x2cdd   :  { %v4690_v15 = vcombine.low %v4686_v56, %v4687_v19 }
0x2cdf   :  { %v4692_v0 = vsel %vm347_vm2, %v4690_v15, 0.0 }
0x2ce0   :  { %4693 = vadd.xlane.f32.xlu0 %v4692_v0 }
0x2ce8   :  { %v4828_v3 = vpop.f32.mrf.mxu1 }
0x2ce9   :  { %v4829_v60 = vadd.f32 %v5065_v59, %v4828_v3 }
0x2cea   :  { %v5715_v30 = vpop.f32.mrf.mxu1 }
0x2ceb   :  { %4834 = vst [vmem:[%s6787_s3] sm:$0xff] %v4829_v60 }
0x2cec   :  { %v4831_v43 = vpop.f32.mrf.mxu1 }
0x2cee   :  { %v5716_v26 = vpop.f32.mrf.mxu1 }
0x2d69   :  { %v4694_v44 = vpop.xlane.xlu0 %4693 }
0x2d6a   :  { %v4695_v50 = vmul.f32 0.03125, %v4694_v44 }
0x2d6c   :  { %v4696_v40 = vadd.f32 1e-06, %v4695_v50 }
0x2d6e   :  { %5893 = vrsqrt.f32 %v4696_v40 }
0x2d7b   :  { %v5894_v24 = vpop.eup %5893 }
0x2d7c   :  { %v4705_v63 = vrot.slane %v5894_v24, %v6073_v46  ;;  %v4712_v31 = vrot.slane %v5894_v24, %v6076_v47 }
0x2d7e   :  { %v4715_v1 = vmul.f32 %v4705_v63, %v4684_v42  ;;  %v4716_v7 = vmul.f32 %v4712_v31, %v4685_v53 }
0x2d80   :  { %v4725_v13 = vmul.f32 %v5062_v29, %v4715_v1  ;;  %v4726_v36 = vmul.f32 %v4723_v61, %v4716_v7 }
0x2d82   :  { %v4841_v2 = vcombine.low %v4725_v13, %v4726_v36 }
0x2d84   :  { %v4843_v4 = vpack.c.bf16 %v4841_v2, %v4841_v2 }
0x2d86   :  { %5722 = vmatmul.mubr.msk.bf16.vlgmr.msra.gmra.mxu0 %vm347_vm2, %v4843_v4 }
0x2e46   :  { %v4888_v5 = vpop.f32.mrf.mxu0 }
0x2e47   :  { %v4889_v8 = vadd.f32 %v5063_v38, %v4888_v5 }
0x2e48   :  { %v5723_v9 = vpop.f32.mrf.mxu0 }
0x2e49   :  { %5895 = vtanh.f32 %v4889_v8 }
0x2e4a   :  { %v4891_v11 = vpop.f32.mrf.mxu0 }
0x2e4c   :  { %v5724_v12 = vpop.f32.mrf.mxu0 }
0x2e56   :  { %v5896_v58 = vpop.eup %5895 }
0x2e57   :  { %v4899_v14 = vpack.c.bf16 %v5896_v58, %v5896_v58 }
0x2e59   :  { %5730 = vmatmul.mubr.msk.bf16.vlgmr.msra.gmra.mxu1 %vm347_vm2, %v4899_v14 }
0x2f19   :  { %v4944_v46 = vpop.f32.mrf.mxu1 }
0x2f1a   :  { %v4945_v47 = vadd.f32 %v5065_v59, %v4944_v46 }
0x2f1b   :  { %v5731_v28 = vpop.f32.mrf.mxu1 }
0x2f1c   :  { %4950 = vst [vmem:[%s6787_s3 + $0x8] sm:$0xff] %v4945_v47 }
0x2f1d   :  { %v4947_v16 = vpop.f32.mrf.mxu1 }
0x2f1f   :  { %v5732_v17 = vpop.f32.mrf.mxu1 }
0x2f20   :  { %4955 = vsyncpa [#allocation3], 1 }
0x2f21   :  { %4956 = vsyncpa [#allocation5], 1 }

</bundles_post_ra>
